<compile_context>
chip_gen: v7x
topology: tpu7x:2x2x1
jax: 0.10.0
libtpu: 0.0.40
codegen_flags: <defaults>
</compile_context>

<pallas_src>
import jax
import jax.numpy as jnp
from jax.experimental import pallas as pl
from jax.experimental.pallas import tpu as pltpu


def attention_kernel(feat_ref, dec_ref,
                     w_in_ref, b_in_ref,
                     w_out_ref, b_out_ref,
                     w_att_ref, b_att_ref,
                     alpha_ref, weighted_ref):
    # One grid step == one batch tile of b_tile rows.
    bt, n, e = feat_ref.shape
    a = w_in_ref.shape[-1]

    feat = feat_ref[...]                                    # (BT, N, E) (f32 or bf16)
    feat2d = feat.reshape(bt * n, e)                        # free when N % 8 == 0
    dec = dec_ref[...]                                      # (BT, D)   (no reshape)

    # out1 = input_enc(feature): one big MXU matmul over the whole batch tile.
    out1 = jnp.dot(feat2d, w_in_ref[...],
                   preferred_element_type=jnp.float32) + b_in_ref[...]      # (BT*N, A)
    # out2 = output_enc(dec_out)
    out2 = jnp.dot(dec, w_out_ref[...],
                   preferred_element_type=jnp.float32) + b_out_ref[...]     # (BT, A)

    # relu(out1 + out2.unsqueeze(1))
    h = jnp.maximum(out1.reshape(bt, n, a) + out2[:, None, :], 0.0)         # (BT, N, A)

    # scores lane-dense as (BT, N): elementwise * att row + lane reduce over A
    # (avoids a 1-column MXU output and keeps softmax on the lane axis).
    scores = jnp.sum(h * w_att_ref[...][None], axis=-1) + b_att_ref[...]    # (BT, N)

    # softmax over N (lane axis)
    m = jnp.max(scores, axis=-1, keepdims=True)
    ex = jnp.exp(scores - m)
    denom = jnp.sum(ex, axis=-1, keepdims=True)
    inv = pl.reciprocal(denom, approx=True)        # EUP slot
    inv = inv * (2.0 - denom * inv)                # one Newton step -> full f32 accuracy
    alpha = ex * inv                               # (BT, N)

    # weighted = (feature * alpha).sum(dim=1) on the VPU/XLU:
    # broadcast alpha over E lanes, multiply, sublane-reduce over N.
    # (No per-row M=1 MXU matmuls; the MXU stays free for input_enc.)
    weighted = jnp.sum(feat.astype(jnp.float32) * alpha[:, :, None], axis=1)  # (BT, E)

    alpha_ref[...] = alpha
    weighted_ref[...] = weighted


def _pick_b_tile(B, N, E, D, A, feat_bytes, budget_bytes):
    """Pick b_tile (multiple of 8) so the per-step VMEM working set ~= budget."""
    lanes = 128
    a_pad = ((A + lanes - 1) // lanes) * lanes          # out1/h lane-padded to 128
    per_row = (
        N * E * feat_bytes * 2                          # feature block, double-buffered
        + max(D, lanes) * 4 * 2                         # dec block
        + (max(N, lanes) + max(E, lanes)) * 4 * 2       # alpha / weighted outputs
        + N * a_pad * 4 * 3                             # out1 / h / exp f32 temporaries
    )
    per8 = 8 * per_row
    b_tile = 8 * max(1, budget_bytes // per8)
    # Keep >= 2 grid steps whenever B > 8 so v7x megacore gets both TCs busy.
    b_cap_grid = max(8, 8 * ((B + 15) // 16))
    b_cap_batch = 8 * ((B + 7) // 8)
    return max(8, min(b_tile, b_cap_grid, b_cap_batch))


def attention_forward(feature, dec_out, params, *,
                      b_tile=None,
                      feature_dtype=None,
                      vmem_budget_bytes=8 * 1024 * 1024):
    """feature: (B, N, E), dec_out: (B, D).  Returns (alpha (B,N,1), weighted (B,E)).

    feature_dtype=jnp.bfloat16 streams the dominant HBM read (feature + w_in) at
    half width; accumulation and softmax stay in f32.
    """
    B, N, E = feature.shape
    D = dec_out.shape[-1]
    A = params["w_in"].shape[-1]

    w_in = params["w_in"]
    if feature_dtype is not None:
        feature = feature.astype(feature_dtype)
        w_in = w_in.astype(feature_dtype)
    feat_bytes = jnp.dtype(feature.dtype).itemsize

    if b_tile is None:
        b_tile = _pick_b_tile(B, N, E, D, A, feat_bytes, vmem_budget_bytes)
    else:
        b_tile = max(8, 8 * ((int(b_tile) + 7) // 8))   # keep the (8,128) block rule

    grid_len = pl.cdiv(B, b_tile)
    Bp = grid_len * b_tile
    if Bp != B:
        # pad batch so each grid step sees a full tile; padded rows give finite
        # uniform alphas / zero weighted sums and are sliced off below.
        feature = jnp.pad(feature, ((0, Bp - B), (0, 0), (0, 0)))
        dec_out = jnp.pad(dec_out, ((0, Bp - B), (0, 0)))

    b_in = params["b_in"].reshape(1, A)
    b_out = params["b_out"].reshape(1, A)
    w_att = params["w_att"].reshape(1, A)               # att weight as a lane-dense row
    b_att = params["b_att"].reshape(1, 1)

    alpha2, weighted2 = pl.pallas_call(
        attention_kernel,
        out_shape=(
            jax.ShapeDtypeStruct((Bp, N), jnp.float32),
            jax.ShapeDtypeStruct((Bp, E), jnp.float32),
        ),
        grid=(grid_len,),
        in_specs=[
            pl.BlockSpec((b_tile, N, E), lambda g: (g, 0, 0)),   # feature (streamed)
            pl.BlockSpec((b_tile, D), lambda g: (g, 0)),         # dec_out (2-D, no pad dim)
            pl.BlockSpec((E, A), lambda g: (0, 0)),              # w_in   (resident)
            pl.BlockSpec((1, A), lambda g: (0, 0)),              # b_in
            pl.BlockSpec((D, A), lambda g: (0, 0)),              # w_out
            pl.BlockSpec((1, A), lambda g: (0, 0)),              # b_out
            pl.BlockSpec((1, A), lambda g: (0, 0)),              # w_att (row)
            pl.BlockSpec((1, 1), lambda g: (0, 0)),              # b_att
        ],
        out_specs=(
            pl.BlockSpec((b_tile, N), lambda g: (g, 0)),         # alpha
            pl.BlockSpec((b_tile, E), lambda g: (g, 0)),         # weighted
        ),
        compiler_params=pltpu.CompilerParams(
            dimension_semantics=("parallel",),
            vmem_limit_bytes=32 * 1024 * 1024,
        ),
    )(feature, dec_out, w_in, b_in, params["w_out"], b_out, w_att, b_att)

    alpha = alpha2[:B, :, None]                # (B, N, 1)  -- intended PyTorch shape
    weighted = weighted2[:B]                   # (B, E)
    return alpha, weighted


def reference_forward(feature, dec_out, params):
    out1 = feature @ params["w_in"] + params["b_in"]
    out2 = dec_out @ params["w_out"] + params["b_out"]
    h = jnp.maximum(out1 + out2[:, None, :], 0.0)
    scores = h @ params["w_att"] + params["b_att"]          # (B, N, 1)
    alpha = jax.nn.softmax(scores, axis=1)
    weighted = jnp.sum(feature * alpha, axis=1)
    return alpha, weighted


def init_params(key, encoder_dim, decoder_dim, attention_dim):
    """Deterministic nn.Linear-style init (uniform(-1/sqrt(fan_in), 1/sqrt(fan_in)))."""
    ks = jax.random.split(key, 6)

    def lin(kw, kb, fan_in, fan_out):
        bound = 1.0 / jnp.sqrt(fan_in)
        w = jax.random.uniform(kw, (fan_in, fan_out), jnp.float32, -bound, bound)
        b = jax.random.uniform(kb, (fan_out,), jnp.float32, -bound, bound)
        return w, b

    w_in, b_in = lin(ks[0], ks[1], encoder_dim, attention_dim)
    w_out, b_out = lin(ks[2], ks[3], decoder_dim, attention_dim)
    w_att, b_att = lin(ks[4], ks[5], attention_dim, 1)
    return dict(w_in=w_in, b_in=b_in, w_out=w_out, b_out=b_out,
                w_att=w_att, b_att=b_att)


if __name__ == "__main__":
    B, N = 16, 64
    encoder_dim, decoder_dim, attention_dim = 32, 32, 32

    key = jax.random.PRNGKey(0)
    k_feat, k_dec, k_par = jax.random.split(key, 3)

    feature = jax.random.normal(k_feat, (B, N, encoder_dim), jnp.float32)
    dec_out = jax.random.normal(k_dec, (B, decoder_dim), jnp.float32)
    params = init_params(k_par, encoder_dim, decoder_dim, attention_dim)

    alpha_ref, weighted_ref = reference_forward(feature, dec_out, params)

    # f32 path (exact semantics of the PyTorch module)
    alpha, weighted = attention_forward(feature, dec_out, params)
    jax.block_until_ready((alpha, weighted))
    assert alpha.shape == (B, N, 1) and weighted.shape == (B, encoder_dim)
    assert jnp.allclose(alpha, alpha_ref, atol=1e-4, rtol=1e-4)
    assert jnp.allclose(weighted, weighted_ref, atol=1e-4, rtol=1e-4)

    # bf16 feature-streaming path (halves the dominant HBM read); loose tolerance.
    alpha_bf, weighted_bf = attention_forward(feature, dec_out, params,
                                              feature_dtype=jnp.bfloat16)
    jax.block_until_ready((alpha_bf, weighted_bf))
    assert jnp.allclose(alpha_bf, alpha_ref, atol=5e-2, rtol=5e-2)
    assert jnp.allclose(weighted_bf, weighted_ref, atol=5e-2, rtol=5e-2)

    print("KERNEL_OK")
</pallas_src>

<mosaic_0001>
module attributes {stable_mosaic.version = 11 : i64} {
  func.func @attention_kernel(%arg0: i32, %arg1: memref<8x64x32xf32, #tpu.memory_space<vmem>>, %arg2: memref<8x32xf32, #tpu.memory_space<vmem>>, %arg3: memref<32x32xf32, #tpu.memory_space<vmem>>, %arg4: memref<1x32xf32, #tpu.memory_space<vmem>>, %arg5: memref<32x32xf32, #tpu.memory_space<vmem>>, %arg6: memref<1x32xf32, #tpu.memory_space<vmem>>, %arg7: memref<1x32xf32, #tpu.memory_space<vmem>>, %arg8: memref<1x1xf32, #tpu.memory_space<vmem>>, %arg9: memref<8x64xf32, #tpu.memory_space<vmem>>, %arg10: memref<8x32xf32, #tpu.memory_space<vmem>>) attributes {dimension_semantics = [#tpu.dimension_semantics<parallel>], iteration_bounds = array<i64: 2>, scalar_prefetch = 0 : i64, scratch_operands = 0 : i64, tpu.core_type = #tpu.core_type<tc>, window_params = [{transform_indices = @transform_0, window_bounds = array<i64: 8, 64, 32>}, {transform_indices = @transform_1, window_bounds = array<i64: 8, 32>}, {pipeline_mode = #tpu.pipeline_mode<synchronous>, transform_indices = @transform_2, window_bounds = array<i64: 32, 32>}, {pipeline_mode = #tpu.pipeline_mode<synchronous>, transform_indices = @transform_3, window_bounds = array<i64: 1, 32>}, {pipeline_mode = #tpu.pipeline_mode<synchronous>, transform_indices = @transform_4, window_bounds = array<i64: 32, 32>}, {pipeline_mode = #tpu.pipeline_mode<synchronous>, transform_indices = @transform_5, window_bounds = array<i64: 1, 32>}, {pipeline_mode = #tpu.pipeline_mode<synchronous>, transform_indices = @transform_6, window_bounds = array<i64: 1, 32>}, {pipeline_mode = #tpu.pipeline_mode<synchronous>, transform_indices = @transform_7, window_bounds = array<i64: 1, 1>}, {transform_indices = @transform_8, window_bounds = array<i64: 8, 64>}, {transform_indices = @transform_9, window_bounds = array<i64: 8, 32>}]} {
    %c0 = arith.constant 0 : index
    %c0_0 = arith.constant 0 : index
    %c0_1 = arith.constant 0 : index
    %0 = vector.load %arg1[%c0, %c0_0, %c0_1] : memref<8x64x32xf32, #tpu.memory_space<vmem>>, vector<8x64x32xf32>
    %1 = vector.shape_cast %0 : vector<8x64x32xf32> to vector<512x32xf32>
    %c0_2 = arith.constant 0 : index
    %c0_3 = arith.constant 0 : index
    %2 = vector.load %arg2[%c0_2, %c0_3] : memref<8x32xf32, #tpu.memory_space<vmem>>, vector<8x32xf32>
    %c0_4 = arith.constant 0 : index
    %c0_5 = arith.constant 0 : index
    %3 = vector.load %arg3[%c0_4, %c0_5] : memref<32x32xf32, #tpu.memory_space<vmem>>, vector<32x32xf32>
    %cst = arith.constant dense<0.000000e+00> : vector<512x32xf32>
    %4 = tpu.matmul %1, %3, %cst {dimension_numbers = #tpu.dot_dimension_numbers<[1], [0], [0], [1], [0, 0, 1, 1], [], []>} : vector<512x32xf32>, vector<32x32xf32>, vector<512x32xf32> -> vector<512x32xf32>
    %c0_6 = arith.constant 0 : index
    %c0_7 = arith.constant 0 : index
    %5 = vector.load %arg4[%c0_6, %c0_7] : memref<1x32xf32, #tpu.memory_space<vmem>>, vector<1x32xf32>
    %6 = vector.broadcast %5 : vector<1x32xf32> to vector<512x32xf32>
    %7 = arith.addf %4, %6 : vector<512x32xf32>
    %c0_8 = arith.constant 0 : index
    %c0_9 = arith.constant 0 : index
    %8 = vector.load %arg5[%c0_8, %c0_9] : memref<32x32xf32, #tpu.memory_space<vmem>>, vector<32x32xf32>
    %cst_10 = arith.constant dense<0.000000e+00> : vector<8x32xf32>
    %9 = tpu.matmul %2, %8, %cst_10 {dimension_numbers = #tpu.dot_dimension_numbers<[1], [0], [0], [1], [0, 0, 1, 1], [], []>} : vector<8x32xf32>, vector<32x32xf32>, vector<8x32xf32> -> vector<8x32xf32>
    %c0_11 = arith.constant 0 : index
    %c0_12 = arith.constant 0 : index
    %10 = vector.load %arg6[%c0_11, %c0_12] : memref<1x32xf32, #tpu.memory_space<vmem>>, vector<1x32xf32>
    %11 = vector.broadcast %10 : vector<1x32xf32> to vector<8x32xf32>
    %12 = arith.addf %9, %11 : vector<8x32xf32>
    %13 = vector.shape_cast %7 : vector<512x32xf32> to vector<8x64x32xf32>
    %14 = vector.shape_cast %12 : vector<8x32xf32> to vector<8x1x32xf32>
    %15 = vector.broadcast %14 : vector<8x1x32xf32> to vector<8x64x32xf32>
    %16 = arith.addf %13, %15 : vector<8x64x32xf32>
    %cst_13 = arith.constant 0.000000e+00 : f32
    %17 = vector.broadcast %cst_13 : f32 to vector<8x64x32xf32>
    %18 = arith.maximumf %16, %17 : vector<8x64x32xf32>
    %c0_14 = arith.constant 0 : index
    %c0_15 = arith.constant 0 : index
    %19 = vector.load %arg7[%c0_14, %c0_15] : memref<1x32xf32, #tpu.memory_space<vmem>>, vector<1x32xf32>
    %20 = vector.shape_cast %19 : vector<1x32xf32> to vector<1x1x32xf32>
    %21 = vector.broadcast %20 : vector<1x1x32xf32> to vector<8x64x32xf32>
    %22 = arith.mulf %18, %21 : vector<8x64x32xf32>
    %cst_16 = arith.constant dense<0.000000e+00> : vector<8x64xf32>
    %23 = vector.multi_reduction <add>, %22, %cst_16 [2] : vector<8x64x32xf32> to vector<8x64xf32>
    %c0_17 = arith.constant 0 : index
    %c0_18 = arith.constant 0 : index
    %24 = vector.load %arg8[%c0_17, %c0_18] : memref<1x1xf32, #tpu.memory_space<vmem>>, vector<1x1xf32>
    %25 = vector.broadcast %24 : vector<1x1xf32> to vector<8x64xf32>
    %26 = arith.addf %23, %25 : vector<8x64xf32>
    %cst_19 = arith.constant dense<0xFF800000> : vector<8xf32>
    %27 = vector.multi_reduction <maximumf>, %26, %cst_19 [1] : vector<8x64xf32> to vector<8xf32>
    %28 = vector.shape_cast %27 : vector<8xf32> to vector<8x1xf32>
    %29 = vector.broadcast %28 : vector<8x1xf32> to vector<8x64xf32>
    %30 = arith.subf %26, %29 : vector<8x64xf32>
    %31 = math.exp %30 : vector<8x64xf32>
    %cst_20 = arith.constant dense<0.000000e+00> : vector<8xf32>
    %32 = vector.multi_reduction <add>, %31, %cst_20 [1] : vector<8x64xf32> to vector<8xf32>
    %33 = vector.shape_cast %32 : vector<8xf32> to vector<8x1xf32>
    %34 = tpu.reciprocal %33 {approx = true} : vector<8x1xf32> -> vector<8x1xf32>
    %35 = arith.mulf %33, %34 : vector<8x1xf32>
    %cst_21 = arith.constant 2.000000e+00 : f32
    %36 = vector.broadcast %cst_21 : f32 to vector<8x1xf32>
    %37 = arith.subf %36, %35 : vector<8x1xf32>
    %38 = arith.mulf %34, %37 : vector<8x1xf32>
    %39 = vector.broadcast %38 : vector<8x1xf32> to vector<8x64xf32>
    %40 = arith.mulf %31, %39 : vector<8x64xf32>
    %41 = vector.shape_cast %40 : vector<8x64xf32> to vector<8x64x1xf32>
    %42 = vector.broadcast %41 : vector<8x64x1xf32> to vector<8x64x32xf32>
    %43 = arith.mulf %0, %42 : vector<8x64x32xf32>
    %cst_22 = arith.constant dense<0.000000e+00> : vector<8x32xf32>
    %44 = vector.multi_reduction <add>, %43, %cst_22 [1] : vector<8x64x32xf32> to vector<8x32xf32>
    %c0_23 = arith.constant 0 : index
    %c0_24 = arith.constant 0 : index
    %45 = vector.load %arg9[%c0_23, %c0_24] : memref<8x64xf32, #tpu.memory_space<vmem>>, vector<8x64xf32>
    tpu.vector_store %arg9[%c0_23, %c0_24], %40 {strides = array<i32>} : memref<8x64xf32, #tpu.memory_space<vmem>>, vector<8x64xf32>,
    %c0_25 = arith.constant 0 : index
    %c0_26 = arith.constant 0 : index
    %46 = vector.load %arg10[%c0_25, %c0_26] : memref<8x32xf32, #tpu.memory_space<vmem>>, vector<8x32xf32>
    tpu.vector_store %arg10[%c0_25, %c0_26], %44 {strides = array<i32>} : memref<8x32xf32, #tpu.memory_space<vmem>>, vector<8x32xf32>,
    return
  }
  func.func @transform_0(%arg0: i32) -> (i32, i32, i32) {
    %c0_i32 = arith.constant 0 : i32
    %c0_i32_0 = arith.constant 0 : i32
    %c0_i32_1 = arith.constant 0 : i32
    return %arg0, %c0_i32, %c0_i32_0 : i32, i32, i32
  }
  func.func @transform_1(%arg0: i32) -> (i32, i32) {
    %c0_i32 = arith.constant 0 : i32
    %c0_i32_0 = arith.constant 0 : i32
    return %arg0, %c0_i32 : i32, i32
  }
  func.func @transform_2(%arg0: i32) -> (i32, i32) {
    %c0_i32 = arith.constant 0 : i32
    %c0_i32_0 = arith.constant 0 : i32
    %c0_i32_1 = arith.constant 0 : i32
    return %c0_i32, %c0_i32_0 : i32, i32
  }
  func.func @transform_3(%arg0: i32) -> (i32, i32) {
    %c0_i32 = arith.constant 0 : i32
    %c0_i32_0 = arith.constant 0 : i32
    %c0_i32_1 = arith.constant 0 : i32
    return %c0_i32, %c0_i32_0 : i32, i32
  }
  func.func @transform_4(%arg0: i32) -> (i32, i32) {
    %c0_i32 = arith.constant 0 : i32
    %c0_i32_0 = arith.constant 0 : i32
    %c0_i32_1 = arith.constant 0 : i32
    return %c0_i32, %c0_i32_0 : i32, i32
  }
  func.func @transform_5(%arg0: i32) -> (i32, i32) {
    %c0_i32 = arith.constant 0 : i32
    %c0_i32_0 = arith.constant 0 : i32
    %c0_i32_1 = arith.constant 0 : i32
    return %c0_i32, %c0_i32_0 : i32, i32
  }
  func.func @transform_6(%arg0: i32) -> (i32, i32) {
    %c0_i32 = arith.constant 0 : i32
    %c0_i32_0 = arith.constant 0 : i32
    %c0_i32_1 = arith.constant 0 : i32
    return %c0_i32, %c0_i32_0 : i32, i32
  }
  func.func @transform_7(%arg0: i32) -> (i32, i32) {
    %c0_i32 = arith.constant 0 : i32
    %c0_i32_0 = arith.constant 0 : i32
    %c0_i32_1 = arith.constant 0 : i32
    return %c0_i32, %c0_i32_0 : i32, i32
  }
  func.func @transform_8(%arg0: i32) -> (i32, i32) {
    %c0_i32 = arith.constant 0 : i32
    %c0_i32_0 = arith.constant 0 : i32
    return %arg0, %c0_i32 : i32, i32
  }
  func.func @transform_9(%arg0: i32) -> (i32, i32) {
    %c0_i32 = arith.constant 0 : i32
    %c0_i32_0 = arith.constant 0 : i32
    return %arg0, %c0_i32 : i32, i32
  }
}

</mosaic_0001>

<bundles_post_ra>
// kernel: tpu_custom_call.1
= control target key start
LH: loop header
LB: loop body
LE: loop exit
PB: predicated region body
PF: predicated region fallthrough
CT: control target
= control target key end

     0   :  { %s7557_s0 = inlined_call_operand.vmem [shape: f32[16,64,32], index: 0, kind: input, shape index: {}]   ;;  %s7558_s1 = inlined_call_operand.vmem [shape: f32[16,32], index: 1, kind: input, shape index: {}]   ;;  %s7559_s2 = inlined_call_operand.vmem [shape: f32[32,32], index: 2, kind: input, shape index: {}]   ;;  %s7560_s3 = inlined_call_operand.vmem [shape: f32[1,32], index: 3, kind: input, shape index: {}]   ;;  %s7561_s4 = inlined_call_operand.vmem [shape: f32[32,32], index: 4, kind: input, shape index: {}]   ;;  %s7562_s5 = inlined_call_operand.vmem [shape: f32[1,32], index: 5, kind: input, shape index: {}]   ;;  %s7563_s6 = inlined_call_operand.vmem [shape: f32[1,32], index: 6, kind: input, shape index: {}]   ;;  %s7564_s7 = inlined_call_operand.<no memory space> [shape: f32[1,1], index: 7, kind: input, shape index: {}]   ;;  %s7565_s8 = inlined_call_operand.hbm [shape: f32[16,64], index: 8, kind: output, shape index: {0}]   ;;  %s7566_s9 = inlined_call_operand.hbm [shape: f32[16,32], index: 9, kind: output, shape index: {1}]  }
   0x1   :  { %v15_v0 = vstv %s7564_s7 }
   0x2   :  { %16 = vst [vmem:[#allocation2] sm:$0x1] %v15_v0 }
   0x3   :  { %17 = vsyncpa [#allocation4], 0 }
   0x4   :  { %19 = vsyncpa [#allocation4 + $0x1], 0 }
   0x5   :  { %20 = vsyncpa [#allocation6], 0 }
   0x6   :  { %22 = vsyncpa [#allocation6 + $0x1], 0  ;;  %s4709_s11 = smov 0   ;;  %s4711_s12 = smov 0  }
   0x7   :  { %s4713_s13 = smov 0   ;;  %s4715_s14 = smov 0  }
   0x8 LB: > { %s4730_s7 = sadd.s32 4294967295, %s4647_s14   ;;  %s4016_s15 = sadd.s32 4294967294, %s4647_s14   ;;  %s4647_s14 = sphi %s4715_s14, %s7940_s14   ;;  %s4643_s13 = sphi %s4713_s13, %s7939_s13   ;;  %s4639_s12 = sphi %s4711_s12, %s7938_s12   ;;  %s4635_s11 = sphi %s4709_s11, %s7937_s11  }
   0x9   : > { %s4734_s16 = sadd.s32 1, %s4647_s14   ;;  %s213_s17 = sadd.s32 1, %s4643_s13 }
   0xa   : > { %s210_s18 = ssub.s32 %s4647_s14, %s4734_s16  ;;  %p223_p0 = scmp.ne.s32.totalorder %s4643_s13, %s4639_s12 }
   0xb   : > { %p211_p1 = scmp.eq.s32.totalorder %s210_s18, 0  ;;  %p224_p2 = scmp.eq.s32.totalorder %s4730_s7, 1 }
   0xc   : > { %p229_p3 = scmp.ne.s32.totalorder %s4639_s12, %s4635_s11  ;;  %p230_p4 = scmp.eq.s32.totalorder %s4016_s15, 1 }
   0xd   : > { %s4745_s19 = scalar_select %p211_p1, %s4643_s13, %s213_s17  }
   0xe   : > { %p4747_p5 = por %p224_p2, %p223_p0  ;;  %p4751_p6 = por %p230_p4, %p229_p3 }
   0xf   : > { %p4019_p7 = scmp.ge.s32.totalorder %s4647_s14, 1  ;;  %p309_p8 = scmp.lt.s32.totalorder %s4647_s14, 3 }
  0x11   : > { %p310_p9 = pnand %p4019_p7, %p309_p8 }
  0x13   : > { %313 = sbr.rel (%p310_p9) target bundleno = 1571 (0x623), region = 52 }
  0x1a   : > { %v431_v1 = vld [vmem:[%s7559_s2] sm:$0xff]  ;;  %v432_v2 = vld [vmem:[%s7559_s2 + $0x8] sm:$0xff]  ;;  %v433_v3 = vld [vmem:[%s7559_s2 + $0x10] sm:$0xff]  ;;  %s4022_s28 = sshll.u32 %s4730_s7, 3  ;;  %vm442_vm0 = vcmask 261120   ;;  %v4649_v13 = vmov 0.0|0.0  }
  0x1b   : > { %v4290_v4 = vpack.c.bf16 %v432_v2, %v431_v1  ;;  %v434_v5 = vld [vmem:[%s7559_s2 + $0x18] sm:$0xff]  ;;  %p356_p10 = scmp.lt.s32.totalorder %s4022_s28, 15  ;;  %v1020_v7 = vld [vmem:[%s7561_s4] sm:$0xff]  ;;  %v1021_v8 = vld [vmem:[%s7561_s4 + $0x8] sm:$0xff]  ;;  %p362_p11 = scmp.lt.s32.totalorder %s4730_s7, 1  ;;  %vm4650_vm1 = vmmov 0  }
  0x1c   : > { %v4294_v6 = vpack.c.bf16 %v434_v5, %v433_v3  ;;  %v4299_v12 = vpack.c.bf16 %v1021_v8, %v1020_v7  ;;  %v1022_v15 = vld [vmem:[%s7561_s4 + $0x10] sm:$0xff]  ;;  %v1023_v16 = vld [vmem:[%s7561_s4 + $0x18] sm:$0xff]  ;;  %vm1734_vm2 = vcmask 130112   ;;  %vm1741_vm3 = vcmask 195712   ;;  %s7407_s29 = sand.u32 1, %s4639_s12   ;;  %s4654_s26 = smov [#allocation3]  }
  0x1d   : > { %4304 = vmatprep.subr.bf16.mxu1 %v4290_v4  ;;  %4291 = vmatprep.subr.bf16.mxu0 %v4290_v4  ;;  %s7942_s28 = smov (!%p356_p10, %s4022_s28), 15  ;;  %v4302_v20 = vpack.c.bf16 %v1023_v16, %v1022_v15  ;;  %vm1748_vm4 = vcmask 261312   ;;  %vm1755_vm5 = vcmask 326912   ;;  %vm1762_vm6 = vcmask 392512   ;;  %s3882_s23 = scalar_lea.sflag [#allocation4], %s7407_s29 }
  0x1e   : > { %4306 = vmatpush3.bf16.msra.mxu1 %v4290_v4  ;;  %4293 = vmatpush3.bf16.msra.mxu0 %v4290_v4  ;;  %s4101_s10 = sshll.u32 %s7942_s28, 6  ;;  %vm1769_vm7 = vcmask 458112   ;;  %vm1776_vm8 = vcmask 523712   ;;  %vm2051_vm9 = vcmask 1041409   ;;  %vm2053_vm10 = vcmask 1042434   ;;  %s4557_s27 = sshll.u32 %s4654_s26, 4  ;;  %s4558_s27 = int_to_ptr.vmem [resolvable:$false] %s4557_s27 }
  0x1f   : > { %4305 = vmatprep.subr.bf16.mxu1 %v4294_v6  ;;  %4295 = vmatprep.subr.bf16.mxu0 %v4294_v6  ;;  %s4779_s25 = scalar_lea.vmem %s7557_s0, %s4101_s10  ;;  %vm2055_vm11 = vcmask 1043459   ;;  %vm2057_vm12 = vcmask 1044484   ;;  %vm2059_vm13 = vcmask 1045509   ;;  %vm2061_vm14 = vcmask 1046534   ;;  %s4559_s28 = scalar_lea.vmem %s4558_s27, 256 }
  0x20   : > { %v400_v9 = vld [vmem:[%s4779_s25 + $0x110] sm:$0xff]  ;;  %v366_v10 = vld [vmem:[%s4779_s25] sm:$0xff]  ;;  %v401_v11 = vld [vmem:[%s4779_s25 + $0x118] sm:$0xff]  ;;  %s363_s30 = scalar_select %p362_p11, %s4730_s7, 1  ;;  %vm2063_vm15 = vcmask 1047559  }
  0x21   : > { %4234 = vmatprep.mubr.msk.f32.mxu1 %vm442_vm0, %v400_v9  ;;  %v402_v14 = vld [vmem:[%s4779_s25 + $0x120] sm:$0xff]  ;;  %4183 = vmatprep.mubr.msk.f32.mxu0 %vm442_vm0, %v366_v10  ;;  %v367_v17 = vld [vmem:[%s4779_s25 + $0x8] sm:$0xff]  ;;  %v368_v18 = vld [vmem:[%s4779_s25 + $0x10] sm:$0xff] }
  0x22   : > { %4307 = vmatpush3.bf16.msra.mxu1 %v4294_v6  ;;  %4297 = vmatpush3.bf16.msra.mxu0 %v4294_v6  ;;  %v403_v19 = vld [vmem:[%s4779_s25 + $0x128] sm:$0xff]  ;;  %v404_v21 = vld [vmem:[%s4779_s25 + $0x130] sm:$0xff]  ;;  %v369_v22 = vld [vmem:[%s4779_s25 + $0x18] sm:$0xff]  ;;  %s4025_s10 = sshll.u32 %s363_s30, 3  ;;  %s4020_s30 = sshll.u32 %s7407_s29, 3 }
  0x23   : > { %4298 = vmatprep.subr.bf16.mxu1 %v4649_v13  ;;  %v370_v23 = vld [vmem:[%s4779_s25 + $0x20] sm:$0xff]  ;;  %v405_v24 = vld [vmem:[%s4779_s25 + $0x138] sm:$0xff]  ;;  %v371_v26 = vld [vmem:[%s4779_s25 + $0x28] sm:$0xff]  ;;  %s365_s18 = scalar_lea.vmem %s7558_s1, %s4025_s10  ;;  %s7669_s10 = sshll.u32 %s4730_s7, 7 }
  0x24   : > { %v406_v25 = vld [vmem:[%s4779_s25 + $0x140] sm:$0xff]  ;;  %v372_v27 = vld [vmem:[%s4779_s25 + $0x30] sm:$0xff]  ;;  %v407_v28 = vld [vmem:[%s4779_s25 + $0x148] sm:$0xff]  ;;  %s347_s15 = scalar_lea.vmem [#allocation3], %s4020_s30  ;;  %s7470_s22 = scalar_lea.hbm %s7565_s8, %s7669_s10 }
  0x25   : > { %4235 = vmatmul.mubr.msk.f32.vlgmr.msra.gmra.mrb[0].mxu1 %vm442_vm0, %v401_v11  ;;  %4184 = vmatmul.mubr.msk.f32.vlgmr.msra.gmra.mrb[0].mxu0 %vm442_vm0, %v367_v17  ;;  %v408_v29 = vld [vmem:[%s4779_s25 + $0x150] sm:$0xff]  ;;  %v373_v30 = vld [vmem:[%s4779_s25 + $0x38] sm:$0xff]  ;;  %v374_v31 = vld [vmem:[%s4779_s25 + $0x40] sm:$0xff]  ;;  %v4651_v11 = vmov 0.0   ;;  %s3900_s17 = sshll.u32 %s347_s15, 4  ;;  %s7472_s17 = int_to_ptr.vmem [resolvable:$true] %s3900_s17 }
  0x26   : > { %4300 = vmatpush3.bf16.msra.mxu1 %v4299_v12  ;;  %4237 = vmatprep.mubr.msk.f32.mxu1 %vm442_vm0, %v402_v14  ;;  %v409_v32 = vld [vmem:[%s4779_s25 + $0x158] sm:$0xff]  ;;  %v410_v33 = vld [vmem:[%s4779_s25 + $0x160] sm:$0xff]  ;;  %v375_v34 = vld [vmem:[%s4779_s25 + $0x48] sm:$0xff]  ;;  %s4553_s24 = scalar_lea.vmem %s7472_s17, 128  ;;  %p4560_p1 = scmp.lt.s32.totalorder %s7472_s17, %s4558_s27 }
  0x27   : > { %4301 = vmatprep.subr.bf16.mxu1 %v4649_v13  ;;  %4186 = vmatprep.mubr.msk.f32.mxu0 %vm442_vm0, %v368_v18  ;;  %v376_v35 = vld [vmem:[%s4779_s25 + $0x50] sm:$0xff]  ;;  %v411_v36 = vld [vmem:[%s4779_s25 + $0x168] sm:$0xff]  ;;  %v377_v38 = vld [vmem:[%s4779_s25 + $0x58] sm:$0xff]  ;;  %p4554_p12 = scmp.ne.s32.totalorder %s7472_s17, %s4553_s24  ;;  %p4561_p2 = scmp.lt.s32.totalorder %s4559_s28, %s4553_s24 }
  0x28   : > { %v412_v37 = vld [vmem:[%s4779_s25 + $0x170] sm:$0xff]  ;;  %v378_v39 = vld [vmem:[%s4779_s25 + $0x60] sm:$0xff]  ;;  %v413_v40 = vld [vmem:[%s4779_s25 + $0x178] sm:$0xff] }
  0x29   : > { %4238 = vmatmul.mubr.msk.f32.gmra.mrb[2].mxu1 %vm442_vm0, %v403_v19  ;;  %4187 = vmatmul.mubr.msk.f32.gmra.mrb[2].mxu0 %vm442_vm0, %v369_v22  ;;  %v414_v41 = vld [vmem:[%s4779_s25 + $0x180] sm:$0xff]  ;;  %v379_v42 = vld [vmem:[%s4779_s25 + $0x68] sm:$0xff]  ;;  %v380_v43 = vld [vmem:[%s4779_s25 + $0x70] sm:$0xff]  ;;  %p4555_p13 = pnand %p4554_p12, %p4747_p5  ;;  %p4562_p3 = por %p4561_p2, %p4560_p1 }
  0x2a   : > { %4240 = vmatprep.mubr.msk.f32.mxu1 %vm442_vm0, %v404_v21  ;;  %4303 = vmatpush3.bf16.msra.mxu1 %v4302_v20  ;;  %v415_v44 = vld [vmem:[%s4779_s25 + $0x188] sm:$0xff]  ;;  %v416_v45 = vld [vmem:[%s4779_s25 + $0x190] sm:$0xff]  ;;  %v381_v46 = vld [vmem:[%s4779_s25 + $0x78] sm:$0xff] }
  0x2b   : > { %4189 = vmatprep.mubr.msk.f32.mxu0 %vm442_vm0, %v370_v23  ;;  %v382_v47 = vld [vmem:[%s4779_s25 + $0x80] sm:$0xff]  ;;  %v417_v48 = vld [vmem:[%s4779_s25 + $0x198] sm:$0xff]  ;;  %v383_v50 = vld [vmem:[%s4779_s25 + $0x88] sm:$0xff]  ;;  %p4556_p0 = pneg %p4555_p13 }
  0x2c   : > { %v418_v49 = vld [vmem:[%s4779_s25 + $0x1a0] sm:$0xff]  ;;  %v384_v51 = vld [vmem:[%s4779_s25 + $0x90] sm:$0xff]  ;;  %v419_v52 = vld [vmem:[%s4779_s25 + $0x1a8] sm:$0xff] }
  0x2d   : > { %4241 = vmatmul.mubr.msk.f32.gmra.mrb[4].mxu1 %vm442_vm0, %v405_v24  ;;  %4190 = vmatmul.mubr.msk.f32.gmra.mrb[4].mxu0 %vm442_vm0, %v371_v26  ;;  %v420_v53 = vld [vmem:[%s4779_s25 + $0x1b0] sm:$0xff]  ;;  %v385_v54 = vld [vmem:[%s4779_s25 + $0x98] sm:$0xff]  ;;  %v386_v55 = vld [vmem:[%s4779_s25 + $0xa0] sm:$0xff]  ;;  %p4563_p4 = pnand %p4562_p3, %p4556_p0 }
  0x2e   : > { %4243 = vmatprep.mubr.msk.f32.mxu1 %vm442_vm0, %v406_v25  ;;  %4192 = vmatprep.mubr.msk.f32.mxu0 %vm442_vm0, %v372_v27  ;;  %v421_v56 = vld [vmem:[%s4779_s25 + $0x1b8] sm:$0xff]  ;;  %v422_v57 = vld [vmem:[%s4779_s25 + $0x1c0] sm:$0xff]  ;;  %v387_v58 = vld [vmem:[%s4779_s25 + $0xa8] sm:$0xff] }
  0x2f   : > { %v388_v59 = vld [vmem:[%s4779_s25 + $0xb0] sm:$0xff]  ;;  %v423_v60 = vld [vmem:[%s4779_s25 + $0x1c8] sm:$0xff]  ;;  %v389_v62 = vld [vmem:[%s4779_s25 + $0xb8] sm:$0xff] }
  0x30   : > { %v424_v61 = vld [vmem:[%s4779_s25 + $0x1d0] sm:$0xff]  ;;  %v390_v63 = vld [vmem:[%s4779_s25 + $0xc0] sm:$0xff]  ;;  %v425_v0 = vld [vmem:[%s4779_s25 + $0x1d8] sm:$0xff] }
  0x31   : > { %4244 = vmatmul.mubr.msk.f32.gmra.mrb[6].mxu1 %vm442_vm0, %v407_v28  ;;  %4193 = vmatmul.mubr.msk.f32.gmra.mrb[6].mxu0 %vm442_vm0, %v373_v30  ;;  %v426_v1 = vld [vmem:[%s4779_s25 + $0x1e0] sm:$0xff]  ;;  %v391_v2 = vld [vmem:[%s4779_s25 + $0xc8] sm:$0xff]  ;;  %v392_v3 = vld [vmem:[%s4779_s25 + $0xd0] sm:$0xff] }
  0x32   : > { %4246 = vmatprep.mubr.msk.f32.mxu1 %vm442_vm0, %v408_v29  ;;  %4195 = vmatprep.mubr.msk.f32.mxu0 %vm442_vm0, %v374_v31  ;;  %v427_v4 = vld [vmem:[%s4779_s25 + $0x1e8] sm:$0xff]  ;;  %v428_v5 = vld [vmem:[%s4779_s25 + $0x1f0] sm:$0xff]  ;;  %v393_v6 = vld [vmem:[%s4779_s25 + $0xd8] sm:$0xff] }
  0x33   : > { %v394_v7 = vld [vmem:[%s4779_s25 + $0xe0] sm:$0xff]  ;;  %v429_v8 = vld [vmem:[%s4779_s25 + $0x1f8] sm:$0xff]  ;;  %v395_v9 = vld [vmem:[%s4779_s25 + $0xe8] sm:$0xff] }
  0x34   : > { %v396_v10 = vld [vmem:[%s4779_s25 + $0xf0] sm:$0xff]  ;;  %v430_v12 = vld [vmem:[%s365_s18] sm:$0xff]  ;;  %v397_v13 = vld [vmem:[%s4779_s25 + $0xf8] sm:$0xff] }
  0x35   : > { %4247 = vmatmul.mubr.msk.f32.gmra.mrb[8].mxu1 %vm442_vm0, %v409_v32  ;;  %4196 = vmatmul.mubr.msk.f32.gmra.mrb[8].mxu0 %vm442_vm0, %v375_v34  ;;  %v398_v14 = vld [vmem:[%s4779_s25 + $0x100] sm:$0xff]  ;;  %v399_v15 = vld [vmem:[%s4779_s25 + $0x108] sm:$0xff] }
  0x36   : > { %4249 = vmatprep.mubr.msk.f32.mxu1 %vm442_vm0, %v410_v33  ;;  %4198 = vmatprep.mubr.msk.f32.mxu0 %vm442_vm0, %v376_v35 }
  0x39   : > { %4250 = vmatmul.mubr.msk.f32.gmra.mrb[10].mxu1 %vm442_vm0, %v411_v36  ;;  %4199 = vmatmul.mubr.msk.f32.gmra.mrb[10].mxu0 %vm442_vm0, %v377_v38 }
  0x3a   : > { %4252 = vmatprep.mubr.msk.f32.mxu1 %vm442_vm0, %v412_v37  ;;  %4201 = vmatprep.mubr.msk.f32.mxu0 %vm442_vm0, %v378_v39 }
  0x3d   : > { %4253 = vmatmul.mubr.msk.f32.gmra.mrb[12].mxu1 %vm442_vm0, %v413_v40  ;;  %4202 = vmatmul.mubr.msk.f32.gmra.mrb[12].mxu0 %vm442_vm0, %v379_v42 }
  0x3e   : > { %4255 = vmatprep.mubr.msk.f32.mxu1 %vm442_vm0, %v414_v41  ;;  %4204 = vmatprep.mubr.msk.f32.mxu0 %vm442_vm0, %v380_v43 }
  0x41   : > { %4256 = vmatmul.mubr.msk.f32.gmra.mrb[14].mxu1 %vm442_vm0, %v415_v44  ;;  %4205 = vmatmul.mubr.msk.f32.gmra.mrb[14].mxu0 %vm442_vm0, %v381_v46 }
  0x42   : > { %4258 = vmatprep.mubr.msk.f32.mxu1 %vm442_vm0, %v416_v45  ;;  %4207 = vmatprep.mubr.msk.f32.mxu0 %vm442_vm0, %v382_v47 }
  0x45   : > { %4259 = vmatmul.mubr.msk.f32.gmra.mrb[16].mxu1 %vm442_vm0, %v417_v48  ;;  %4208 = vmatmul.mubr.msk.f32.gmra.mrb[16].mxu0 %vm442_vm0, %v383_v50 }
  0x46   : > { %4261 = vmatprep.mubr.msk.f32.mxu1 %vm442_vm0, %v418_v49  ;;  %4210 = vmatprep.mubr.msk.f32.mxu0 %vm442_vm0, %v384_v51 }
  0x49   : > { %4262 = vmatmul.mubr.msk.f32.gmra.mrb[18].mxu1 %vm442_vm0, %v419_v52  ;;  %4211 = vmatmul.mubr.msk.f32.gmra.mrb[18].mxu0 %vm442_vm0, %v385_v54 }
  0x4a   : > { %4264 = vmatprep.mubr.msk.f32.mxu1 %vm442_vm0, %v420_v53  ;;  %4213 = vmatprep.mubr.msk.f32.mxu0 %vm442_vm0, %v386_v55 }
  0x4d   : > { %4265 = vmatmul.mubr.msk.f32.gmra.mrb[20].mxu1 %vm442_vm0, %v421_v56  ;;  %4214 = vmatmul.mubr.msk.f32.gmra.mrb[20].mxu0 %vm442_vm0, %v387_v58 }
  0x4e   : > { %4267 = vmatprep.mubr.msk.f32.mxu1 %vm442_vm0, %v422_v57  ;;  %4216 = vmatprep.mubr.msk.f32.mxu0 %vm442_vm0, %v388_v59 }
  0x51   : > { %4268 = vmatmul.mubr.msk.f32.gmra.mrb[22].mxu1 %vm442_vm0, %v423_v60  ;;  %4217 = vmatmul.mubr.msk.f32.gmra.mrb[22].mxu0 %vm442_vm0, %v389_v62 }
  0x52   : > { %4270 = vmatprep.mubr.msk.f32.mxu1 %vm442_vm0, %v424_v61  ;;  %4219 = vmatprep.mubr.msk.f32.mxu0 %vm442_vm0, %v390_v63 }
  0x55   : > { %4271 = vmatmul.mubr.msk.f32.gmra.mrb[24].mxu1 %vm442_vm0, %v425_v0  ;;  %4220 = vmatmul.mubr.msk.f32.gmra.mrb[24].mxu0 %vm442_vm0, %v391_v2  ;;  %v4652_v2 = vmov 1966171168  }
  0x56   : > { %4273 = vmatprep.mubr.msk.f32.mxu1 %vm442_vm0, %v426_v1  ;;  %4222 = vmatprep.mubr.msk.f32.mxu0 %vm442_vm0, %v392_v3  ;;  %v1107_v3 = vunpack.c.l.s4 %v4652_v2 }
  0x59   : > { %4274 = vmatmul.mubr.msk.f32.gmra.mrb[26].mxu1 %vm442_vm0, %v427_v4  ;;  %4223 = vmatmul.mubr.msk.f32.gmra.mrb[26].mxu0 %vm442_vm0, %v393_v6  ;;  %v7567_v4 = vlaneseq }
  0x5a   : > { %4276 = vmatprep.mubr.msk.f32.mxu1 %vm442_vm0, %v428_v5  ;;  %4225 = vmatprep.mubr.msk.f32.mxu0 %vm442_vm0, %v394_v7 }
  0x5d   : > { %4277 = vmatmul.mubr.msk.f32.gmra.mrb[28].mxu1 %vm442_vm0, %v429_v8  ;;  %4226 = vmatmul.mubr.msk.f32.gmra.mrb[28].mxu0 %vm442_vm0, %v395_v9  ;;  %v1108_v9 = vunpack.c.0.s8 %v1107_v3 }
  0x5e   : > { %4287 = vmatprep.mubr.msk.f32.mxu1 %vm4650_vm1, %v4651_v11  ;;  %4228 = vmatprep.mubr.msk.f32.mxu0 %vm442_vm0, %v396_v10  ;;  %v5028_v10 = vshrl.u32 %v7567_v4, 7  ;;  %vm2066_vm1 = vcmask 523264  }
  0x60   : > { %7675 = vst [vmem:[#allocation12_spill] sm:$0xff] %v5028_v10  ;;  %v1111_v2 = vsub.s32 %v1108_v9, %v5028_v10 }
  0x61   : > { %4288 = vmatmul.mubr.msk.f32.vlgmr.msra.gmra.mrb[30].mxu1 %vm442_vm0, %v430_v12  ;;  %4229 = vmatmul.mubr.msk.f32.gmra.mrb[30].mxu0 %vm442_vm0, %v397_v13  ;;  %v5033_v12 = vld [vmem:[%s7560_s3] ss:$0 sm:$0xff] }
  0x62   : > { %4231 = vmatprep.mubr.msk.f32.mxu0 %vm442_vm0, %v398_v14 }
  0x65   : > { %4232 = vmatmul.mubr.msk.f32.gmra.mrb[32].mxu0 %vm442_vm0, %v399_v15 }
  0xf8   : > { %v4921_v16 = vpop.f32.mrb[0].mxu1  ;;  %v4925_v18 = vpop.f32.mrb[0].mxu0 }
  0xf9   : > { %v4923_v17 = vpop.f32.mrb[1].mxu1  ;;  %v4927_v19 = vpop.f32.mrb[1].mxu0  ;;  %v5050_v4 = vadd.f32 %v4925_v18, %v5033_v12 }
  0xfa   : > { %v5046_v3 = vadd.f32 %v5033_v12, %v4923_v17  ;;  %v702_v18 = vadd.f32 %v5033_v12, %v4927_v19 }
  0xfc   : > { %v4929_v20 = vpop.f32.mrb[2].mxu1  ;;  %v4933_v22 = vpop.f32.mrb[2].mxu0  ;;  %7679 = vst [vmem:[#allocation16_spill] sm:$0xff] %v5046_v3 }
  0xfd   : > { %v4931_v21 = vpop.f32.mrb[3].mxu1  ;;  %v4935_v23 = vpop.f32.mrb[3].mxu0  ;;  %v5070_v3 = vadd.f32 %v4933_v22, %v5033_v12 }
  0xfe   : > { %v5064_v17 = vadd.f32 %v5033_v12, %v4931_v21  ;;  %v712_v21 = vadd.f32 %v5033_v12, %v4935_v23 }
 0x100   : > { %v4937_v24 = vpop.f32.mrb[4].mxu1  ;;  %v4941_v26 = vpop.f32.mrb[4].mxu0  ;;  %7682 = vst [vmem:[#allocation19_spill] sm:$0xff] %v5064_v17 }
 0x101   : > { %v4939_v25 = vpop.f32.mrb[5].mxu1  ;;  %v4943_v27 = vpop.f32.mrb[5].mxu0  ;;  %v5084_v17 = vadd.f32 %v4941_v26, %v5033_v12 }
 0x104   : > { %v4945_v28 = vpop.f32.mrb[6].mxu1  ;;  %v4949_v30 = vpop.f32.mrb[6].mxu0 }
 0x105   : > { %v4947_v29 = vpop.f32.mrb[7].mxu1  ;;  %v4951_v31 = vpop.f32.mrb[7].mxu0  ;;  %v5088_v22 = vadd.f32 %v4945_v28, %v5033_v12  ;;  %v5108_v28 = vadd.f32 %v4949_v30, %v5033_v12 }
 0x107   : > { %7685 = vst [vmem:[#allocation22_spill] sm:$0xff] %v5088_v22 }
 0x108   : > { %v4953_v32 = vpop.f32.mrb[8].mxu1  ;;  %v4957_v34 = vpop.f32.mrb[8].mxu0 }
 0x109   : > { %v4955_v33 = vpop.f32.mrb[9].mxu1  ;;  %v4959_v35 = vpop.f32.mrb[9].mxu0  ;;  %v5100_v23 = vadd.f32 %v4953_v32, %v5033_v12 }
 0x10a   : > { %v5104_v26 = vadd.f32 %v5033_v12, %v4955_v33  ;;  %v5120_v32 = vadd.f32 %v5033_v12, %v4959_v35 }
 0x10b   : > { %7687 = vst [vmem:[#allocation24_spill] sm:$0xff] %v5100_v23 }
 0x10c   : > { %v4961_v36 = vpop.f32.mrb[10].mxu1  ;;  %v4965_v38 = vpop.f32.mrb[10].mxu0  ;;  %7688 = vst [vmem:[#allocation25_spill] sm:$0xff] %v5104_v26 }
 0x10d   : > { %v4963_v37 = vpop.f32.mrb[11].mxu1  ;;  %v4967_v39 = vpop.f32.mrb[11].mxu0  ;;  %v5124_v30 = vadd.f32 %v4961_v36, %v5033_v12  ;;  %v5132_v26 = vadd.f32 %v4965_v38, %v5033_v12 }
 0x10f   : > { %7689 = vst [vmem:[#allocation26_spill] sm:$0xff] %v5124_v30 }
 0x110   : > { %v4969_v40 = vpop.f32.mrb[12].mxu1  ;;  %v4973_v42 = vpop.f32.mrb[12].mxu0 }
 0x111   : > { %v4971_v41 = vpop.f32.mrb[13].mxu1  ;;  %v4975_v43 = vpop.f32.mrb[13].mxu0  ;;  %v5140_v35 = vadd.f32 %v4969_v40, %v5033_v12  ;;  %v5150_v38 = vadd.f32 %v4973_v42, %v5033_v12 }
 0x113   : > { %7691 = vst [vmem:[#allocation28_spill] sm:$0xff] %v5140_v35 }
 0x114   : > { %v4977_v44 = vpop.f32.mrb[14].mxu1  ;;  %v4981_v46 = vpop.f32.mrb[14].mxu0 }
 0x115   : > { %v4979_v45 = vpop.f32.mrb[15].mxu1  ;;  %v4983_v47 = vpop.f32.mrb[15].mxu0 }
 0x118   : > { %v4985_v48 = vpop.f32.mrb[16].mxu1  ;;  %v4989_v50 = vpop.f32.mrb[16].mxu0 }
 0x119   : > { %v4987_v49 = vpop.f32.mrb[17].mxu1  ;;  %v4991_v51 = vpop.f32.mrb[17].mxu0 }
 0x11c   : > { %v4993_v52 = vpop.f32.mrb[18].mxu1  ;;  %v4997_v54 = vpop.f32.mrb[18].mxu0 }
 0x11d   : > { %v4995_v53 = vpop.f32.mrb[19].mxu1  ;;  %v4999_v55 = vpop.f32.mrb[19].mxu0 }
 0x120   : > { %v5001_v56 = vpop.f32.mrb[20].mxu1  ;;  %v5005_v58 = vpop.f32.mrb[20].mxu0 }
 0x121   : > { %v5003_v57 = vpop.f32.mrb[21].mxu1  ;;  %v5007_v59 = vpop.f32.mrb[21].mxu0 }
 0x124   : > { %v5009_v60 = vpop.f32.mrb[22].mxu1  ;;  %v5013_v62 = vpop.f32.mrb[22].mxu0 }
 0x125   : > { %v5011_v61 = vpop.f32.mrb[23].mxu1  ;;  %v5015_v63 = vpop.f32.mrb[23].mxu0 }
 0x128   : > { %v5017_v0 = vpop.f32.mrb[24].mxu1  ;;  %v5021_v5 = vpop.f32.mrb[24].mxu0 }
 0x129   : > { %v5019_v1 = vpop.f32.mrb[25].mxu1  ;;  %7672 = vst [vmem:[#allocation9_spill] sm:$0xff] %v5021_v5  ;;  %v821_v6 = vpop.f32.mrb[25].mxu0 }
 0x12c   : > { %v5023_v7 = vpop.f32.mrb[26].mxu1  ;;  %v4224_v11 = vpop.f32.mrb[26].mxu0 }
 0x12d   : > { %7673 = vst [vmem:[#allocation10_spill] sm:$0xff] %v5023_v7  ;;  %v5025_v8 = vpop.f32.mrb[27].mxu1  ;;  %v831_v13 = vpop.f32.mrb[27].mxu0 }
 0x12e   : > { %7674 = vst [vmem:[#allocation11_spill] sm:$0xff] %v5025_v8  ;;  %v5042_v8 = vadd.f32 %v4921_v16, %v5033_v12  ;;  %v5060_v16 = vadd.f32 %v4929_v20, %v5033_v12  ;;  %v5078_v20 = vadd.f32 %v5033_v12, %v4939_v25  ;;  %v5096_v25 = vadd.f32 %v5033_v12, %v4943_v27 }
 0x130   : > { %v5035_v14 = vpop.f32.mrb[28].mxu1  ;;  %7678 = vst [vmem:[#allocation15_spill] sm:$0xff] %v5042_v8  ;;  %v4227_v9 = vpop.f32.mrb[28].mxu0  ;;  %7681 = vst [vmem:[#allocation18_spill] sm:$0xff] %v5060_v16 }
 0x131   : > { %7676 = vst [vmem:[#allocation13_spill] sm:$0xff] %v5035_v14  ;;  %v5037_v15 = vpop.f32.mrb[29].mxu1  ;;  %v4091_v14 = vld [vmem:[%s7562_s5] ss:$0 sm:$0xff]  ;;  %v841_v8 = vpop.f32.mrb[29].mxu0  ;;  %7684 = vst [vmem:[#allocation21_spill] sm:$0xff] %v5078_v20 }
 0x132   : > { %7677 = vst [vmem:[#allocation14_spill] sm:$0xff] %v5037_v15  ;;  %v5056_v15 = vsub.s32 0, %v5028_v10  ;;  %v5074_v10 = vadd.f32 %v4937_v24, %v5033_v12  ;;  %v5092_v24 = vadd.f32 %v5033_v12, %v4947_v29  ;;  %v5112_v29 = vadd.f32 %v5033_v12, %v4951_v31 }
 0x133   : > { %v5128_v31 = vadd.f32 %v5033_v12, %v4963_v37  ;;  %v5146_v37 = vadd.f32 %v5033_v12, %v4971_v41  ;;  %v842_v16 = vadd.f32 %v5033_v12, %v841_v8  ;;  %v5181_v8 = vadd.f32 %v5033_v12, %v4975_v43 }
 0x134   : > { %7680 = vst [vmem:[#allocation17_spill] sm:$0xff] %v5056_v15  ;;  %7683 = vst [vmem:[#allocation20_spill] sm:$0xff] %v5074_v10  ;;  %v1100_v19 = vpop.f32.mrb[30].mxu1  ;;  %v4230_v27 = vpop.f32.mrb[30].mxu0 }
 0x135   : > { %7686 = vst [vmem:[#allocation23_spill] sm:$0xff] %v5092_v24  ;;  %v1101_v20 = vadd.f32 %v4091_v14, %v1100_v19  ;;  %v4289_v10 = vpop.f32.mrb[31].mxu1  ;;  %v851_v19 = vpop.f32.mrb[31].mxu0  ;;  %7690 = vst [vmem:[#allocation27_spill] sm:$0xff] %v5128_v31  ;;  %v822_v31 = vadd.f32 %v5033_v12, %v821_v6 }
 0x136   : > { %v5116_v10 = vadd.f32 %v4957_v34, %v5033_v12  ;;  %v5136_v34 = vadd.f32 %v5033_v12, %v4967_v39  ;;  %7692 = vst [vmem:[#allocation29_spill] sm:$0xff] %v5146_v37  ;;  %v837_v39 = vadd.f32 %v4224_v11, %v5033_v12  ;;  %v847_v37 = vadd.f32 %v4227_v9, %v5033_v12 }
 0x137   : > { %v1105_v14 = vcombine.high %v1101_v20, %v1101_v20  ;;  %v1112_v33 = vrot.slane %v1101_v20, %v1111_v2  ;;  %v5173_v9 = vadd.f32 %v4977_v44, %v5033_v12 }
 0x138   : > { %v4233_v30 = vpop.f32.mrb[32].mxu0 }
 0x139   : > { %v1119_v20 = vrot.slane %v1105_v14, %v1111_v2  ;;  %v1120_v23 = vcombine.high %v1112_v33, %v1112_v33  ;;  %v5142_v36 = vrot.slane %v1112_v33, %v1111_v2  ;;  %v832_v33 = vadd.f32 %v5033_v12, %v831_v13  ;;  %v861_v35 = vpop.f32.mrb[33].mxu0 }
 0x13a   : > { %v867_v42 = vadd.f32 %v4233_v30, %v5033_v12  ;;  %v862_v22 = vadd.f32 %v5033_v12, %v861_v35 }
 0x13b   : > { %v1121_v24 = vcombine.high %v1119_v20, %v1119_v20  ;;  %v5154_v40 = vrot.slane %v1119_v20, %v1111_v2  ;;  %v1142_v14 = vrot.slane %v1120_v23, %v1111_v2  ;;  %v1157_v41 = vrot.slane %v5142_v36, %v5056_v15 }
 0x13c   : > { %v857_v20 = vadd.f32 %v4230_v27, %v5033_v12  ;;  %v852_v23 = vadd.f32 %v5033_v12, %v851_v19  ;;  %v5188_v27 = vadd.f32 %v4981_v46, %v5033_v12 }
 0x13d   : > { %v5162_v6 = vrot.slane %v1121_v24, %v1111_v2  ;;  %v1152_v11 = vcombine.high %v1142_v14, %v1142_v14  ;;  %v5168_v13 = vrot.slane %v5154_v40, %v5056_v15  ;;  %v1196_v5 = vadd.f32 %v1157_v41, %v712_v21 }
 0x13e   : > { %v1194_v7 = vadd.f32 %v1157_v41, %v702_v18  ;;  %v5177_v2 = vadd.f32 %v5033_v12, %v4979_v45 }
 0x13f   : > { %v5184_v24 = vrot.slane %v1152_v11, %v5056_v15  ;;  %v5191_v18 = vadd.f32 %v5168_v13, %v867_v42  ;;  %v5194_v44 = vadd.f32 %v5168_v13, %v862_v22  ;;  %v1260_v21 = vmax.f32 %v1196_v5, 0.0 }
 0x140   : > { %v1258_v30 = vmax.f32 %v1194_v7, 0.0  ;;  %v5224_v7 = vadd.f32 %v4985_v48, %v5033_v12  ;;  %v5240_v42 = vadd.f32 %v5033_v12, %v4995_v53  ;;  %v782_v48 = vadd.f32 %v5033_v12, %v4991_v51 }
 0x141   : > { %v5197_v45 = vadd.f32 %v5184_v24, %v822_v31  ;;  %v5200_v43 = vadd.f32 %v5184_v24, %v837_v39  ;;  %v5203_v19 = vadd.f32 %v5184_v24, %v832_v33  ;;  %v5206_v46 = vadd.f32 %v5184_v24, %v847_v37  ;;  %v5220_v31 = vld [vmem:[%s7563_s6] ss:$0 sm:$0xff] }
 0x142   : > { %v5209_v35 = vadd.f32 %v5184_v24, %v842_v16  ;;  %v5212_v22 = vadd.f32 %v5184_v24, %v857_v20  ;;  %v5215_v5 = vadd.f32 %v5184_v24, %v852_v23  ;;  %v5228_v37 = vadd.f32 %v5033_v12, %v4987_v49  ;;  %7694 = vst [vmem:[#allocation31_spill] sm:$0xff] %v5240_v42 }
 0x143   : > { %v772_v16 = vadd.f32 %v5033_v12, %v4983_v47  ;;  %v787_v39 = vadd.f32 %v4989_v50, %v5033_v12  ;;  %v5236_v33 = vadd.f32 %v4993_v52, %v5033_v12  ;;  %v5246_v49 = vadd.f32 %v4997_v54, %v5033_v12 }
 0x144   : > { %v1161_v47 = vrot.slane %v1142_v14, %v5056_v15  ;;  %v1331_v11 = vmul.f32 %v5220_v31, %v1260_v21  ;;  %v1329_v50 = vmul.f32 %v5220_v31, %v1258_v30  ;;  %v1197_v52 = vadd.f32 %v1157_v41, %v5070_v3 }
 0x145   : > { %7693 = vst [vmem:[#allocation30_spill] sm:$0xff] %v5236_v33  ;;  %v1195_v20 = vadd.f32 %v1157_v41, %v5050_v4  ;;  %v1199_v53 = vadd.f32 %v1157_v41, %v5084_v17  ;;  %v1198_v23 = vadd.f32 %v1157_v41, %v5096_v25  ;;  %v1201_v51 = vadd.f32 %v1157_v41, %v5108_v28 }
 0x146   : > { %v1399_v42 = vsel %vm442_vm0, %v1331_v11, 0.0  ;;  %v1393_v54 = vsel %vm442_vm0, %v1329_v50, 0.0  ;;  %v1261_v33 = vmax.f32 %v1197_v52, 0.0  ;;  %v1200_v14 = vadd.f32 %v1157_v41, %v5112_v29 }
 0x147   : > { %v5261_v21 = vadd.f32 %v5033_v12, %v4999_v55  ;;  %1400 = vadd.xlane.f32.xlu1 %v1399_v42  ;;  %1394 = vadd.xlane.f32.xlu0 %v1393_v54  ;;  %v1259_v4 = vmax.f32 %v1195_v20, 0.0  ;;  %v1263_v3 = vmax.f32 %v1199_v53, 0.0  ;;  %v1262_v17 = vmax.f32 %v1198_v23, 0.0 }
 0x148   : > { %v1150_v25 = vcombine.high %v5142_v36, %v5142_v36  ;;  %v1332_v28 = vmul.f32 %v5220_v31, %v1261_v33  ;;  %v1203_v30 = vadd.f32 %v1161_v47, %v5116_v10  ;;  %v1202_v11 = vadd.f32 %v1161_v47, %v5120_v32 }
 0x149   : > { %v5270_v29 = vadd.f32 %v5001_v56, %v5033_v12  ;;  %v5274_v55 = vadd.f32 %v5033_v12, %v5003_v57  ;;  %v807_v41 = vadd.f32 %v5005_v58, %v5033_v12  ;;  %v1330_v42 = vmul.f32 %v5220_v31, %v1259_v4 }
 0x14a   : > { %v802_v36 = vadd.f32 %v5033_v12, %v5007_v59  ;;  %v1402_v10 = vsel %vm442_vm0, %v1332_v28, 0.0  ;;  %v1334_v32 = vmul.f32 %v5220_v31, %v1263_v3  ;;  %v1265_v33 = vmax.f32 %v1201_v51, 0.0 }
 0x14b   : > { %v5285_v56 = vadd.f32 %v5009_v60, %v5033_v12  ;;  %1403 = vadd.xlane.f32.xlu1 %v1402_v10  ;;  %v1396_v57 = vsel %vm442_vm0, %v1330_v42, 0.0  ;;  %v1333_v50 = vmul.f32 %v5220_v31, %v1262_v17  ;;  %v1264_v58 = vmax.f32 %v1200_v14, 0.0  ;;  %v7697_v42 = vld [vmem:[#allocation11_spill] sm:$0xff] }
 0x14c   : > { %v1165_v52 = vrot.slane %v1150_v25, %v5056_v15  ;;  %1397 = vadd.xlane.f32.xlu0 %v1396_v57  ;;  %v1267_v20 = vmax.f32 %v1203_v30, 0.0  ;;  %v1266_v59 = vmax.f32 %v1202_v11, 0.0  ;;  %v1205_v53 = vadd.f32 %v1161_v47, %v5132_v26  ;;  %v7696_v30 = vld [vmem:[#allocation9_spill] sm:$0xff] }
 0x14d   : > { %v1204_v23 = vadd.f32 %v1161_v47, %v5136_v34  ;;  %v1207_v51 = vadd.f32 %v1161_v47, %v5150_v38  ;;  %v1206_v60 = vadd.f32 %v1161_v47, %v5181_v8  ;;  %v1209_v54 = vadd.f32 %v1161_v47, %v5188_v27 }
 0x14e   : > { %v5297_v4 = vadd.f32 %v5033_v12, %v5011_v61  ;;  %v1408_v14 = vsel %vm442_vm0, %v1334_v32, 0.0  ;;  %v1336_v3 = vmul.f32 %v5220_v31, %v1265_v33  ;;  %v1208_v17 = vadd.f32 %v1161_v47, %v772_v16 }
 0x14f   : > { %v817_v26 = vadd.f32 %v5013_v62, %v5033_v12  ;;  %v812_v34 = vadd.f32 %v5033_v12, %v5015_v63  ;;  %1409 = vadd.xlane.f32.xlu1 %v1408_v14  ;;  %v1405_v38 = vsel %vm442_vm0, %v1333_v50, 0.0  ;;  %v1335_v8 = vmul.f32 %v5220_v31, %v1264_v58  ;;  %v7695_v63 = vld [vmem:[#allocation10_spill] sm:$0xff] }
 0x150   : > { %1406 = vadd.xlane.f32.xlu0 %v1405_v38  ;;  %v1338_v61 = vmul.f32 %v5220_v31, %v1267_v20  ;;  %v1337_v27 = vmul.f32 %v5220_v31, %v1266_v59  ;;  %v1211_v25 = vadd.f32 %v1165_v52, %v787_v39  ;;  %v1210_v28 = vadd.f32 %v1165_v52, %v782_v48  ;;  %v7698_v39 = vld [vmem:[#allocation13_spill] sm:$0xff] }
 0x151   : > { %v5311_v16 = vadd.f32 %v5017_v0, %v5033_v12  ;;  %v5315_v62 = vadd.f32 %v5033_v12, %v5019_v1  ;;  %v5319_v47 = vadd.f32 %v7695_v63, %v5033_v12  ;;  %v827_v11 = vadd.f32 %v7696_v30, %v5033_v12  ;;  %v7699_v1 = vld [vmem:[#allocation14_spill] sm:$0xff] }
 0x152   : > { %v5325_v10 = vadd.f32 %v5033_v12, %v7697_v42  ;;  %v5329_v48 = vadd.f32 %v7698_v39, %v5033_v12  ;;  %v1414_v0 = vsel %vm442_vm0, %v1336_v3, 0.0  ;;  %v1269_v32 = vmax.f32 %v1205_v53, 0.0 }
 0x153   : > { %v5334_v33 = vadd.f32 %v5033_v12, %v7699_v1  ;;  %v1151_v57 = vcombine.high %v5154_v40, %v5154_v40  ;;  %1415 = vadd.xlane.f32.xlu1 %v1414_v0  ;;  %v1411_v50 = vsel %vm442_vm0, %v1335_v8, 0.0  ;;  %v1268_v58 = vmax.f32 %v1204_v23, 0.0  ;;  %v7701_v0 = vld [vmem:[#allocation16_spill] sm:$0xff]  ;;  %v7702_v1 = vld [vmem:[#allocation18_spill] sm:$0xff] }
 0x154   : > { %v1153_v20 = vcombine.high %v5162_v6, %v5162_v6  ;;  %1412 = vadd.xlane.f32.xlu0 %v1411_v50  ;;  %v1420_v59 = vsel %vm442_vm0, %v1338_v61, 0.0  ;;  %v1417_v14 = vsel %vm442_vm0, %v1337_v27, 0.0  ;;  %v1213_v53 = vadd.f32 %v1165_v52, %v5246_v49  ;;  %v7703_v50 = vld [vmem:[#allocation19_spill] sm:$0xff] }
 0x155   : > { %v5345_v12 = vadd.f32 %v1165_v52, %v5261_v21  ;;  %v5347_v3 = vadd.f32 %v1165_v52, %v807_v41  ;;  %v5349_v40 = vadd.f32 %v1165_v52, %v802_v36  ;;  %v5351_v38 = vadd.f32 %v1165_v52, %v817_v26 }
 0x156   : > { %v1340_v23 = vmul.f32 %v5220_v31, %v1269_v32  ;;  %v1271_v8 = vmax.f32 %v1207_v51, 0.0  ;;  %v1270_v63 = vmax.f32 %v1206_v60, 0.0  ;;  %v5354_v30 = vadd.f32 %v1165_v52, %v812_v34 }
 0x157   : > { %1421 = vadd.xlane.f32.xlu1 %v1420_v59  ;;  %v1339_v61 = vmul.f32 %v5220_v31, %v1268_v58  ;;  %v1273_v27 = vmax.f32 %v1209_v54, 0.0  ;;  %v1272_v49 = vmax.f32 %v1208_v17, 0.0  ;;  %v1275_v42 = vmax.f32 %v1211_v25, 0.0 }
 0x158   : > { %v5359_v21 = vrot.slane %v5162_v6, %v5056_v15  ;;  %v5362_v41 = vrot.slane %v1151_v57, %v5056_v15  ;;  %v5365_v36 = vrot.slane %v1153_v20, %v5056_v15  ;;  %1418 = vadd.xlane.f32.xlu0 %v1417_v14  ;;  %v1274_v51 = vmax.f32 %v1210_v28, 0.0  ;;  %v7704_v20 = vld [vmem:[#allocation20_spill] sm:$0xff]  ;;  %v7705_v14 = vld [vmem:[#allocation21_spill] sm:$0xff] }
 0x159   : > { %v1282_v52 = vmax.f32 %v5197_v45, 0.0  ;;  %v1285_v60 = vmax.f32 %v5200_v43, 0.0  ;;  %v1284_v54 = vmax.f32 %v5203_v19, 0.0  ;;  %v1291_v17 = vmax.f32 %v5191_v18, 0.0  ;;  %v7700_v19 = vld [vmem:[#allocation15_spill] sm:$0xff] }
 0x15a   : > { %v1287_v26 = vmax.f32 %v5206_v46, 0.0  ;;  %v1426_v6 = vsel %vm442_vm0, %v1340_v23, 0.0  ;;  %v1342_v34 = vmul.f32 %v5220_v31, %v1271_v8  ;;  %v1341_v25 = vmul.f32 %v5220_v31, %v1270_v63 }
 0x15b   : > { %1427 = vadd.xlane.f32.xlu1 %v1426_v6  ;;  %v1423_v39 = vsel %vm442_vm0, %v1339_v61, 0.0  ;;  %v1344_v28 = vmul.f32 %v5220_v31, %v1273_v27  ;;  %v1343_v45 = vmul.f32 %v5220_v31, %v1272_v49  ;;  %v1346_v43 = vmul.f32 %v5220_v31, %v1275_v42 }
 0x15c   : > { %1424 = vadd.xlane.f32.xlu0 %v1423_v39  ;;  %v1345_v18 = vmul.f32 %v5220_v31, %v1274_v51  ;;  %v5382_v46 = vadd.f32 %v5168_v13, %v7700_v19  ;;  %v5386_v32 = vadd.f32 %v5168_v13, %v7701_v0  ;;  %v5390_v57 = vadd.f32 %v5168_v13, %v7702_v1  ;;  %v7707_v1 = vld [vmem:[#allocation23_spill] sm:$0xff] }
 0x15d   : > { %v5394_v58 = vadd.f32 %v5168_v13, %v7703_v50  ;;  %v5398_v59 = vadd.f32 %v5168_v13, %v7704_v20  ;;  %v5402_v23 = vadd.f32 %v5168_v13, %v7705_v14  ;;  %v1219_v8 = vadd.f32 %v5184_v24, %v827_v11  ;;  %v7708_v14 = vld [vmem:[#allocation24_spill] sm:$0xff] }
 0x15e   : > { %v1286_v63 = vmax.f32 %v5209_v35, 0.0  ;;  %v1432_v61 = vsel %vm442_vm0, %v1342_v34, 0.0  ;;  %v1277_v27 = vmax.f32 %v1213_v53, 0.0  ;;  %v5408_v49 = vmul.f32 %v5220_v31, %v1282_v52 }
 0x15f   : > { %v1290_v42 = vmax.f32 %v5194_v44, 0.0  ;;  %1433 = vadd.xlane.f32.xlu1 %v1432_v61  ;;  %v1429_v51 = vsel %vm442_vm0, %v1341_v25, 0.0  ;;  %v1276_v6 = vmax.f32 %v5345_v12, 0.0  ;;  %v1283_v39 = vmax.f32 %v1219_v8, 0.0 }
 0x160   : > { %v1289_v13 = vmax.f32 %v5212_v22, 0.0  ;;  %v1288_v24 = vmax.f32 %v5215_v5, 0.0  ;;  %1430 = vadd.xlane.f32.xlu0 %v1429_v51  ;;  %v1438_v35 = vsel %vm442_vm0, %v1344_v28, 0.0  ;;  %v1279_v11 = vmax.f32 %v5347_v3, 0.0 }
 0x161   : > { %v1435_v53 = vsel %vm442_vm0, %v1343_v45, 0.0  ;;  %v1444_v52 = vsel %vm442_vm0, %v1346_v43, 0.0  ;;  %v1441_v44 = vsel %vm442_vm0, %v1345_v18, 0.0  ;;  %v5421_v34 = vmul.f32 %v5220_v31, %v1283_v39 }
 0x162   : > { %v1348_v12 = vmul.f32 %v5220_v31, %v1277_v27  ;;  %v1278_v22 = vmax.f32 %v5349_v40, 0.0  ;;  %v1281_v5 = vmax.f32 %v5351_v38, 0.0  ;;  %v5427_v25 = vmul.f32 %v5220_v31, %v1285_v60 }
 0x163   : > { %1439 = vadd.xlane.f32.xlu1 %v1438_v35  ;;  %v1347_v3 = vmul.f32 %v5220_v31, %v1276_v6  ;;  %v1280_v28 = vmax.f32 %v5354_v30, 0.0  ;;  %v1362_v45 = vmul.f32 %v5220_v31, %v1291_v17  ;;  %v1361_v43 = vmul.f32 %v5220_v31, %v1290_v42  ;;  %v7706_v17 = vld [vmem:[#allocation22_spill] sm:$0xff]  ;;  %v7709_v6 = vld [vmem:[#allocation25_spill] sm:$0xff]  ;;  %v7711_v35 = vld [vmem:[#allocation27_spill] sm:$0xff] }
 0x164   : > { %1436 = vadd.xlane.f32.xlu0 %v1435_v53  ;;  %v1350_v18 = vmul.f32 %v5220_v31, %v1279_v11  ;;  %v5435_v19 = vmul.f32 %v5220_v31, %v1284_v54  ;;  %v5438_v40 = vmul.f32 %v5220_v31, %v1287_v26  ;;  %v5441_v38 = vmul.f32 %v5220_v31, %v1286_v63 }
 0x165   : > { %v5444_v60 = vmul.f32 %v5220_v31, %v1289_v13  ;;  %v5447_v30 = vmul.f32 %v5220_v31, %v1288_v24  ;;  %v1235_v0 = vadd.f32 %v5359_v21, %v7706_v17  ;;  %v1234_v50 = vadd.f32 %v5359_v21, %v7707_v1  ;;  %v7710_v13 = vld [vmem:[#allocation26_spill] sm:$0xff] }
 0x166   : > { %v1450_v54 = vsel %vm442_vm0, %v1348_v12, 0.0  ;;  %v1349_v26 = vmul.f32 %v5220_v31, %v1278_v22  ;;  %v1352_v20 = vmul.f32 %v5220_v31, %v1281_v5  ;;  %v1237_v8 = vadd.f32 %v5359_v21, %v7708_v14  ;;  %v7712_v12 = vld [vmem:[#allocation28_spill] sm:$0xff] }
 0x167   : > { %1445 = vadd.xlane.f32.xlu1 %v1444_v52  ;;  %v1351_v63 = vmul.f32 %v5220_v31, %v1280_v28  ;;  %v5460_v61 = vsel %vm442_vm0, %v1362_v45, 0.0  ;;  %v1299_v27 = vmax.f32 %v1235_v0, 0.0  ;;  %v1298_v42 = vmax.f32 %v1234_v50, 0.0 }
 0x168   : > { %1442 = vadd.xlane.f32.xlu0 %v1441_v44  ;;  %v1301_v51 = vmax.f32 %v1237_v8, 0.0  ;;  %v1236_v39 = vadd.f32 %v5359_v21, %v7709_v6  ;;  %v1239_v24 = vadd.f32 %v5359_v21, %v7710_v13  ;;  %v1238_v11 = vadd.f32 %v5359_v21, %v7711_v35  ;;  %v7713_v44 = vld [vmem:[#allocation29_spill] sm:$0xff] }
 0x169   : > { %v5469_v53 = vmul.f32 %v5220_v31, %v1299_v27  ;;  %v5472_v52 = vmul.f32 %v5220_v31, %v1298_v42  ;;  %v1241_v22 = vadd.f32 %v5359_v21, %v7712_v12  ;;  %v1240_v5 = vadd.f32 %v5359_v21, %v7713_v44  ;;  %v7715_v44 = vld [vmem:[#allocation31_spill] sm:$0xff] }
 0x16a   : > { %v5479_v28 = vmul.f32 %v5220_v31, %v1301_v51  ;;  %v1300_v45 = vmax.f32 %v1236_v39, 0.0  ;;  %v1303_v17 = vmax.f32 %v1239_v24, 0.0  ;;  %v1302_v0 = vmax.f32 %v1238_v11, 0.0 }
 0x16b   : > { %1451 = vadd.xlane.f32.xlu1 %v1450_v54  ;;  %v1447_v1 = vsel %vm442_vm0, %v1347_v3, 0.0  ;;  %v1489_v50 = vsel %vm442_vm0, %v1361_v43, 0.0  ;;  %v1305_v14 = vmax.f32 %v1241_v22, 0.0  ;;  %v1304_v8 = vmax.f32 %v1240_v5, 0.0 }
 0x16c   : > { %1448 = vadd.xlane.f32.xlu0 %v1447_v1  ;;  %v1456_v27 = vsel %vm442_vm0, %v1350_v18, 0.0  ;;  %v5485_v42 = vmul.f32 %v5220_v31, %v1300_v45  ;;  %v5488_v21 = vmul.f32 %v5220_v31, %v1303_v17  ;;  %v5491_v51 = vmul.f32 %v5220_v31, %v1302_v0 }
 0x16d   : > { %v5494_v54 = vmul.f32 %v5220_v31, %v1305_v14  ;;  %v5497_v3 = vmul.f32 %v5220_v31, %v1304_v8  ;;  %v1243_v43 = vadd.f32 %v5362_v41, %v5173_v9  ;;  %v1242_v18 = vadd.f32 %v5362_v41, %v5177_v2 }
 0x16e   : > { %v1453_v6 = vsel %vm442_vm0, %v1349_v26, 0.0  ;;  %v1462_v39 = vsel %vm442_vm0, %v1352_v20, 0.0  ;;  %v1459_v13 = vsel %vm442_vm0, %v1351_v63, 0.0  ;;  %v1245_v24 = vadd.f32 %v5362_v41, %v5224_v7  ;;  %v7714_v26 = vld [vmem:[#allocation30_spill] sm:$0xff] }
 0x16f   : > { %1457 = vadd.xlane.f32.xlu1 %v1456_v27  ;;  %v1293_v35 = vmax.f32 %v5382_v46, 0.0  ;;  %v1292_v11 = vmax.f32 %v5386_v32, 0.0  ;;  %v1307_v12 = vmax.f32 %v1243_v43, 0.0  ;;  %v1306_v22 = vmax.f32 %v1242_v18, 0.0 }
 0x170   : > { %1454 = vadd.xlane.f32.xlu0 %v1453_v6  ;;  %v1309_v9 = vmax.f32 %v1245_v24, 0.0  ;;  %v1244_v2 = vadd.f32 %v5362_v41, %v5228_v37  ;;  %v1247_v20 = vadd.f32 %v5362_v41, %v7714_v26  ;;  %v1246_v63 = vadd.f32 %v5362_v41, %v7715_v44 }
 0x171   : > { %v5517_v7 = vmul.f32 %v5220_v31, %v1307_v12  ;;  %v5520_v46 = vmul.f32 %v5220_v31, %v1306_v22  ;;  %v1249_v32 = vadd.f32 %v5362_v41, %v5270_v29  ;;  %v1248_v5 = vadd.f32 %v5362_v41, %v5274_v55 }
 0x172   : > { %v5527_v37 = vmul.f32 %v5220_v31, %v1309_v9  ;;  %v1308_v45 = vmax.f32 %v1244_v2, 0.0  ;;  %v1311_v17 = vmax.f32 %v1247_v20, 0.0  ;;  %v1310_v0 = vmax.f32 %v1246_v63, 0.0 }
 0x173   : > { %1463 = vadd.xlane.f32.xlu1 %v1462_v39  ;;  %v1364_v1 = vmul.f32 %v5220_v31, %v1293_v35  ;;  %v1295_v14 = vmax.f32 %v5390_v57, 0.0  ;;  %v1313_v8 = vmax.f32 %v1249_v32, 0.0  ;;  %v1312_v27 = vmax.f32 %v1248_v5, 0.0 }
 0x174   : > { %1460 = vadd.xlane.f32.xlu0 %v1459_v13  ;;  %v1294_v43 = vmax.f32 %v5394_v58, 0.0  ;;  %v5533_v29 = vmul.f32 %v5220_v31, %v1308_v45  ;;  %v5536_v55 = vmul.f32 %v5220_v31, %v1311_v17  ;;  %v5539_v41 = vmul.f32 %v5220_v31, %v1310_v0 }
 0x175   : > { %v5542_v18 = vmul.f32 %v5220_v31, %v1313_v8  ;;  %v5545_v6 = vmul.f32 %v5220_v31, %v1312_v27  ;;  %v1251_v57 = vadd.f32 %v5365_v36, %v5285_v56  ;;  %v1250_v58 = vadd.f32 %v5365_v36, %v5297_v4 }
 0x176   : > { %v1363_v39 = vmul.f32 %v5220_v31, %v1292_v11  ;;  %v1297_v13 = vmax.f32 %v5398_v59, 0.0  ;;  %v1296_v24 = vmax.f32 %v5402_v23, 0.0  ;;  %v1253_v35 = vadd.f32 %v5365_v36, %v5311_v16 }
 0x177   : > { %1493 = vadd.xlane.f32.xlu1 %v5460_v61  ;;  %v1498_v12 = vsel %vm442_vm0, %v1364_v1, 0.0  ;;  %v1366_v22 = vmul.f32 %v5220_v31, %v1295_v14  ;;  %v1315_v9 = vmax.f32 %v1251_v57, 0.0  ;;  %v1314_v56 = vmax.f32 %v1250_v58, 0.0 }
 0x178   : > { %1490 = vadd.xlane.f32.xlu0 %v1489_v50  ;;  %v1317_v2 = vmax.f32 %v1253_v35, 0.0  ;;  %v1252_v4 = vadd.f32 %v5365_v36, %v5315_v62  ;;  %v1255_v59 = vadd.f32 %v5365_v36, %v5319_v47  ;;  %v1254_v23 = vadd.f32 %v5365_v36, %v5325_v10 }
 0x179   : > { %v5566_v16 = vmul.f32 %v5220_v31, %v1315_v9  ;;  %v5569_v61 = vmul.f32 %v5220_v31, %v1314_v56  ;;  %v1257_v11 = vadd.f32 %v5365_v36, %v5329_v48  ;;  %v1256_v50 = vadd.f32 %v5365_v36, %v5334_v33  ;;  %v4094_v56 = vld [vmem:[#allocation2] ss:$0 sm:$0xff] }
 0x17a   : > { %v5576_v62 = vmul.f32 %v5220_v31, %v1317_v2  ;;  %v1316_v26 = vmax.f32 %v1252_v4, 0.0  ;;  %v1319_v47 = vmax.f32 %v1255_v59, 0.0  ;;  %v1318_v20 = vmax.f32 %v1254_v23, 0.0 }
 0x17b   : > { %1499 = vadd.xlane.f32.xlu1 %v1498_v12  ;;  %v1495_v10 = vsel %vm442_vm0, %v1363_v39, 0.0  ;;  %v1365_v44 = vmul.f32 %v5220_v31, %v1294_v43  ;;  %v1321_v63 = vmax.f32 %v1257_v11, 0.0  ;;  %v1320_v32 = vmax.f32 %v1256_v50, 0.0 }
 0x17c   : > { %1496 = vadd.xlane.f32.xlu0 %v1495_v10  ;;  %v5581_v5 = vmul.f32 %v5220_v31, %v1316_v26  ;;  %v5584_v48 = vmul.f32 %v5220_v31, %v1319_v47  ;;  %v5587_v33 = vmul.f32 %v5220_v31, %v1318_v20  ;;  %v1504_v17 = vsel %vm442_vm0, %v1366_v22, 0.0 }
 0x17d   : > { %v5590_v36 = vmul.f32 %v5220_v31, %v1321_v63  ;;  %v5593_v45 = vmul.f32 %v5220_v31, %v1320_v32  ;;  %v1368_v0 = vmul.f32 %v5220_v31, %v1297_v13  ;;  %v4653_v1 = vmov 0  }
 0x17e   : > { %4357 = vset.pattern.permute.xlu0 %v4653_v1  ;;  %4358 = vset.pattern.permute.xlu1 %v4653_v1  ;;  %v1501_v14 = vsel %vm442_vm0, %v1365_v44, 0.0  ;;  %v1367_v8 = vmul.f32 %v5220_v31, %v1296_v24  ;;  %v1468_v57 = vsel %vm442_vm0, %v5421_v34, 0.0  ;;  %v1465_v58 = vsel %vm442_vm0, %v5408_v49, 0.0 }
 0x17f   : > { %1505 = vadd.xlane.f32.xlu1 %v1504_v17  ;;  %v1510_v27 = vsel %vm442_vm0, %v1368_v0, 0.0  ;;  %v1474_v39 = vsel %vm442_vm0, %v5427_v25, 0.0  ;;  %v1471_v31 = vsel %vm442_vm0, %v5435_v19, 0.0  ;;  %v1480_v13 = vsel %vm442_vm0, %v5438_v40, 0.0 }
 0x180   : > { %1502 = vadd.xlane.f32.xlu0 %v1501_v14  ;;  %v1507_v43 = vsel %vm442_vm0, %v1367_v8, 0.0  ;;  %v1477_v34 = vsel %vm442_vm0, %v5441_v38, 0.0  ;;  %v1486_v49 = vsel %vm442_vm0, %v5444_v60, 0.0  ;;  %v1483_v25 = vsel %vm442_vm0, %v5447_v30, 0.0 }
 0x181   : > { %v1516_v19 = vsel %vm442_vm0, %v5469_v53, 0.0  ;;  %v1513_v40 = vsel %vm442_vm0, %v5472_v52, 0.0  ;;  %v1522_v38 = vsel %vm442_vm0, %v5479_v28, 0.0  ;;  %v1519_v60 = vsel %vm442_vm0, %v5485_v42, 0.0 }
 0x182   : > { %v1528_v30 = vsel %vm442_vm0, %v5488_v21, 0.0  ;;  %v1525_v53 = vsel %vm442_vm0, %v5491_v51, 0.0  ;;  %v1534_v52 = vsel %vm442_vm0, %v5494_v54, 0.0  ;;  %v1531_v28 = vsel %vm442_vm0, %v5497_v3, 0.0 }
 0x183   : > { %1511 = vadd.xlane.f32.xlu1 %v1510_v27  ;;  %v1540_v42 = vsel %vm442_vm0, %v5517_v7, 0.0  ;;  %v1537_v21 = vsel %vm442_vm0, %v5520_v46, 0.0  ;;  %v1546_v51 = vsel %vm442_vm0, %v5527_v37, 0.0  ;;  %v1543_v54 = vsel %vm442_vm0, %v5533_v29, 0.0 }
 0x184   : > { %1508 = vadd.xlane.f32.xlu0 %v1507_v43  ;;  %v1552_v3 = vsel %vm442_vm0, %v5536_v55, 0.0  ;;  %v1549_v7 = vsel %vm442_vm0, %v5539_v41, 0.0  ;;  %v1558_v46 = vsel %vm442_vm0, %v5542_v18, 0.0  ;;  %v1555_v37 = vsel %vm442_vm0, %v5545_v6, 0.0 }
 0x185   : > { %v1564_v29 = vsel %vm442_vm0, %v5566_v16, 0.0  ;;  %v1561_v55 = vsel %vm442_vm0, %v5569_v61, 0.0  ;;  %v1570_v41 = vsel %vm442_vm0, %v5576_v62, 0.0  ;;  %v1567_v18 = vsel %vm442_vm0, %v5581_v5, 0.0 }
 0x186   : > { %v1576_v6 = vsel %vm442_vm0, %v5584_v48, 0.0  ;;  %v1573_v24 = vsel %vm442_vm0, %v5587_v33, 0.0  ;;  %v1582_v35 = vsel %vm442_vm0, %v5590_v36, 0.0  ;;  %v1579_v12 = vsel %vm442_vm0, %v5593_v45, 0.0 }
 0x187   : > { %1469 = vadd.xlane.f32.xlu1 %v1468_v57 }
 0x188   : > { %1466 = vadd.xlane.f32.xlu0 %v1465_v58 }
 0x18b   : > { %1475 = vadd.xlane.f32.xlu1 %v1474_v39 }
 0x18c   : > { %1472 = vadd.xlane.f32.xlu0 %v1471_v31 }
 0x18f   : > { %1481 = vadd.xlane.f32.xlu1 %v1480_v13 }
 0x190   : > { %1478 = vadd.xlane.f32.xlu0 %v1477_v34 }
 0x193   : > { %1487 = vadd.xlane.f32.xlu1 %v1486_v49 }
 0x194   : > { %1484 = vadd.xlane.f32.xlu0 %v1483_v25 }
 0x197   : > { %1517 = vadd.xlane.f32.xlu1 %v1516_v19 }
 0x198   : > { %1514 = vadd.xlane.f32.xlu0 %v1513_v40 }
 0x19b   : > { %1523 = vadd.xlane.f32.xlu1 %v1522_v38 }
 0x19c   : > { %1520 = vadd.xlane.f32.xlu0 %v1519_v60 }
 0x19f   : > { %1529 = vadd.xlane.f32.xlu1 %v1528_v30 }
 0x1a0   : > { %1526 = vadd.xlane.f32.xlu0 %v1525_v53 }
 0x1a3   : > { %1535 = vadd.xlane.f32.xlu1 %v1534_v52 }
 0x1a4   : > { %1532 = vadd.xlane.f32.xlu0 %v1531_v28 }
 0x1a7   : > { %1541 = vadd.xlane.f32.xlu1 %v1540_v42 }
 0x1a8   : > { %1538 = vadd.xlane.f32.xlu0 %v1537_v21 }
 0x1ab   : > { %1547 = vadd.xlane.f32.xlu1 %v1546_v51 }
 0x1ac   : > { %1544 = vadd.xlane.f32.xlu0 %v1543_v54 }
 0x1af   : > { %1553 = vadd.xlane.f32.xlu1 %v1552_v3 }
 0x1b0   : > { %1550 = vadd.xlane.f32.xlu0 %v1549_v7 }
 0x1b3   : > { %1559 = vadd.xlane.f32.xlu1 %v1558_v46 }
 0x1b4   : > { %1556 = vadd.xlane.f32.xlu0 %v1555_v37 }
 0x1b7   : > { %1565 = vadd.xlane.f32.xlu1 %v1564_v29 }
 0x1b8   : > { %1562 = vadd.xlane.f32.xlu0 %v1561_v55 }
 0x1bb   : > { %1571 = vadd.xlane.f32.xlu1 %v1570_v41 }
 0x1bc   : > { %1568 = vadd.xlane.f32.xlu0 %v1567_v18  ;;  %v7726_v18 = vlaneseq }
 0x1bf   : > { %1577 = vadd.xlane.f32.xlu1 %v1576_v6  ;;  %v1724_v6 = vand.u32 127, %v7726_v18 }
 0x1c0   : > { %1574 = vadd.xlane.f32.xlu0 %v1573_v24 }
 0x1c1   : > { %v1743_v15 = vadd.s32 4294967272, %v1724_v6 }
 0x1c3   : > { %1583 = vadd.xlane.f32.xlu1 %v1582_v35 }
 0x1c4   : > { %1580 = vadd.xlane.f32.xlu0 %v1579_v12  ;;  %v1729_v12 = vadd.s32 4294967288, %v1724_v6 }
 0x1d4   : > { %v5665_v22 = vpop.xlane.xlu1 %1400  ;;  %v5667_v9 = vpop.xlane.xlu0 %1394 }
 0x1d8   : > { %v5669_v2 = vpop.xlane.xlu1 %1403 }
 0x1d9   : > { %v5671_v4 = vpop.xlane.xlu0 %1397 }
 0x1da   : > { %1592 = vperm.xlu0 %4357, %v4094_v56   ;;  %v1736_v56 = vadd.s32 4294967280, %v1724_v6 }
 0x1dc   : > { %v5673_v59 = vpop.xlane.xlu1 %1409 }
 0x1dd   : > { %v5675_v23 = vpop.xlane.xlu0 %1406 }
 0x1e0   : > { %v5677_v16 = vpop.xlane.xlu1 %1415 }
 0x1e1   : > { %v5679_v61 = vpop.xlane.xlu0 %1412 }
 0x1e4   : > { %v5681_v11 = vpop.xlane.xlu1 %1421 }
 0x1e5   : > { %v5683_v50 = vpop.xlane.xlu0 %1418 }
 0x1e8   : > { %v5685_v62 = vpop.xlane.xlu1 %1427 }
 0x1e9   : > { %v5687_v26 = vpop.xlane.xlu0 %1424 }
 0x1ec   : > { %v5689_v47 = vpop.xlane.xlu1 %1433 }
 0x1ed   : > { %v5691_v20 = vpop.xlane.xlu0 %1430 }
 0x1f0   : > { %v5693_v10 = vpop.xlane.xlu1 %1439 }
 0x1f1   : > { %v5695_v44 = vpop.xlane.xlu0 %1436 }
 0x1f4   : > { %v5697_v63 = vpop.xlane.xlu1 %1445 }
 0x1f5   : > { %v5699_v32 = vpop.xlane.xlu0 %1442 }
 0x1f8   : > { %v5701_v5 = vpop.xlane.xlu1 %1451 }
 0x1f9   : > { %v5703_v48 = vpop.xlane.xlu0 %1448 }
 0x1fc   : > { %v5705_v33 = vpop.xlane.xlu1 %1457 }
 0x1fd   : > { %v5707_v36 = vpop.xlane.xlu0 %1454 }
 0x200   : > { %v5709_v45 = vpop.xlane.xlu1 %1463 }
 0x201   : > { %v5711_v17 = vpop.xlane.xlu0 %1460 }
 0x204   : > { %v5713_v0 = vpop.xlane.xlu1 %1493 }
 0x205   : > { %v5715_v1 = vpop.xlane.xlu0 %1490 }
 0x208   : > { %v5717_v14 = vpop.xlane.xlu1 %1499 }
 0x209   : > { %v5719_v8 = vpop.xlane.xlu0 %1496 }
 0x20c   : > { %v5721_v27 = vpop.xlane.xlu1 %1505 }
 0x20d   : > { %v5723_v43 = vpop.xlane.xlu0 %1502 }
 0x210   : > { %v5727_v58 = vpop.xlane.xlu1 %1511 }
 0x211   : > { %v5725_v57 = vpop.xlane.xlu0 %1508 }
 0x214   : > { %v5731_v31 = vpop.xlane.xlu1 %1469 }
 0x215   : > { %v5729_v39 = vpop.xlane.xlu0 %1466 }
 0x218   : > { %v5737_v49 = vpop.xlane.xlu1 %1475 }
 0x219   : > { %v5733_v13 = vpop.xlane.xlu0 %1472 }
 0x21c   : > { %v5741_v19 = vpop.xlane.xlu1 %1481 }
 0x21d   : > { %v5735_v34 = vpop.xlane.xlu0 %1478 }
 0x220   : > { %v5747_v60 = vpop.xlane.xlu1 %1487 }
 0x221   : > { %v5739_v25 = vpop.xlane.xlu0 %1484 }
 0x224   : > { %v5751_v53 = vpop.xlane.xlu1 %1517 }
 0x225   : > { %v5743_v40 = vpop.xlane.xlu0 %1514 }
 0x228   : > { %v5757_v42 = vpop.xlane.xlu1 %1523 }
 0x229   : > { %v5745_v38 = vpop.xlane.xlu0 %1520 }
 0x22c   : > { %v5761_v51 = vpop.xlane.xlu1 %1529 }
 0x22d   : > { %v5749_v30 = vpop.xlane.xlu0 %1526 }
 0x230   : > { %v5767_v7 = vpop.xlane.xlu1 %1535 }
 0x231   : > { %v5753_v52 = vpop.xlane.xlu0 %1532  ;;  %7720 = vst [vmem:[#allocation14_spill] sm:$0xff] %v5767_v7 }
 0x234   : > { %v5771_v37 = vpop.xlane.xlu1 %1541 }
 0x235   : > { %v5755_v28 = vpop.xlane.xlu0 %1538  ;;  %7722 = vst [vmem:[#allocation16_spill] sm:$0xff] %v5771_v37  ;;  %v7729_v37 = vld [vmem:[#allocation12_spill] sm:$0xff] }
 0x236   : > { %7716 = vst [vmem:[#allocation10_spill] sm:$0xff] %v5755_v28  ;;  %v5785_v28 = vsub.s32 %v1724_v6, %v7729_v37  ;;  %v5793_v18 = vsub.s32 %v1736_v56, %v7729_v37 }
 0x238   : > { %v5775_v55 = vpop.xlane.xlu1 %1547  ;;  %7730 = vst [vmem:[#allocation23_spill] sm:$0xff] %v5785_v28  ;;  %7732 = vst [vmem:[#allocation25_spill] sm:$0xff] %v5793_v18 }
 0x239   : > { %v5759_v21 = vpop.xlane.xlu0 %1544  ;;  %7724 = vst [vmem:[#allocation19_spill] sm:$0xff] %v5775_v55 }
 0x23a   : > { %7717 = vst [vmem:[#allocation9_spill] sm:$0xff] %v5759_v21  ;;  %v1771_v21 = vadd.s32 4294967240, %v1724_v6 }
 0x23c   : > { %v5780_v24 = vpop.xlane.xlu1 %1553 }
 0x23d   : > { %v5763_v54 = vpop.xlane.xlu0 %1550  ;;  %7727 = vst [vmem:[#allocation21_spill] sm:$0xff] %v5780_v24 }
 0x23e   : > { %7718 = vst [vmem:[#allocation11_spill] sm:$0xff] %v5763_v54  ;;  %v1757_v54 = vadd.s32 4294967256, %v1724_v6 }
 0x240   : > { %v5801_v55 = vpop.xlane.xlu1 %1559  ;;  %v5804_v7 = vsub.s32 %v1757_v54, %v7729_v37 }
 0x241   : > { %v5765_v3 = vpop.xlane.xlu0 %1556 }
 0x242   : > { %7719 = vst [vmem:[#allocation13_spill] sm:$0xff] %v5765_v3  ;;  %v1750_v3 = vadd.s32 4294967264, %v1724_v6 }
 0x244   : > { %v5799_v24 = vsub.s32 %v1750_v3, %v7729_v37 }
 0x245   : > { %v5769_v46 = vpop.xlane.xlu0 %1562 }
 0x246   : > { %7721 = vst [vmem:[#allocation15_spill] sm:$0xff] %v5769_v46  ;;  %v1764_v46 = vadd.s32 4294967248, %v1724_v6 }
 0x248   : > { %v5807_v6 = vsub.s32 %v1764_v46, %v7729_v37  ;;  %v1566_v46 = vpop.xlane.xlu1 %1565 }
 0x249   : > { %v5773_v29 = vpop.xlane.xlu0 %1568 }
 0x24a   : > { %7723 = vst [vmem:[#allocation18_spill] sm:$0xff] %v5773_v29 }
 0x24d   : > { %v5777_v41 = vpop.xlane.xlu0 %1574 }
 0x24e   : > { %7725 = vst [vmem:[#allocation20_spill] sm:$0xff] %v5777_v41  ;;  %v5790_v41 = vsub.s32 %v1729_v12, %v7729_v37  ;;  %v5810_v12 = vsub.s32 %v1771_v21, %v7729_v37 }
 0x250   : > { %7731 = vst [vmem:[#allocation24_spill] sm:$0xff] %v5790_v41 }
 0x251   : > { %v5782_v35 = vpop.xlane.xlu0 %1580 }
 0x252   : > { %7728 = vst [vmem:[#allocation22_spill] sm:$0xff] %v5782_v35  ;;  %v5796_v35 = vsub.s32 %v1743_v15, %v7729_v37 }
 0x259   : > { %v5787_v29 = vpop.permute.xlu0 %1592 }
 0x25a   : > { %v5814_v56 = vadd.f32 %v5787_v29, %v5667_v9  ;;  %v5818_v15 = vadd.f32 %v5787_v29, %v5671_v4  ;;  %v5822_v3 = vadd.f32 %v5787_v29, %v5665_v22  ;;  %v5826_v54 = vadd.f32 %v5787_v29, %v5669_v2 }
 0x25b   : > { %v5830_v21 = vadd.f32 %v5787_v29, %v5675_v23  ;;  %v5834_v9 = vadd.f32 %v5787_v29, %v5673_v59  ;;  %v5838_v4 = vadd.f32 %v5787_v29, %v5679_v61  ;;  %v5842_v22 = vadd.f32 %v5787_v29, %v5677_v16 }
 0x25c   : > { %7733 = vst [vmem:[#allocation26_spill] sm:$0xff] %v5814_v56  ;;  %7734 = vst [vmem:[#allocation27_spill] sm:$0xff] %v5818_v15  ;;  %v5846_v2 = vadd.f32 %v5787_v29, %v5683_v50  ;;  %v5850_v23 = vadd.f32 %v5787_v29, %v5681_v11  ;;  %v5854_v59 = vadd.f32 %v5787_v29, %v5687_v26 }
 0x25d   : > { %7735 = vst [vmem:[#allocation28_spill] sm:$0xff] %v5822_v3  ;;  %7736 = vst [vmem:[#allocation29_spill] sm:$0xff] %v5826_v54  ;;  %v5858_v61 = vadd.f32 %v5787_v29, %v5685_v62  ;;  %v5862_v16 = vadd.f32 %v5787_v29, %v5691_v20  ;;  %v5866_v50 = vadd.f32 %v5787_v29, %v5689_v47 }
 0x25e   : > { %7737 = vst [vmem:[#allocation30_spill] sm:$0xff] %v5834_v9  ;;  %7738 = vst [vmem:[#allocation31_spill] sm:$0xff] %v5838_v4  ;;  %v5870_v11 = vadd.f32 %v5787_v29, %v5695_v44  ;;  %v5874_v26 = vadd.f32 %v5787_v29, %v5693_v10  ;;  %v5878_v62 = vadd.f32 %v5787_v29, %v5699_v32 }
 0x25f   : > { %7739 = vst [vmem:[#allocation32_spill] sm:$0xff] %v5846_v2  ;;  %7740 = vst [vmem:[#allocation33_spill] sm:$0xff] %v5850_v23  ;;  %v5882_v20 = vadd.f32 %v5787_v29, %v5697_v63  ;;  %v5886_v47 = vadd.f32 %v5787_v29, %v5703_v48  ;;  %v5890_v44 = vadd.f32 %v5787_v29, %v5701_v5 }
 0x260   : > { %7741 = vst [vmem:[#allocation34_spill] sm:$0xff] %v5854_v59  ;;  %7742 = vst [vmem:[#allocation35_spill] sm:$0xff] %v5878_v62  ;;  %v5894_v10 = vadd.f32 %v5787_v29, %v5707_v36  ;;  %v5898_v32 = vadd.f32 %v5787_v29, %v5705_v33  ;;  %v5902_v63 = vadd.f32 %v5787_v29, %v5711_v17 }
 0x261   : > { %7743 = vst [vmem:[#allocation36_spill] sm:$0xff] %v5886_v47  ;;  %v5906_v48 = vadd.f32 %v5787_v29, %v5709_v45  ;;  %v5910_v5 = vadd.f32 %v5787_v29, %v5729_v39  ;;  %v5914_v36 = vadd.f32 %v5787_v29, %v5731_v31  ;;  %v5918_v33 = vadd.f32 %v5787_v29, %v5733_v13 }
 0x262   : > { %v5922_v17 = vadd.f32 %v5787_v29, %v5737_v49  ;;  %v5926_v45 = vadd.f32 %v5787_v29, %v5735_v34  ;;  %v5930_v39 = vadd.f32 %v5787_v29, %v5741_v19  ;;  %v5934_v31 = vadd.f32 %v5787_v29, %v5739_v25 }
 0x263   : > { %7744 = vst [vmem:[#allocation37_spill] sm:$0xff] %v5918_v33  ;;  %v5938_v13 = vadd.f32 %v5787_v29, %v5747_v60  ;;  %v5942_v49 = vadd.f32 %v5787_v29, %v5715_v1  ;;  %v5946_v34 = vadd.f32 %v5787_v29, %v5713_v0  ;;  %v5950_v19 = vadd.f32 %v5787_v29, %v5719_v8 }
 0x264   : > { %7745 = vst [vmem:[#allocation38_spill] sm:$0xff] %v5926_v45  ;;  %v5954_v25 = vadd.f32 %v5787_v29, %v5717_v14  ;;  %v5958_v60 = vadd.f32 %v5787_v29, %v5723_v43  ;;  %v5962_v1 = vadd.f32 %v5787_v29, %v5721_v27  ;;  %v5966_v0 = vadd.f32 %v5787_v29, %v5725_v57  ;;  %v1572_v43 = vpop.xlane.xlu1 %1571 }
 0x265   : > { %7746 = vst [vmem:[#allocation39_spill] sm:$0xff] %v5942_v49  ;;  %7747 = vst [vmem:[#allocation40_spill] sm:$0xff] %v5950_v19  ;;  %v5970_v8 = vadd.f32 %v5787_v29, %v5727_v58  ;;  %v5974_v14 = vadd.f32 %v5787_v29, %v5743_v40  ;;  %v5978_v37 = vadd.f32 %v5787_v29, %v5751_v53 }
 0x266   : > { %7748 = vst [vmem:[#allocation41_spill] sm:$0xff] %v5958_v60  ;;  %7749 = vst [vmem:[#allocation42_spill] sm:$0xff] %v5966_v0  ;;  %v5982_v27 = vadd.f32 %v5787_v29, %v5745_v38  ;;  %v5986_v57 = vadd.f32 %v5787_v29, %v5757_v42  ;;  %v5990_v58 = vadd.f32 %v5787_v29, %v5749_v30  ;;  %v7759_v0 = vld [vmem:[#allocation10_spill] sm:$0xff] }
 0x267   : > { %7750 = vst [vmem:[#allocation43_spill] sm:$0xff] %v5970_v8  ;;  %7751 = vst [vmem:[#allocation44_spill] sm:$0xff] %v5974_v14  ;;  %v5994_v40 = vadd.f32 %v5787_v29, %v5761_v51  ;;  %v5998_v53 = vadd.f32 %v5787_v29, %v5753_v52  ;;  %v7757_v8 = vld [vmem:[#allocation14_spill] sm:$0xff]  ;;  %v6006_v42 = vadd.f32 %v5787_v29, %v7759_v0 }
 0x268   : > { %7752 = vst [vmem:[#allocation45_spill] sm:$0xff] %v5982_v27  ;;  %7753 = vst [vmem:[#allocation46_spill] sm:$0xff] %v5986_v57  ;;  %v6002_v38 = vadd.f32 %v5787_v29, %v7757_v8  ;;  %v7761_v57 = vld [vmem:[#allocation16_spill] sm:$0xff] }
 0x269   : > { %7754 = vst [vmem:[#allocation47_spill] sm:$0xff] %v5990_v58  ;;  %7755 = vst [vmem:[#allocation48_spill] sm:$0xff] %v5994_v40  ;;  %v6010_v30 = vadd.f32 %v5787_v29, %v7761_v57  ;;  %v7763_v58 = vld [vmem:[#allocation9_spill] sm:$0xff]  ;;  %v7765_v40 = vld [vmem:[#allocation19_spill] sm:$0xff] }
 0x26a   : > { %7756 = vst [vmem:[#allocation49_spill] sm:$0xff] %v5998_v53  ;;  %7758 = vst [vmem:[#allocation14_spill] sm:$0xff] %v6002_v38  ;;  %v6014_v51 = vadd.f32 %v5787_v29, %v7763_v58  ;;  %v6018_v52 = vadd.f32 %v5787_v29, %v7765_v40  ;;  %v7767_v53 = vld [vmem:[#allocation11_spill] sm:$0xff]  ;;  %v7769_v38 = vld [vmem:[#allocation21_spill] sm:$0xff]  ;;  %v6034_v58 = vadd.f32 %v5787_v29, %v5801_v55 }
 0x26b   : > { %7760 = vst [vmem:[#allocation10_spill] sm:$0xff] %v6006_v42  ;;  %7762 = vst [vmem:[#allocation16_spill] sm:$0xff] %v6010_v30  ;;  %v6022_v8 = vadd.f32 %v5787_v29, %v7767_v53  ;;  %v6026_v0 = vadd.f32 %v5787_v29, %v7769_v38  ;;  %v7770_v42 = vld [vmem:[#allocation13_spill] sm:$0xff]  ;;  %v1728_v53 = vrot.slane %v5814_v56, %v5785_v28 }
 0x26c   : > { %7764 = vst [vmem:[#allocation9_spill] sm:$0xff] %v6014_v51  ;;  %7766 = vst [vmem:[#allocation19_spill] sm:$0xff] %v6018_v52  ;;  %v6030_v57 = vadd.f32 %v5787_v29, %v7770_v42  ;;  %v7773_v51 = vld [vmem:[#allocation15_spill] sm:$0xff]  ;;  %v6041_v52 = vadd.f32 %v5787_v29, %v1566_v46  ;;  %v1733_v38 = vrot.slane %v5818_v15, %v5790_v41 }
 0x26d   : > { %7768 = vst [vmem:[#allocation11_spill] sm:$0xff] %v6022_v8  ;;  %7772 = vst [vmem:[#allocation13_spill] sm:$0xff] %v6034_v58  ;;  %v6038_v40 = vadd.f32 %v5787_v29, %v7773_v51  ;;  %v1740_v42 = vrot.slane %v5822_v3, %v5793_v18  ;;  %v6054_v51 = vadd.f32 %v5787_v29, %v1572_v43  ;;  %v7779_v58 = vld [vmem:[#allocation20_spill] sm:$0xff] }
 0x26e   : > { %7771 = vst [vmem:[#allocation21_spill] sm:$0xff] %v6030_v57  ;;  %7775 = vst [vmem:[#allocation50_spill] sm:$0xff] %v6041_v52  ;;  %v7776_v57 = vld [vmem:[#allocation18_spill] sm:$0xff]  ;;  %v6058_v46 = vadd.f32 %v5787_v29, %v7779_v58  ;;  %v1747_v56 = vrot.slane %v5826_v54, %v5796_v35  ;;  %v1578_v52 = vpop.xlane.xlu1 %1577  ;;  %v1735_v15 = vsel %vm1734_vm2, %v1733_v38, %v1728_v53 }
 0x26f   : > { %7774 = vst [vmem:[#allocation15_spill] sm:$0xff] %v6038_v40  ;;  %v6051_v55 = vadd.f32 %v5787_v29, %v7776_v57  ;;  %7778 = vst [vmem:[#allocation51_spill] sm:$0xff] %v6054_v51  ;;  %v1781_v3 = vrot.slane %v5846_v2, %v5785_v28  ;;  %v1785_v57 = vrot.slane %v5850_v23, %v5790_v41 }
 0x270   : > { %v1790_v43 = vrot.slane %v5854_v59, %v5793_v18  ;;  %v1742_v51 = vsel %vm1741_vm3, %v1740_v42, %v1735_v15  ;;  %v1754_v58 = vrot.slane %v5830_v21, %v5799_v24  ;;  %v1761_v54 = vrot.slane %v5834_v9, %v5804_v7 }
 0x271   : > { %7777 = vst [vmem:[#allocation18_spill] sm:$0xff] %v6051_v55  ;;  %v1768_v53 = vrot.slane %v5838_v4, %v5807_v6  ;;  %v1749_v38 = vsel %vm1748_vm4, %v1747_v56, %v1742_v51  ;;  %v1786_v2 = vsel %vm1734_vm2, %v1785_v57, %v1781_v3  ;;  %v1795_v23 = vrot.slane %v5858_v61, %v5796_v35 }
 0x272   : > { %v1800_v59 = vrot.slane %v5862_v16, %v5799_v24  ;;  %v1756_v15 = vsel %vm1755_vm5, %v1754_v58, %v1749_v38  ;;  %v1791_v42 = vsel %vm1741_vm3, %v1790_v43, %v1786_v2  ;;  %v1820_v9 = vrot.slane %v5878_v62, %v5785_v28  ;;  %v1584_v62 = vpop.xlane.xlu1 %1583 }
 0x273   : > { %v1824_v4 = vrot.slane %v5882_v20, %v5790_v41  ;;  %v1763_v56 = vsel %vm1762_vm6, %v1761_v54, %v1756_v15  ;;  %v1796_v3 = vsel %vm1748_vm4, %v1795_v23, %v1791_v42  ;;  %v1805_v51 = vrot.slane %v5866_v50, %v5804_v7  ;;  %v7780_v54 = vld [vmem:[#allocation22_spill] sm:$0xff] }
 0x274   : > { %v1829_v57 = vrot.slane %v5886_v47, %v5793_v18  ;;  %v6095_v58 = vadd.f32 %v5787_v29, %v1578_v52  ;;  %v1801_v2 = vsel %vm1755_vm5, %v1800_v59, %v1796_v3  ;;  %v1834_v38 = vrot.slane %v5890_v44, %v5796_v35 }
 0x275   : > { %v1825_v43 = vsel %vm1734_vm2, %v1824_v4, %v1820_v9  ;;  %v6103_v23 = vadd.f32 %v5787_v29, %v7780_v54  ;;  %v1770_v15 = vsel %vm1769_vm7, %v1768_v53, %v1763_v56  ;;  %v1806_v42 = vsel %vm1762_vm6, %v1805_v51, %v1801_v2 }
 0x276   : > { %v1830_v47 = vsel %vm1741_vm3, %v1829_v57, %v1825_v43  ;;  %v6109_v52 = vadd.f32 %v5787_v29, %v1584_v62  ;;  %v1775_v9 = vrot.slane %v5842_v22, %v5810_v12  ;;  %v1810_v4 = vrot.slane %v5870_v11, %v5807_v6 }
 0x277   : > { %v1835_v59 = vsel %vm1748_vm4, %v1834_v38, %v1830_v47  ;;  %v1815_v3 = vrot.slane %v5874_v26, %v5810_v12  ;;  %v1839_v53 = vrot.slane %v5894_v10, %v5799_v24  ;;  %v1859_v56 = vrot.slane %v5910_v5, %v5785_v28 }
 0x278   : > { %v1863_v29 = vrot.slane %v5914_v36, %v5790_v41  ;;  %v6125_v62 = vsel %vm1776_vm8, %v1775_v9, %v1770_v15  ;;  %v1811_v51 = vsel %vm1769_vm7, %v1810_v4, %v1806_v42  ;;  %v1844_v47 = vrot.slane %v5898_v32, %v5804_v7 }
 0x279   : > { %v1868_v57 = vrot.slane %v5918_v33, %v5793_v18  ;;  %v1840_v2 = vsel %vm1755_vm5, %v1839_v53, %v1835_v59  ;;  %v1849_v43 = vrot.slane %v5902_v63, %v5807_v6  ;;  %v1873_v54 = vrot.slane %v5922_v17, %v5796_v35 }
 0x27a   : > { %v1864_v38 = vsel %vm1734_vm2, %v1863_v29, %v1859_v56  ;;  %v1854_v15 = vrot.slane %v5906_v48, %v5810_v12  ;;  %v1878_v9 = vrot.slane %v5926_v45, %v5799_v24  ;;  %v1898_v4 = vrot.slane %v5942_v49, %v5785_v28 }
 0x27b   : > { %v1869_v42 = vsel %vm1741_vm3, %v1868_v57, %v1864_v38  ;;  %v1883_v53 = vrot.slane %v5930_v39, %v5804_v7  ;;  %v1902_v56 = vrot.slane %v5946_v34, %v5790_v41  ;;  %v1907_v29 = vrot.slane %v5950_v19, %v5793_v18 }
 0x27c   : > { %v1874_v59 = vsel %vm1748_vm4, %v1873_v54, %v1869_v42  ;;  %v6153_v33 = vsel %vm1776_vm8, %v1815_v3, %v1811_v51  ;;  %v1845_v57 = vsel %vm1762_vm6, %v1844_v47, %v1840_v2  ;;  %v1888_v49 = vrot.slane %v5934_v31, %v5807_v6 }
 0x27d   : > { %v1879_v38 = vsel %vm1755_vm5, %v1878_v9, %v1874_v59  ;;  %v1903_v42 = vsel %vm1734_vm2, %v1902_v56, %v1898_v4  ;;  %v1912_v45 = vrot.slane %v5954_v25, %v5796_v35  ;;  %v1937_v19 = vrot.slane %v5974_v14, %v5785_v28  ;;  %v7783_v14 = vld [vmem:[#allocation10_spill] sm:$0xff] }
 0x27e   : > { %v1884_v54 = vsel %vm1762_vm6, %v1883_v53, %v1879_v38  ;;  %v1908_v3 = vsel %vm1741_vm3, %v1907_v29, %v1903_v42  ;;  %v1917_v51 = vrot.slane %v5958_v60, %v5799_v24  ;;  %v1941_v47 = vrot.slane %v5978_v37, %v5790_v41  ;;  %v7781_v42 = vld [vmem:[#allocation46_spill] sm:$0xff] }
 0x27f   : > { %v1946_v2 = vrot.slane %v5982_v27, %v5793_v18  ;;  %v1850_v9 = vsel %vm1769_vm7, %v1849_v43, %v1845_v57  ;;  %v1893_v4 = vrot.slane %v5938_v13, %v5810_v12  ;;  %v1913_v59 = vsel %vm1748_vm4, %v1912_v45, %v1908_v3  ;;  %v7782_v45 = vld [vmem:[#allocation47_spill] sm:$0xff] }
 0x280   : > { %v1922_v53 = vrot.slane %v5962_v1, %v5804_v7  ;;  %v1889_v56 = vsel %vm1769_vm7, %v1888_v49, %v1884_v54  ;;  %v1918_v29 = vsel %vm1755_vm5, %v1917_v51, %v1913_v59  ;;  %v1942_v38 = vsel %vm1734_vm2, %v1941_v47, %v1937_v19  ;;  %v7784_v49 = vld [vmem:[#allocation42_spill] sm:$0xff]  ;;  %v7785_v47 = vld [vmem:[#allocation9_spill] sm:$0xff] }
 0x281   : > { %v1951_v27 = vrot.slane %v7781_v42, %v5796_v35  ;;  %v1947_v57 = vsel %vm1741_vm3, %v1946_v2, %v1942_v38  ;;  %v1956_v3 = vrot.slane %v7782_v45, %v5799_v24  ;;  %v1976_v60 = vrot.slane %v7783_v14, %v5785_v28  ;;  %v7787_v14 = vld [vmem:[#allocation48_spill] sm:$0xff] }
 0x282   : > { %v1923_v43 = vsel %vm1762_vm6, %v1922_v53, %v1918_v29  ;;  %v1927_v54 = vrot.slane %v7784_v49, %v5807_v6  ;;  %v1980_v51 = vrot.slane %v6010_v30, %v5790_v41  ;;  %v1985_v59 = vrot.slane %v7785_v47, %v5793_v18  ;;  %v7786_v53 = vld [vmem:[#allocation43_spill] sm:$0xff] }
 0x283   : > { %v1952_v19 = vsel %vm1748_vm4, %v1951_v27, %v1947_v57  ;;  %v1855_v2 = vsel %vm1776_vm8, %v1854_v15, %v1850_v9  ;;  %v1932_v29 = vrot.slane %v7786_v53, %v5810_v12  ;;  %v1961_v45 = vrot.slane %v7787_v14, %v5804_v7  ;;  %v7788_v47 = vld [vmem:[#allocation19_spill] sm:$0xff] }
 0x284   : > { %v1957_v38 = vsel %vm1755_vm5, %v1956_v3, %v1952_v19  ;;  %v1894_v27 = vsel %vm1776_vm8, %v1893_v4, %v1889_v56  ;;  %v1928_v57 = vsel %vm1769_vm7, %v1927_v54, %v1923_v43  ;;  %v1981_v49 = vsel %vm1734_vm2, %v1980_v51, %v1976_v60  ;;  %v7789_v60 = vld [vmem:[#allocation50_spill] sm:$0xff] }
 0x285   : > { %v1990_v30 = vrot.slane %v7788_v47, %v5796_v35  ;;  %v1962_v15 = vsel %vm1762_vm6, %v1961_v45, %v1957_v38  ;;  %v1986_v9 = vsel %vm1741_vm3, %v1985_v59, %v1981_v49  ;;  %v1995_v3 = vrot.slane %v6022_v8, %v5799_v24  ;;  %v7790_v49 = vld [vmem:[#allocation49_spill] sm:$0xff]  ;;  %v7791_v59 = vld [vmem:[#allocation14_spill] sm:$0xff]  ;;  %v7793_v8 = vld [vmem:[#allocation51_spill] sm:$0xff] }
 0x286   : > { %v2015_v19 = vrot.slane %v6038_v40, %v5785_v28  ;;  %v2000_v56 = vrot.slane %v6026_v0, %v5804_v7  ;;  %v2019_v43 = vrot.slane %v7789_v60, %v5790_v41  ;;  %v2024_v54 = vrot.slane %v6051_v55, %v5793_v18 }
 0x287   : > { %v1991_v4 = vsel %vm1748_vm4, %v1990_v30, %v1986_v9  ;;  %v1933_v45 = vsel %vm1776_vm8, %v1932_v29, %v1928_v57  ;;  %v1966_v51 = vrot.slane %v7790_v49, %v5807_v6  ;;  %v1971_v38 = vrot.slane %v7791_v59, %v5810_v12  ;;  %v7792_v9 = vld [vmem:[#allocation21_spill] sm:$0xff] }
 0x288   : > { %v1996_v28 = vsel %vm1755_vm5, %v1995_v3, %v1991_v4  ;;  %v2005_v40 = vrot.slane %v7792_v9, %v5807_v6  ;;  %v2020_v41 = vsel %vm1734_vm2, %v2019_v43, %v2015_v19  ;;  %v2029_v18 = vrot.slane %v7793_v8, %v5796_v35 }
 0x289   : > { %v2001_v30 = vsel %vm1762_vm6, %v2000_v56, %v1996_v28  ;;  %v1967_v29 = vsel %vm1769_vm7, %v1966_v51, %v1962_v15  ;;  %v2025_v57 = vsel %vm1741_vm3, %v2024_v54, %v2020_v41  ;;  %v2034_v55 = vrot.slane %v6058_v46, %v5799_v24  ;;  %v7794_v15 = vld [vmem:[#allocation13_spill] sm:$0xff] }
 0x28a   : > { %v2052_v3 = vsel %vm2051_vm9, %v6153_v33, %v6125_v62  ;;  %v2006_v28 = vsel %vm1769_vm7, %v2005_v40, %v2001_v30  ;;  %v2030_v4 = vsel %vm1748_vm4, %v2029_v18, %v2025_v57  ;;  %v2039_v19 = vrot.slane %v6095_v58, %v5804_v7 }
 0x28b   : > { %v2054_v56 = vsel %vm2053_vm10, %v1855_v2, %v2052_v3  ;;  %v2010_v43 = vrot.slane %v7794_v15, %v5810_v12  ;;  %v2035_v41 = vsel %vm1755_vm5, %v2034_v55, %v2030_v4  ;;  %v2044_v54 = vrot.slane %v6103_v23, %v5807_v6  ;;  %v7795_v3 = vld [vmem:[#allocation12_spill] sm:$0xff] }
 0x28c   : > { %v2056_v51 = vsel %vm2055_vm11, %v1894_v27, %v2054_v56  ;;  %v1972_v33 = vsel %vm1776_vm8, %v1971_v38, %v1967_v29  ;;  %v2040_v40 = vsel %vm1762_vm6, %v2039_v19, %v2035_v41  ;;  %v2049_v18 = vrot.slane %v6109_v52, %v5810_v12  ;;  %v7797_v41 = vld [vmem:[#allocation26_spill] sm:$0xff] }
 0x28d   : > { %v2058_v62 = vsel %vm2057_vm12, %v1933_v45, %v2056_v51  ;;  %v2011_v2 = vsel %vm1776_vm8, %v2010_v43, %v2006_v28  ;;  %v2045_v30 = vsel %vm1769_vm7, %v2044_v54, %v2040_v40  ;;  %v7618_v4 = vsub.s32 1, %v7795_v3  ;;  %v7796_v45 = vld [vmem:[#allocation17_spill] sm:$0xff]  ;;  %v7799_v40 = vld [vmem:[#allocation27_spill] sm:$0xff] }
 0x28e   : > { %v2060_v55 = vsel %vm2059_vm13, %v1972_v33, %v2058_v62  ;;  %v2050_v57 = vsel %vm1776_vm8, %v2049_v18, %v2045_v30  ;;  %v7798_v51 = vld [vmem:[#allocation33_spill] sm:$0xff] }
 0x28f   : > { %v2062_v27 = vsel %vm2061_vm14, %v2011_v2, %v2060_v55 }
 0x290   : > { %v2064_v38 = vsel %vm2063_vm15, %v2050_v57, %v2062_v27  ;;  %v7800_v27 = vld [vmem:[#allocation28_spill] sm:$0xff] }
 0x291   : > { %v2067_v29 = vsel %vm2066_vm1, %v2064_v38, -inf }
 0x292   : > { %2068 = vmax.xlane.f32.xlu1 %v2067_v29 }
 0x31f   : > { %v6263_v19 = vpop.xlane.xlu1 %2068 }
 0x320   : > { %v2074_v28 = vrot.slane %v6263_v19, %v7796_v45  ;;  %v6270_v56 = vrot.slane %v6263_v19, %v7618_v4 }
 0x322   : > { %v2118_v43 = vsub.f32 %v5842_v22, %v2074_v28  ;;  %v2111_v54 = vsub.f32 %v7797_v41, %v2074_v28  ;;  %v2120_v33 = vsub.f32 %v7798_v51, %v6270_v56  ;;  %v2112_v18 = vsub.f32 %v7799_v40, %v2074_v28 }
 0x323   : > { %v2122_v55 = vsub.f32 %v5858_v61, %v6270_v56  ;;  %v2113_v38 = vsub.f32 %v7800_v27, %v2074_v28  ;;  %v7616_v22 = vsub.s32 2, %v7795_v3  ;;  %v2124_v41 = vsub.f32 %v5866_v50, %v6270_v56 }
 0x324   : > { %v2189_v62 = vmul.f32 1.442695, %v2118_v43  ;;  %v2175_v2 = vmul.f32 1.442695, %v2111_v54  ;;  %v2193_v30 = vmul.f32 1.442695, %v2120_v33  ;;  %v2126_v40 = vsub.f32 %v5874_v26, %v6270_v56 }
 0x325   : > { %v2177_v57 = vmul.f32 1.442695, %v2112_v18  ;;  %v2197_v29 = vmul.f32 1.442695, %v2122_v55  ;;  %v2179_v51 = vmul.f32 1.442695, %v2113_v38  ;;  %v6287_v33 = vrot.slane %v6263_v19, %v7616_v22 }
 0x326   : > { %4359 = vpow2.f32 %v2189_v62  ;;  %v7801_v43 = vld [vmem:[#allocation29_spill] sm:$0xff]  ;;  %v2201_v61 = vmul.f32 1.442695, %v2124_v41  ;;  %v2115_v62 = vsub.f32 %v5830_v21, %v2074_v28  ;;  %v7802_v26 = vld [vmem:[#allocation30_spill] sm:$0xff] }
 0x327   : > { %4361 = vpow2.f32 %v2175_v2  ;;  %v2114_v54 = vsub.f32 %v7801_v43, %v2074_v28  ;;  %v2128_v55 = vsub.f32 %v5882_v20, %v6287_v33  ;;  %v2116_v27 = vsub.f32 %v7802_v26, %v2074_v28  ;;  %v7803_v20 = vld [vmem:[#allocation31_spill] sm:$0xff] }
 0x328   : > { %4363 = vpow2.f32 %v2193_v30  ;;  %v2205_v30 = vmul.f32 1.442695, %v2126_v40  ;;  %v2130_v41 = vsub.f32 %v5890_v44, %v6287_v33  ;;  %v2117_v43 = vsub.f32 %v7803_v20, %v2074_v28 }
 0x329   : > { %4365 = vpow2.f32 %v2177_v57  ;;  %v2181_v18 = vmul.f32 1.442695, %v2114_v54  ;;  %v2183_v57 = vmul.f32 1.442695, %v2115_v62  ;;  %v7615_v40 = vsub.s32 3, %v7795_v3 }
 0x32a   : > { %4367 = vpow2.f32 %v2197_v29  ;;  %v2209_v29 = vmul.f32 1.442695, %v2128_v55  ;;  %v2132_v62 = vsub.f32 %v5898_v32, %v6287_v33  ;;  %v2187_v44 = vmul.f32 1.442695, %v2117_v43 }
 0x32b   : > { %4369 = vpow2.f32 %v2179_v51  ;;  %v2185_v51 = vmul.f32 1.442695, %v2116_v27  ;;  %v6329_v26 = vrot.slane %v6263_v19, %v7615_v40  ;;  %v2134_v27 = vsub.f32 %v5906_v48, %v6287_v33 }
 0x32c   : > { %4371 = vpow2.f32 %v2201_v61  ;;  %v2217_v32 = vmul.f32 1.442695, %v2132_v62  ;;  %v2123_v62 = vsub.f32 %v5862_v16, %v6270_v56 }
 0x32d   : > { %4373 = vpow2.f32 %v2181_v18  ;;  %v2213_v18 = vmul.f32 1.442695, %v2130_v41  ;;  %v7807_v41 = vld [vmem:[#allocation34_spill] sm:$0xff] }
 0x32e   : > { %4375 = vpow2.f32 %v2205_v30  ;;  %v7805_v30 = vld [vmem:[#allocation32_spill] sm:$0xff] }
 0x32f   : > { %4377 = vpow2.f32 %v2183_v57  ;;  %v2119_v28 = vsub.f32 %v7805_v30, %v6270_v56  ;;  %v2221_v30 = vmul.f32 1.442695, %v2134_v27  ;;  %v2125_v27 = vsub.f32 %v5870_v11, %v6270_v56 }
 0x330   : > { %v6292_v2 = vpop.eup %4359  ;;  %4379 = vpow2.f32 %v2209_v29 }
 0x331   : > { %v6294_v50 = vpop.eup %4361  ;;  %2389 = vperm.xlu0 %4357, %v6292_v2   ;;  %4381 = vpow2.f32 %v2185_v51  ;;  %v2191_v29 = vmul.f32 1.442695, %v2119_v28  ;;  %v2121_v51 = vsub.f32 %v7807_v41, %v6270_v56 }
 0x332   : > { %2368 = vperm.xlu1 %4358, %v6294_v50   ;;  %v6301_v38 = vpop.eup %4363  ;;  %4383 = vpow2.f32 %v2213_v18  ;;  %v2136_v18 = vsub.f32 %v5914_v36, %v6329_v26  ;;  %v2199_v36 = vmul.f32 1.442695, %v2123_v62 }
 0x333   : > { %v6303_v21 = vpop.eup %4365  ;;  %4385 = vpow2.f32 %v2187_v44  ;;  %v2195_v48 = vmul.f32 1.442695, %v2121_v51  ;;  %v7617_v51 = vsub.s32 4, %v7795_v3 }
 0x334   : > { %v6310_v54 = vpop.eup %4367  ;;  %4387 = vpow2.f32 %v2217_v32  ;;  %v2225_v41 = vmul.f32 1.442695, %v2136_v18  ;;  %v2138_v32 = vsub.f32 %v5922_v17, %v6329_v26  ;;  %v2140_v17 = vsub.f32 %v5930_v39, %v6329_v26 }
 0x335   : > { %2395 = vperm.xlu0 %4357, %v6301_v38   ;;  %7804 = vst [vmem:[#allocation20_spill] sm:$0xff] %v6310_v54  ;;  %v6312_v61 = vpop.eup %4369  ;;  %4389 = vpow2.f32 %v2191_v29  ;;  %v2203_v18 = vmul.f32 1.442695, %v2125_v27  ;;  %v6375_v40 = vrot.slane %v6263_v19, %v7617_v51 }
 0x336   : > { %2371 = vperm.xlu1 %4358, %v6303_v21   ;;  %v6321_v55 = vpop.eup %4371  ;;  %4391 = vpow2.f32 %v2221_v30  ;;  %v2229_v30 = vmul.f32 1.442695, %v2138_v32  ;;  %v2233_v39 = vmul.f32 1.442695, %v2140_v17  ;;  %v2131_v17 = vsub.f32 %v5894_v10, %v6287_v33 }
 0x337   : > { %7806 = vst [vmem:[#allocation22_spill] sm:$0xff] %v6321_v55  ;;  %v6323_v57 = vpop.eup %4373  ;;  %4393 = vpow2.f32 %v2195_v48  ;;  %v7811_v48 = vld [vmem:[#allocation35_spill] sm:$0xff] }
 0x338   : > { %v6336_v20 = vpop.eup %4375  ;;  %4395 = vpow2.f32 %v2225_v41  ;;  %v2127_v11 = vsub.f32 %v7811_v48, %v6287_v33  ;;  %v2142_v41 = vsub.f32 %v5938_v13, %v6329_v26 }
 0x339   : > { %2401 = vperm.xlu0 %4357, %v6310_v54   ;;  %7808 = vst [vmem:[#allocation46_spill] sm:$0xff] %v6336_v20  ;;  %v6338_v43 = vpop.eup %4377  ;;  %4397 = vpow2.f32 %v2199_v36  ;;  %v7814_v36 = vld [vmem:[#allocation36_spill] sm:$0xff] }
 0x33a   : > { %2374 = vperm.xlu1 %4358, %v6312_v61   ;;  %v6346_v44 = vpop.eup %4379  ;;  %4399 = vpow2.f32 %v2229_v30  ;;  %v2207_v32 = vmul.f32 1.442695, %v2127_v11  ;;  %v2129_v27 = vsub.f32 %v7814_v36, %v6287_v33  ;;  %v2237_v51 = vmul.f32 1.442695, %v2142_v41 }
 0x33b   : > { %7809 = vst [vmem:[#allocation43_spill] sm:$0xff] %v6346_v44  ;;  %v6348_v28 = vpop.eup %4381  ;;  %4401 = vpow2.f32 %v2203_v18  ;;  %v2144_v30 = vsub.f32 %v5946_v34, %v6375_v40  ;;  %v2215_v34 = vmul.f32 1.442695, %v2131_v17  ;;  %v2133_v41 = vsub.f32 %v5902_v63, %v6287_v33 }
 0x33c   : > { %v6356_v29 = vpop.eup %4383  ;;  %4403 = vpow2.f32 %v2233_v39  ;;  %v2211_v13 = vmul.f32 1.442695, %v2129_v27  ;;  %v2146_v39 = vsub.f32 %v5954_v25, %v6375_v40  ;;  %v7619_v27 = vsub.s32 5, %v7795_v3 }
 0x33d   : > { %2407 = vperm.xlu0 %4357, %v6321_v55   ;;  %7810 = vst [vmem:[#allocation48_spill] sm:$0xff] %v6356_v29  ;;  %v6358_v16 = vpop.eup %4385  ;;  %4405 = vpow2.f32 %v2207_v32  ;;  %v2241_v36 = vmul.f32 1.442695, %v2144_v30  ;;  %v2148_v25 = vsub.f32 %v5962_v1, %v6375_v40  ;;  %v2219_v30 = vmul.f32 1.442695, %v2133_v41 }
 0x33e   : > { %2377 = vperm.xlu1 %4358, %v6323_v57   ;;  %v6367_v56 = vpop.eup %4387  ;;  %4407 = vpow2.f32 %v2237_v51  ;;  %v2245_v51 = vmul.f32 1.442695, %v2146_v39  ;;  %v2135_v63 = vsub.f32 %v5910_v5, %v6329_v26  ;;  %v6421_v17 = vrot.slane %v6263_v19, %v7619_v27  ;;  %v7821_v39 = vld [vmem:[#allocation37_spill] sm:$0xff] }
 0x33f   : > { %7812 = vst [vmem:[#allocation19_spill] sm:$0xff] %v6367_v56  ;;  %v6369_v62 = vpop.eup %4389  ;;  %4409 = vpow2.f32 %v2211_v13  ;;  %v2249_v1 = vmul.f32 1.442695, %v2148_v25  ;;  %v7823_v25 = vld [vmem:[#allocation38_spill] sm:$0xff] }
 0x340   : > { %7813 = vst [vmem:[#allocation50_spill] sm:$0xff] %v6369_v62  ;;  %v6382_v48 = vpop.eup %4391  ;;  %4411 = vpow2.f32 %v2241_v36  ;;  %v2150_v36 = vsub.f32 %v7786_v53, %v6375_v40  ;;  %v2223_v5 = vmul.f32 1.442695, %v2135_v63 }
 0x341   : > { %2413 = vperm.xlu0 %4357, %v6336_v20   ;;  %7815 = vst [vmem:[#allocation49_spill] sm:$0xff] %v6382_v48  ;;  %v6384_v22 = vpop.eup %4393  ;;  %4413 = vpow2.f32 %v2215_v34  ;;  %v2137_v34 = vsub.f32 %v7821_v39, %v6329_v26 }
 0x342   : > { %2380 = vperm.xlu1 %4358, %v6338_v43   ;;  %7816 = vst [vmem:[#allocation14_spill] sm:$0xff] %v6384_v22  ;;  %v6392_v18 = vpop.eup %4395  ;;  %4415 = vpow2.f32 %v2245_v51  ;;  %v2253_v27 = vmul.f32 1.442695, %v2150_v36  ;;  %v2152_v51 = vsub.f32 %v5978_v37, %v6421_v17  ;;  %v2141_v36 = vsub.f32 %v5934_v31, %v6329_v26 }
 0x343   : > { %7817 = vst [vmem:[#allocation21_spill] sm:$0xff] %v6392_v18  ;;  %v6394_v11 = vpop.eup %4397  ;;  %4417 = vpow2.f32 %v2219_v30  ;;  %v2227_v53 = vmul.f32 1.442695, %v2137_v34  ;;  %v2139_v30 = vsub.f32 %v7823_v25, %v6329_v26  ;;  %v7623_v25 = vsub.s32 6, %v7795_v3 }
 0x344   : > { %7818 = vst [vmem:[#allocation51_spill] sm:$0xff] %v6394_v11  ;;  %v6402_v32 = vpop.eup %4399  ;;  %4419 = vpow2.f32 %v2249_v1  ;;  %v2154_v1 = vsub.f32 %v7781_v42, %v6421_v17  ;;  %v2156_v42 = vsub.f32 %v7787_v14, %v6421_v17 }
 0x345   : > { %2419 = vperm.xlu0 %4357, %v6346_v44   ;;  %7819 = vst [vmem:[#allocation13_spill] sm:$0xff] %v6402_v32  ;;  %v6404_v10 = vpop.eup %4401  ;;  %4421 = vpow2.f32 %v2223_v5  ;;  %v2231_v37 = vmul.f32 1.442695, %v2139_v30  ;;  %v7871_v44 = vld [vmem:[#allocation24_spill] sm:$0xff] }
 0x346   : > { %2383 = vperm.xlu1 %4358, %v6348_v28   ;;  %v6413_v33 = vpop.eup %4403  ;;  %4423 = vpow2.f32 %v2253_v27  ;;  %v2261_v27 = vmul.f32 1.442695, %v2154_v1  ;;  %v2265_v14 = vmul.f32 1.442695, %v2156_v42 }
 0x347   : > { %7820 = vst [vmem:[#allocation12_spill] sm:$0xff] %v6413_v33  ;;  %v6415_v13 = vpop.eup %4405  ;;  %4425 = vpow2.f32 %v2227_v53  ;;  %v7826_v53 = vld [vmem:[#allocation39_spill] sm:$0xff] }
 0x348   : > { %v6428_v41 = vpop.eup %4407  ;;  %v2143_v31 = vsub.f32 %v7826_v53, %v6375_v40 }
 0x349   : > { %2425 = vperm.xlu0 %4357, %v6356_v29   ;;  %7822 = vst [vmem:[#allocation17_spill] sm:$0xff] %v6428_v41  ;;  %v6430_v4 = vpop.eup %4409 }
 0x34a   : > { %2386 = vperm.xlu1 %4358, %v6358_v16   ;;  %v6438_v63 = vpop.eup %4411  ;;  %v2239_v1 = vmul.f32 1.442695, %v2143_v31 }
 0x34b   : > { %7824 = vst [vmem:[#allocation26_spill] sm:$0xff] %v6438_v63  ;;  %v6440_v39 = vpop.eup %4413 }
 0x34c   : > { %v6448_v5 = vpop.eup %4415 }
 0x34d   : > { %2431 = vperm.xlu0 %4357, %v6367_v56   ;;  %7825 = vst [vmem:[#allocation33_spill] sm:$0xff] %v6448_v5  ;;  %v6450_v34 = vpop.eup %4417 }
 0x34e   : > { %2392 = vperm.xlu1 %4358, %v6369_v62   ;;  %v6459_v26 = vpop.eup %4419 }
 0x34f   : > { %7827 = vst [vmem:[#allocation27_spill] sm:$0xff] %v6459_v26  ;;  %v6461_v30 = vpop.eup %4421 }
 0x350   : > { %v6474_v53 = vpop.eup %4423 }
 0x351   : > { %2437 = vperm.xlu0 %4357, %v6382_v48   ;;  %7829 = vst [vmem:[#allocation28_spill] sm:$0xff] %v6474_v53 }
 0x352   : > { %2398 = vperm.xlu1 %4358, %v6384_v22  }
 0x355   : > { %2443 = vperm.xlu0 %4357, %v6392_v18  }
 0x356   : > { %2404 = vperm.xlu1 %4358, %v6394_v11  }
 0x359   : > { %2449 = vperm.xlu0 %4357, %v6402_v32  }
 0x35a   : > { %2410 = vperm.xlu1 %4358, %v6404_v10  }
 0x35d   : > { %2455 = vperm.xlu0 %4357, %v6413_v33  }
 0x35e   : > { %2416 = vperm.xlu1 %4358, %v6415_v13  }
 0x361   : > { %2461 = vperm.xlu0 %4357, %v6428_v41   ;;  %v2257_v41 = vmul.f32 1.442695, %v2152_v51  ;;  %v2235_v51 = vmul.f32 1.442695, %v2141_v36 }
 0x362   : > { %2422 = vperm.xlu1 %4358, %v6430_v4  }
 0x363   : > { %4427 = vpow2.f32 %v2257_v41  ;;  %v2158_v41 = vsub.f32 %v7791_v59, %v6421_v17 }
 0x364   : > { %4429 = vpow2.f32 %v2231_v37  ;;  %v7828_v37 = vld [vmem:[#allocation40_spill] sm:$0xff] }
 0x365   : > { %2467 = vperm.xlu0 %4357, %v6438_v63   ;;  %4431 = vpow2.f32 %v2261_v27  ;;  %v2145_v36 = vsub.f32 %v7828_v37, %v6375_v40  ;;  %v7830_v27 = vld [vmem:[#allocation16_spill] sm:$0xff] }
 0x366   : > { %2428 = vperm.xlu1 %4358, %v6440_v39   ;;  %4433 = vpow2.f32 %v2235_v51  ;;  %v7831_v51 = vld [vmem:[#allocation41_spill] sm:$0xff] }
 0x367   : > { %4435 = vpow2.f32 %v2265_v14  ;;  %v2243_v59 = vmul.f32 1.442695, %v2145_v36  ;;  %v2147_v31 = vsub.f32 %v7831_v51, %v6375_v40 }
 0x368   : > { %4437 = vpow2.f32 %v2239_v1  ;;  %v7833_v1 = vld [vmem:[#allocation42_spill] sm:$0xff] }
 0x369   : > { %2473 = vperm.xlu0 %4357, %v6448_v5   ;;  %v6467_v5 = vrot.slane %v6263_v19, %v7623_v25  ;;  %v2269_v25 = vmul.f32 1.442695, %v2158_v41  ;;  %v2247_v41 = vmul.f32 1.442695, %v2147_v31  ;;  %v2149_v36 = vsub.f32 %v7833_v1, %v6375_v40 }
 0x36a   : > { %2434 = vperm.xlu1 %4358, %v6450_v34  }
 0x36b   : > { %v2160_v42 = vsub.f32 %v7830_v27, %v6467_v5  ;;  %4439 = vpow2.f32 %v2269_v25  ;;  %v2162_v14 = vsub.f32 %v7788_v47, %v6467_v5  ;;  %v2164_v47 = vsub.f32 %v6026_v0, %v6467_v5 }
 0x36c   : > { %4441 = vpow2.f32 %v2243_v59  ;;  %v7836_v59 = vld [vmem:[#allocation44_spill] sm:$0xff] }
 0x36d   : > { %2479 = vperm.xlu0 %4357, %v6459_v26   ;;  %v6476_v26 = vpop.eup %4425  ;;  %v2277_v25 = vmul.f32 1.442695, %v2162_v14  ;;  %v2151_v40 = vsub.f32 %v7836_v59, %v6421_v17  ;;  %v2281_v0 = vmul.f32 1.442695, %v2164_v47  ;;  %v7842_v47 = vld [vmem:[#allocation47_spill] sm:$0xff] }
 0x36e   : > { %2440 = vperm.xlu1 %4358, %v6461_v30   ;;  %v6484_v63 = vpop.eup %4427 }
 0x36f   : > { %7832 = vst [vmem:[#allocation29_spill] sm:$0xff] %v6484_v63  ;;  %v6486_v37 = vpop.eup %4429  ;;  %v2255_v14 = vmul.f32 1.442695, %v2151_v40 }
 0x370   : > { %v6494_v27 = vpop.eup %4431 }
 0x371   : > { %2485 = vperm.xlu0 %4357, %v6474_v53   ;;  %v2273_v53 = vmul.f32 1.442695, %v2160_v42  ;;  %7834 = vst [vmem:[#allocation30_spill] sm:$0xff] %v6494_v27  ;;  %v6496_v51 = vpop.eup %4433  ;;  %v2251_v42 = vmul.f32 1.442695, %v2149_v36 }
 0x372   : > { %2446 = vperm.xlu1 %4358, %v6476_v26   ;;  %7835 = vst [vmem:[#allocation31_spill] sm:$0xff] %v6496_v51  ;;  %v6505_v31 = vpop.eup %4435 }
 0x373   : > { %4443 = vpow2.f32 %v2273_v53  ;;  %7837 = vst [vmem:[#allocation32_spill] sm:$0xff] %v6505_v31  ;;  %v6507_v1 = vpop.eup %4437  ;;  %v2166_v53 = vsub.f32 %v7794_v15, %v6467_v5 }
 0x374   : > { %4445 = vpow2.f32 %v2247_v41  ;;  %7838 = vst [vmem:[#allocation34_spill] sm:$0xff] %v6507_v1  ;;  %v7839_v41 = vld [vmem:[#allocation45_spill] sm:$0xff] }
 0x375   : > { %2491 = vperm.xlu0 %4357, %v6484_v63   ;;  %v7629_v63 = vsub.s32 7, %v7795_v3  ;;  %4447 = vpow2.f32 %v2277_v25  ;;  %v2153_v36 = vsub.f32 %v7839_v41, %v6421_v17  ;;  %v6520_v59 = vpop.eup %4439 }
 0x376   : > { %2452 = vperm.xlu1 %4358, %v6486_v37   ;;  %4449 = vpow2.f32 %v2251_v42  ;;  %7840 = vst [vmem:[#allocation35_spill] sm:$0xff] %v6520_v59  ;;  %v2155_v42 = vsub.f32 %v7842_v47, %v6421_v17 }
 0x377   : > { %v6513_v33 = vrot.slane %v6263_v19, %v7629_v63  ;;  %4451 = vpow2.f32 %v2281_v0  ;;  %v2285_v19 = vmul.f32 1.442695, %v2166_v53  ;;  %v2259_v15 = vmul.f32 1.442695, %v2153_v36 }
 0x378   : > { %4453 = vpow2.f32 %v2255_v14  ;;  %v2157_v53 = vsub.f32 %v7790_v49, %v6421_v17 }
 0x379   : > { %2497 = vperm.xlu0 %4357, %v6494_v27   ;;  %v2168_v25 = vsub.f32 %v7789_v60, %v6513_v33  ;;  %4455 = vpow2.f32 %v2285_v19  ;;  %v2170_v0 = vsub.f32 %v7793_v8, %v6513_v33  ;;  %v2263_v60 = vmul.f32 1.442695, %v2155_v42 }
 0x37a   : > { %2458 = vperm.xlu1 %4358, %v6496_v51   ;;  %4457 = vpow2.f32 %v2259_v15  ;;  %v2172_v19 = vsub.f32 %v6095_v58, %v6513_v33  ;;  %v2267_v8 = vmul.f32 1.442695, %v2157_v53 }
 0x37b   : > { %v2289_v63 = vmul.f32 1.442695, %v2168_v25  ;;  %v2293_v47 = vmul.f32 1.442695, %v2170_v0  ;;  %v7847_v25 = vld [vmem:[#allocation10_spill] sm:$0xff]  ;;  %v7850_v0 = vld [vmem:[#allocation9_spill] sm:$0xff] }
 0x37c   : > { %v2159_v15 = vsub.f32 %v7847_v25, %v6467_v5  ;;  %v2297_v17 = vmul.f32 1.442695, %v2172_v19  ;;  %v7853_v19 = vld [vmem:[#allocation11_spill] sm:$0xff] }
 0x37d   : > { %2503 = vperm.xlu0 %4357, %v6505_v31   ;;  %v6522_v31 = vpop.eup %4441  ;;  %4459 = vpow2.f32 %v2289_v63  ;;  %v2174_v63 = vsub.f32 %v6109_v52, %v6513_v33  ;;  %v2163_v52 = vsub.f32 %v7853_v19, %v6467_v5  ;;  %v7858_v19 = vld [vmem:[#allocation15_spill] sm:$0xff] }
 0x37e   : > { %2464 = vperm.xlu1 %4358, %v6507_v1   ;;  %7841 = vst [vmem:[#allocation36_spill] sm:$0xff] %v6522_v31  ;;  %v6530_v40 = vpop.eup %4443  ;;  %4461 = vpow2.f32 %v2263_v60  ;;  %v2271_v58 = vmul.f32 1.442695, %v2159_v15  ;;  %v2161_v60 = vsub.f32 %v7850_v0, %v6467_v5 }
 0x37f   : > { %7843 = vst [vmem:[#allocation37_spill] sm:$0xff] %v6530_v40  ;;  %v6532_v41 = vpop.eup %4445  ;;  %4463 = vpow2.f32 %v2293_v47  ;;  %v2279_v0 = vmul.f32 1.442695, %v2163_v52 }
 0x380   : > { %7844 = vst [vmem:[#allocation38_spill] sm:$0xff] %v6532_v41  ;;  %v6540_v14 = vpop.eup %4447  ;;  %4465 = vpow2.f32 %v2267_v8  ;;  %v2275_v47 = vmul.f32 1.442695, %v2161_v60 }
 0x381   : > { %2509 = vperm.xlu0 %4357, %v6520_v59   ;;  %7845 = vst [vmem:[#allocation39_spill] sm:$0xff] %v6540_v14  ;;  %v6542_v36 = vpop.eup %4449  ;;  %4467 = vpow2.f32 %v2297_v17  ;;  %v2165_v17 = vsub.f32 %v7792_v9, %v6467_v5  ;;  %v7861_v5 = vld [vmem:[#allocation18_spill] sm:$0xff] }
 0x382   : > { %2470 = vperm.xlu1 %4358, %v6522_v31   ;;  %7846 = vst [vmem:[#allocation40_spill] sm:$0xff] %v6542_v36  ;;  %v6550_v42 = vpop.eup %4451  ;;  %4469 = vpow2.f32 %v2271_v58 }
 0x383   : > { %7848 = vst [vmem:[#allocation16_spill] sm:$0xff] %v6550_v42  ;;  %v6552_v49 = vpop.eup %4453  ;;  %v2283_v60 = vmul.f32 1.442695, %v2165_v17 }
 0x384   : > { %7849 = vst [vmem:[#allocation41_spill] sm:$0xff] %v6552_v49  ;;  %v6560_v53 = vpop.eup %4455 }
 0x385   : > { %2515 = vperm.xlu0 %4357, %v6530_v40   ;;  %7851 = vst [vmem:[#allocation42_spill] sm:$0xff] %v6560_v53  ;;  %v6562_v25 = vpop.eup %4457  ;;  %v2301_v40 = vmul.f32 1.442695, %v2174_v63 }
 0x386   : > { %2476 = vperm.xlu1 %4358, %v6532_v41   ;;  %7852 = vst [vmem:[#allocation44_spill] sm:$0xff] %v6562_v25 }
 0x387   : > { %v6568_v8 = vpop.eup %4459  ;;  %4471 = vpow2.f32 %v2301_v40 }
 0x388   : > { %7854 = vst [vmem:[#allocation45_spill] sm:$0xff] %v6568_v8  ;;  %v6570_v15 = vpop.eup %4461  ;;  %4473 = vpow2.f32 %v2275_v47  ;;  %v2169_v47 = vsub.f32 %v7861_v5, %v6513_v33 }
 0x389   : > { %2521 = vperm.xlu0 %4357, %v6540_v14   ;;  %7855 = vst [vmem:[#allocation47_spill] sm:$0xff] %v6570_v15  ;;  %v6576_v63 = vpop.eup %4463  ;;  %4475 = vpow2.f32 %v2279_v0 }
 0x38a   : > { %2482 = vperm.xlu1 %4358, %v6542_v36   ;;  %7856 = vst [vmem:[#allocation10_spill] sm:$0xff] %v6576_v63  ;;  %v6578_v58 = vpop.eup %4465  ;;  %4477 = vpow2.f32 %v2283_v60  ;;  %v2291_v17 = vmul.f32 1.442695, %v2169_v47  ;;  %v2173_v60 = vsub.f32 %v6103_v23, %v6513_v33  ;;  %v7872_v36 = vld [vmem:[#allocation25_spill] sm:$0xff] }
 0x38b   : > { %7857 = vst [vmem:[#allocation9_spill] sm:$0xff] %v6578_v58 }
 0x38d   : > { %2527 = vperm.xlu0 %4357, %v6550_v42  }
 0x38e   : > { %2488 = vperm.xlu1 %4358, %v6552_v49  }
 0x391   : > { %2533 = vperm.xlu0 %4357, %v6560_v53   ;;  %v2167_v53 = vsub.f32 %v7858_v19, %v6513_v33  ;;  %v2171_v19 = vsub.f32 %v6058_v46, %v6513_v33 }
 0x392   : > { %2494 = vperm.xlu1 %4358, %v6562_v25   ;;  %v7870_v25 = vld [vmem:[#allocation23_spill] sm:$0xff] }
 0x393   : > { %v2287_v9 = vmul.f32 1.442695, %v2167_v53  ;;  %v2295_v53 = vmul.f32 1.442695, %v2171_v19 }
 0x395   : > { %2539 = vperm.xlu0 %4357, %v6568_v8   ;;  %4479 = vpow2.f32 %v2287_v9 }
 0x396   : > { %2500 = vperm.xlu1 %4358, %v6570_v15   ;;  %v6584_v15 = vpop.eup %4467  ;;  %4481 = vpow2.f32 %v2291_v17 }
 0x397   : > { %7859 = vst [vmem:[#allocation11_spill] sm:$0xff] %v6584_v15  ;;  %v6586_v40 = vpop.eup %4469  ;;  %4483 = vpow2.f32 %v2295_v53 }
 0x398   : > { %7860 = vst [vmem:[#allocation15_spill] sm:$0xff] %v6586_v40  ;;  %v6592_v52 = vpop.eup %4471 }
 0x399   : > { %2545 = vperm.xlu0 %4357, %v6576_v63   ;;  %7862 = vst [vmem:[#allocation18_spill] sm:$0xff] %v6592_v52  ;;  %v6594_v0 = vpop.eup %4473 }
 0x39a   : > { %2506 = vperm.xlu1 %4358, %v6578_v58   ;;  %7863 = vst [vmem:[#allocation52_spill] sm:$0xff] %v6594_v0  ;;  %v6600_v58 = vpop.eup %4475 }
 0x39b   : > { %7864 = vst [vmem:[#allocation53_spill] sm:$0xff] %v6600_v58  ;;  %v6605_v5 = vpop.eup %4477 }
 0x39c   : > { %7865 = vst [vmem:[#allocation54_spill] sm:$0xff] %v6605_v5 }
 0x39d   : > { %2551 = vperm.xlu0 %4357, %v6584_v15  }
 0x39e   : > { %2512 = vperm.xlu1 %4358, %v6586_v40  }
 0x39f   : > { %v6608_v9 = vpop.eup %4479 }
 0x3a0   : > { %7866 = vst [vmem:[#allocation55_spill] sm:$0xff] %v6608_v9  ;;  %v6613_v47 = vpop.eup %4481 }
 0x3a1   : > { %2557 = vperm.xlu0 %4357, %v6592_v52   ;;  %v2299_v52 = vmul.f32 1.442695, %v2173_v60  ;;  %7867 = vst [vmem:[#allocation56_spill] sm:$0xff] %v6613_v47  ;;  %v6618_v33 = vpop.eup %4483 }
 0x3a2   : > { %2518 = vperm.xlu1 %4358, %v6594_v0   ;;  %7868 = vst [vmem:[#allocation57_spill] sm:$0xff] %v6618_v33 }
 0x3a3   : > { %4485 = vpow2.f32 %v2299_v52 }
 0x3a6   : > { %2524 = vperm.xlu1 %4358, %v6600_v58  }
 0x3aa   : > { %2530 = vperm.xlu1 %4358, %v6605_v5  }
 0x3ad   : > { %v6623_v60 = vpop.eup %4485 }
 0x3ae   : > { %2536 = vperm.xlu1 %4358, %v6608_v9   ;;  %7869 = vst [vmem:[#allocation58_spill] sm:$0xff] %v6623_v60 }
 0x3b0   : > { %v6611_v46 = vpop.permute.xlu0 %2389 }
 0x3b1   : > { %v6615_v17 = vpop.permute.xlu1 %2368 }
 0x3b2   : > { %2542 = vperm.xlu1 %4358, %v6613_v47  }
 0x3b4   : > { %v2396_v23 = vpop.permute.xlu0 %2395 }
 0x3b5   : > { %v6620_v19 = vpop.permute.xlu1 %2371 }
 0x3b6   : > { %2548 = vperm.xlu1 %4358, %v6618_v33  }
 0x3b8   : > { %v2402_v53 = vpop.permute.xlu0 %2401 }
 0x3b9   : > { %v6625_v5 = vpop.permute.xlu1 %2374 }
 0x3ba   : > { %2554 = vperm.xlu1 %4358, %v6623_v60  }
 0x3bc   : > { %v6628_v52 = vpop.permute.xlu0 %2407 }
 0x3bd   : > { %v6630_v58 = vpop.permute.xlu1 %2377 }
 0x3c0   : > { %v6632_v0 = vpop.permute.xlu0 %2413 }
 0x3c1   : > { %v6634_v47 = vpop.permute.xlu1 %2380 }
 0x3c4   : > { %v2420_v9 = vpop.permute.xlu0 %2419 }
 0x3c5   : > { %v6636_v59 = vpop.permute.xlu1 %2383  ;;  %v2644_v49 = vrot.slane %v2420_v9, %v7871_v44 }
 0x3c8   : > { %v2426_v15 = vpop.permute.xlu0 %2425 }
 0x3c9   : > { %v6638_v33 = vpop.permute.xlu1 %2386  ;;  %v2654_v54 = vrot.slane %v2426_v15, %v5796_v35 }
 0x3cc   : > { %v2432_v42 = vpop.permute.xlu0 %2431 }
 0x3cd   : > { %v2393_v63 = vpop.permute.xlu1 %2392  ;;  %v2664_v9 = vrot.slane %v2432_v42, %v5804_v7 }
 0x3d0   : > { %v6640_v32 = vpop.permute.xlu0 %2437 }
 0x3d1   : > { %v2399_v14 = vpop.permute.xlu1 %2398 }
 0x3d4   : > { %v2444_v60 = vpop.permute.xlu0 %2443 }
 0x3d5   : > { %v2405_v18 = vpop.permute.xlu1 %2404 }
 0x3d8   : > { %v6642_v27 = vpop.permute.xlu0 %2449 }
 0x3d9   : > { %v2411_v48 = vpop.permute.xlu1 %2410 }
 0x3dc   : > { %v6644_v8 = vpop.permute.xlu0 %2455 }
 0x3dd   : > { %v2417_v56 = vpop.permute.xlu1 %2416 }
 0x3de   : > { %v2640_v29 = vrot.slane %v2417_v56, %v7870_v25 }
 0x3e0   : > { %v6647_v40 = vpop.permute.xlu0 %2461  ;;  %v2645_v41 = vsel %vm1734_vm2, %v2644_v49, %v2640_v29  ;;  %v2605_v49 = vrot.slane %v2396_v23, %v7871_v44 }
 0x3e1   : > { %v2423_v20 = vpop.permute.xlu1 %2422 }
 0x3e2   : > { %v2649_v55 = vrot.slane %v2423_v20, %v7872_v36  ;;  %v2601_v20 = vrot.slane %v2393_v63, %v7870_v25  ;;  %v2620_v63 = vrot.slane %v2405_v18, %v5799_v24  ;;  %v2683_v18 = vrot.slane %v2444_v60, %v7871_v44 }
 0x3e4   : > { %v2650_v11 = vsel %vm1741_vm3, %v2649_v55, %v2645_v41  ;;  %v6653_v31 = vpop.permute.xlu0 %2467  ;;  %v2610_v55 = vrot.slane %v2399_v14, %v7872_v36  ;;  %v2566_v14 = vrot.slane %v6620_v19, %v7871_v44 }
 0x3e5   : > { %v2429_v1 = vpop.permute.xlu1 %2428  ;;  %v2655_v56 = vsel %vm1748_vm4, %v2654_v54, %v2650_v11 }
 0x3e6   : > { %v2659_v22 = vrot.slane %v2429_v1, %v5799_v24 }
 0x3e8   : > { %v2660_v51 = vsel %vm1755_vm5, %v2659_v22, %v2655_v56  ;;  %v6659_v62 = vpop.permute.xlu0 %2473  ;;  %v2606_v22 = vsel %vm1734_vm2, %v2605_v49, %v2601_v20  ;;  %v2615_v56 = vrot.slane %v2402_v53, %v5796_v35  ;;  %v2562_v20 = vrot.slane %v6615_v17, %v7870_v25 }
 0x3e9   : > { %v2435_v29 = vpop.permute.xlu1 %2434  ;;  %v2665_v15 = vsel %vm1762_vm6, %v2664_v9, %v2660_v51  ;;  %v2611_v42 = vsel %vm1741_vm3, %v2610_v55, %v2606_v22  ;;  %v2571_v51 = vrot.slane %v6625_v5, %v7872_v36  ;;  %v2581_v53 = vrot.slane %v6634_v47, %v5799_v24 }
 0x3ea   : > { %v2669_v41 = vrot.slane %v2435_v29, %v5807_v6  ;;  %v2576_v29 = vrot.slane %v6630_v58, %v5796_v35  ;;  %v2616_v55 = vsel %vm1748_vm4, %v2615_v56, %v2611_v42  ;;  %v2630_v5 = vrot.slane %v2411_v48, %v5807_v6 }
 0x3eb   : > { %v2625_v17 = vrot.slane %v6628_v52, %v5804_v7  ;;  %v2586_v58 = vrot.slane %v6636_v59, %v5804_v7  ;;  %v2591_v47 = vrot.slane %v6638_v33, %v5807_v6  ;;  %v2693_v42 = vrot.slane %v6642_v27, %v5796_v35 }
 0x3ec   : > { %v2670_v1 = vsel %vm1769_vm7, %v2669_v41, %v2665_v15  ;;  %v6668_v54 = vpop.permute.xlu0 %2479  ;;  %v2621_v41 = vsel %vm1755_vm5, %v2620_v63, %v2616_v55  ;;  %v2567_v15 = vsel %vm1734_vm2, %v2566_v14, %v2562_v20  ;;  %v2635_v33 = vrot.slane %v6632_v0, %v5810_v12 }
 0x3ed   : > { %v2441_v11 = vpop.permute.xlu1 %2440  ;;  %v2572_v22 = vsel %vm1741_vm3, %v2571_v51, %v2567_v15  ;;  %v2626_v63 = vsel %vm1762_vm6, %v2625_v17, %v2621_v41  ;;  %v2674_v27 = vrot.slane %v6640_v32, %v5810_v12  ;;  %v2596_v55 = vrot.slane %v6611_v46, %v5810_v12 }
 0x3ee   : > { %v2679_v23 = vrot.slane %v2441_v11, %v7870_v25  ;;  %v2577_v48 = vsel %vm1748_vm4, %v2576_v29, %v2572_v22  ;;  %v2631_v59 = vsel %vm1769_vm7, %v2630_v5, %v2626_v63  ;;  %v2713_v32 = vrot.slane %v6647_v40, %v5810_v12 }
 0x3ef   : > { %v2582_v14 = vsel %vm1755_vm5, %v2581_v53, %v2577_v48  ;;  %v2703_v53 = vrot.slane %v6644_v8, %v5804_v7  ;;  %v2675_v41 = vsel %vm1776_vm8, %v2674_v27, %v2670_v1 }
 0x3f0   : > { %v6679_v9 = vpop.permute.xlu0 %2485  ;;  %v2684_v60 = vsel %vm1734_vm2, %v2683_v18, %v2679_v23  ;;  %v2587_v51 = vsel %vm1762_vm6, %v2586_v58, %v2582_v14 }
 0x3f1   : > { %v2447_v19 = vpop.permute.xlu1 %2446  ;;  %v2592_v29 = vsel %vm1769_vm7, %v2591_v47, %v2587_v51 }
 0x3f2   : > { %v2688_v49 = vrot.slane %v2447_v19, %v7872_v36  ;;  %v2636_v19 = vsel %vm1776_vm8, %v2635_v33, %v2631_v59 }
 0x3f4   : > { %v2689_v11 = vsel %vm1741_vm3, %v2688_v49, %v2684_v60  ;;  %v2492_v56 = vpop.permute.xlu0 %2491  ;;  %v2597_v49 = vsel %vm1776_vm8, %v2596_v55, %v2592_v29 }
 0x3f5   : > { %v2453_v52 = vpop.permute.xlu1 %2452  ;;  %v2694_v20 = vsel %vm1748_vm4, %v2693_v42, %v2689_v11  ;;  %v2871_v17 = vsel %vm2051_vm9, %v2636_v19, %v2597_v49 }
 0x3f6   : > { %v2698_v23 = vrot.slane %v2453_v52, %v5799_v24  ;;  %v2872_v60 = vsel %vm2053_vm10, %v2675_v41, %v2871_v17 }
 0x3f8   : > { %v2699_v18 = vsel %vm1755_vm5, %v2698_v23, %v2694_v20  ;;  %v2498_v46 = vpop.permute.xlu0 %2497 }
 0x3f9   : > { %v2459_v0 = vpop.permute.xlu1 %2458  ;;  %v2704_v15 = vsel %vm1762_vm6, %v2703_v53, %v2699_v18 }
 0x3fa   : > { %v2708_v5 = vrot.slane %v2459_v0, %v5807_v6 }
 0x3fc   : > { %v2709_v58 = vsel %vm1769_vm7, %v2708_v5, %v2704_v15  ;;  %v6735_v11 = vpop.permute.xlu0 %2503  ;;  %v2722_v5 = vrot.slane %v6653_v31, %v7871_v44  ;;  %v2761_v15 = vrot.slane %v2492_v56, %v7871_v44 }
 0x3fd   : > { %v2714_v8 = vsel %vm1776_vm8, %v2713_v32, %v2709_v58  ;;  %v2465_v22 = vpop.permute.xlu1 %2464 }
 0x3fe   : > { %v6733_v1 = vsel %vm2055_vm11, %v2714_v8, %v2872_v60  ;;  %v2718_v19 = vrot.slane %v2465_v22, %v7870_v25 }
 0x400   : > { %v6737_v40 = vpop.permute.xlu0 %2509  ;;  %v2723_v58 = vsel %vm1734_vm2, %v2722_v5, %v2718_v19  ;;  %v2771_v19 = vrot.slane %v2498_v46, %v5796_v35 }
 0x401   : > { %v2471_v47 = vpop.permute.xlu1 %2470 }
 0x402   : > { %v2727_v53 = vrot.slane %v2471_v47, %v7872_v36 }
 0x404   : > { %v2516_v52 = vpop.permute.xlu0 %2515  ;;  %v2728_v22 = vsel %vm1741_vm3, %v2727_v53, %v2723_v58 }
 0x405   : > { %v2477_v48 = vpop.permute.xlu1 %2476  ;;  %v2800_v60 = vrot.slane %v2516_v52, %v7871_v44 }
 0x406   : > { %v2737_v47 = vrot.slane %v2477_v48, %v5799_v24 }
 0x408   : > { %v2522_v59 = vpop.permute.xlu0 %2521 }
 0x409   : > { %v2483_v42 = vpop.permute.xlu1 %2482 }
 0x40c   : > { %v2528_v51 = vpop.permute.xlu0 %2527 }
 0x40d   : > { %v2489_v63 = vpop.permute.xlu1 %2488 }
 0x40e   : > { %v2757_v0 = vrot.slane %v2489_v63, %v7870_v25 }
 0x410   : > { %v6739_v29 = vpop.permute.xlu0 %2533  ;;  %v2762_v63 = vsel %vm1734_vm2, %v2761_v15, %v2757_v0  ;;  %v2742_v0 = vrot.slane %v6668_v54, %v5804_v7 }
 0x411   : > { %v2495_v14 = vpop.permute.xlu1 %2494 }
 0x412   : > { %v2766_v49 = vrot.slane %v2495_v14, %v7872_v36  ;;  %v2732_v14 = vrot.slane %v6659_v62, %v5796_v35  ;;  %v2810_v62 = vrot.slane %v2522_v59, %v5796_v35  ;;  %v2781_v59 = vrot.slane %v6735_v11, %v5804_v7 }
 0x413   : > { %v2752_v11 = vrot.slane %v6679_v9, %v5810_v12 }
 0x414   : > { %v2540_v55 = vpop.permute.xlu0 %2539  ;;  %v2733_v5 = vsel %vm1748_vm4, %v2732_v14, %v2728_v22 }
 0x415   : > { %v2501_v23 = vpop.permute.xlu1 %2500 }
 0x416   : > { %v2776_v56 = vrot.slane %v2501_v23, %v5799_v24  ;;  %v2747_v23 = vrot.slane %v2483_v42, %v5807_v6 }
 0x418   : > { %v2546_v8 = vpop.permute.xlu0 %2545 }
 0x419   : > { %v2507_v33 = vpop.permute.xlu1 %2506  ;;  %v2849_v14 = vrot.slane %v2546_v8, %v5796_v35 }
 0x41c   : > { %v2552_v58 = vpop.permute.xlu0 %2551 }
 0x41d   : > { %v2513_v20 = vpop.permute.xlu1 %2512 }
 0x41e   : > { %v2796_v32 = vrot.slane %v2513_v20, %v7870_v25  ;;  %v2767_v20 = vsel %vm1741_vm3, %v2766_v49, %v2762_v63  ;;  %v2738_v49 = vsel %vm1755_vm5, %v2737_v47, %v2733_v5  ;;  %v2820_v63 = vrot.slane %v2528_v51, %v5804_v7 }
 0x41f   : > { %v2772_v46 = vsel %vm1748_vm4, %v2771_v19, %v2767_v20  ;;  %v2743_v47 = vsel %vm1762_vm6, %v2742_v0, %v2738_v49  ;;  %v2791_v51 = vrot.slane %v6737_v40, %v5810_v12 }
 0x420   : > { %v2558_v0 = vpop.permute.xlu0 %2557 }
 0x421   : > { %v2519_v27 = vpop.permute.xlu1 %2518 }
 0x422   : > { %v2805_v17 = vrot.slane %v2519_v27, %v7872_v36  ;;  %v2801_v27 = vsel %vm1734_vm2, %v2800_v60, %v2796_v32  ;;  %v2839_v32 = vrot.slane %v2540_v55, %v7871_v44 }
 0x424   : > { %v2806_v52 = vsel %vm1741_vm3, %v2805_v17, %v2801_v27  ;;  %v2786_v17 = vrot.slane %v2507_v33, %v5807_v6 }
 0x425   : > { %v2525_v18 = vpop.permute.xlu1 %2524  ;;  %v2811_v54 = vsel %vm1748_vm4, %v2810_v62, %v2806_v52  ;;  %v2859_v62 = vrot.slane %v2552_v58, %v5804_v7 }
 0x426   : > { %v2815_v53 = vrot.slane %v2525_v18, %v5799_v24  ;;  %v2777_v18 = vsel %vm1755_vm5, %v2776_v56, %v2772_v46 }
 0x427   : > { %v2782_v20 = vsel %vm1762_vm6, %v2781_v59, %v2777_v18 }
 0x428   : > { %v2816_v22 = vsel %vm1755_vm5, %v2815_v53, %v2811_v54 }
 0x429   : > { %v2531_v41 = vpop.permute.xlu1 %2530  ;;  %v2821_v27 = vsel %vm1762_vm6, %v2820_v63, %v2816_v22  ;;  %v7873_v63 = vsub.s32 1, %v7795_v3 }
 0x42a   : > { %v2825_v42 = vrot.slane %v2531_v41, %v5807_v6  ;;  %v2787_v41 = vsel %vm1769_vm7, %v2786_v17, %v2782_v20  ;;  %v7874_v20 = vsub.s32 2, %v7795_v3 }
 0x42b   : > { %v2792_v5 = vsel %vm1776_vm8, %v2791_v51, %v2787_v41 }
 0x42c   : > { %v2826_v52 = vsel %vm1769_vm7, %v2825_v42, %v2821_v27 }
 0x42d   : > { %v2537_v31 = vpop.permute.xlu1 %2536 }
 0x42e   : > { %v2835_v48 = vrot.slane %v2537_v31, %v7870_v25  ;;  %v2748_v31 = vsel %vm1769_vm7, %v2747_v23, %v2743_v47 }
 0x42f   : > { %v2753_v8 = vsel %vm1776_vm8, %v2752_v11, %v2748_v31 }
 0x430   : > { %v2840_v55 = vsel %vm1734_vm2, %v2839_v32, %v2835_v48  ;;  %v2830_v48 = vrot.slane %v6739_v29, %v5810_v12  ;;  %v2869_v32 = vrot.slane %v2558_v0, %v5810_v12 }
 0x431   : > { %v2543_v15 = vpop.permute.xlu1 %2542 }
 0x432   : > { %v2844_v60 = vrot.slane %v2543_v15, %v7872_v36  ;;  %v2831_v40 = vsel %vm1776_vm8, %v2830_v48, %v2826_v52  ;;  %v2874_v15 = vsel %vm2057_vm12, %v2753_v8, %v6733_v1 }
 0x433   : > { %v2875_v18 = vsel %vm2059_vm13, %v2792_v5, %v2874_v15  ;;  %v7882_v5 = vld [vmem:[#allocation36_spill] sm:$0xff] }
 0x434   : > { %v2845_v33 = vsel %vm1741_vm3, %v2844_v60, %v2840_v55  ;;  %v2876_v58 = vsel %vm2061_vm14, %v2831_v40, %v2875_v18  ;;  %v7884_v40 = vld [vmem:[#allocation38_spill] sm:$0xff] }
 0x435   : > { %v2549_v56 = vpop.permute.xlu1 %2548  ;;  %v2850_v53 = vsel %vm1748_vm4, %v2849_v14, %v2845_v33 }
 0x436   : > { %v2854_v19 = vrot.slane %v2549_v56, %v5799_v24 }
 0x438   : > { %v2855_v9 = vsel %vm1755_vm5, %v2854_v19, %v2850_v53  ;;  %v7878_v53 = vld [vmem:[#allocation31_spill] sm:$0xff] }
 0x439   : > { %v2555_v49 = vpop.permute.xlu1 %2554  ;;  %v2860_v46 = vsel %vm1762_vm6, %v2859_v62, %v2855_v9 }
 0x43a   : > { %v2864_v23 = vrot.slane %v2555_v49, %v5807_v6  ;;  %v7883_v49 = vld [vmem:[#allocation51_spill] sm:$0xff] }
 0x43c   : > { %v2865_v29 = vsel %vm1769_vm7, %v2864_v23, %v2860_v46  ;;  %v7885_v46 = vld [vmem:[#allocation22_spill] sm:$0xff] }
 0x43d   : > { %v2870_v17 = vsel %vm1776_vm8, %v2869_v32, %v2865_v29  ;;  %v7886_v29 = vsub.s32 5, %v7795_v3 }
 0x43e   : > { %v2877_v54 = vsel %vm2063_vm15, %v2870_v17, %v2876_v58  ;;  %v7887_v17 = vld [vmem:[#allocation40_spill] sm:$0xff] }
 0x43f   : > { %v2879_v60 = vsel %vm2066_vm1, %v2877_v54, 0.0  ;;  %v7888_v54 = vld [vmem:[#allocation46_spill] sm:$0xff] }
 0x440   : > { %2880 = vadd.xlane.f32.xlu1 %v2879_v60 }
 0x4cd   : > { %v2881_v59 = vpop.xlane.xlu1 %2880 }
 0x4ce   : > { %4487 = vrcp.f32 %v2881_v59 }
 0x4d8   : > { %v4488_v22 = vpop.eup %4487 }
 0x4d9   : > { %v2883_v42 = vmul.f32 %v4488_v22, %v2881_v59  ;;  %v7889_v59 = vsub.s32 6, %v7795_v3 }
 0x4db   : > { %v2884_v55 = vsub.f32 2.0, %v2883_v42  ;;  %v7890_v42 = vld [vmem:[#allocation41_spill] sm:$0xff] }
 0x4dd   : > { %v6814_v47 = vmul.f32 %v4488_v22, %v2884_v55 }
 0x4df   : > { %v2890_v1 = vrot.slane %v6814_v47, %v7796_v45  ;;  %v2894_v33 = vrot.slane %v6814_v47, %v7873_v63  ;;  %v6826_v56 = vrot.slane %v6814_v47, %v7874_v20  ;;  %v6876_v18 = vrot.slane %v6814_v47, %v7886_v29 }
 0x4e0   : > { %v6884_v22 = vrot.slane %v6814_v47, %v7889_v59  ;;  %v7916_v59 = vld [vmem:[#allocation37_spill] sm:$0xff] }
 0x4e1   : > { %v2936_v31 = vmul.f32 %v6301_v38, %v2894_v33  ;;  %v2927_v14 = vmul.f32 %v6294_v50, %v2890_v1  ;;  %v2941_v11 = vmul.f32 %v6404_v10, %v2894_v33  ;;  %v2928_v41 = vmul.f32 %v6303_v21, %v2890_v1 }
 0x4e2   : > { %v2943_v45 = vmul.f32 %v6415_v13, %v6826_v56  ;;  %v2929_v38 = vmul.f32 %v6312_v61, %v2890_v1  ;;  %v2945_v50 = vmul.f32 %v6430_v4, %v6826_v56  ;;  %v2930_v27 = vmul.f32 %v6323_v57, %v2890_v1 }
 0x4e3   : > { %3038 = vperm.xlu1 %4358, %v2936_v31   ;;  %2993 = vperm.xlu0 %4357, %v2927_v14   ;;  %v2947_v10 = vmul.f32 %v6440_v39, %v6826_v56  ;;  %v2931_v21 = vmul.f32 %v6338_v43, %v2890_v1  ;;  %v7875_v13 = vsub.s32 3, %v7795_v3  ;;  %v2949_v19 = vmul.f32 %v6450_v34, %v6826_v56  ;;  %v7892_v31 = vld [vmem:[#allocation15_spill] sm:$0xff] }
 0x4e4   : > { %v2932_v4 = vmul.f32 %v6348_v28, %v2890_v1  ;;  %v2933_v39 = vmul.f32 %v6358_v16, %v2890_v1  ;;  %v2934_v51 = vmul.f32 %v6292_v2, %v2890_v1  ;;  %v7876_v28 = vld [vmem:[#allocation50_spill] sm:$0xff]  ;;  %v2939_v23 = vmul.f32 %v7883_v49, %v2894_v33  ;;  %v7891_v1 = vld [vmem:[#allocation43_spill] sm:$0xff]  ;;  %v7910_v49 = vld [vmem:[#allocation33_spill] sm:$0xff] }
 0x4e5   : > { %v6842_v61 = vrot.slane %v6814_v47, %v7875_v13  ;;  %v2935_v52 = vmul.f32 %v7876_v28, %v2894_v33  ;;  %v7880_v2 = vld [vmem:[#allocation34_spill] sm:$0xff]  ;;  %v2940_v15 = vmul.f32 %v7885_v46, %v2894_v33  ;;  %v2942_v60 = vmul.f32 %v7888_v54, %v2894_v33  ;;  %v7898_v13 = vld [vmem:[#allocation49_spill] sm:$0xff] }
 0x4e6   : > { %v2967_v55 = vmul.f32 %v7890_v42, %v6876_v18  ;;  %v2944_v63 = vmul.f32 %v7891_v1, %v6826_v56  ;;  %v2975_v14 = vmul.f32 %v7892_v31, %v6884_v22  ;;  %v7915_v54 = vld [vmem:[#allocation29_spill] sm:$0xff]  ;;  %v2976_v42 = vmul.f32 %v7916_v59, %v6884_v22 }
 0x4e7   : > { %3063 = vperm.xlu1 %4358, %v2941_v11   ;;  %2998 = vperm.xlu0 %4357, %v2928_v41   ;;  %v2951_v57 = vmul.f32 %v6461_v30, %v6842_v61  ;;  %v2953_v43 = vmul.f32 %v6476_v26, %v6842_v61  ;;  %v2955_v34 = vmul.f32 %v6486_v37, %v6842_v61  ;;  %v7877_v30 = vsub.s32 4, %v7795_v3  ;;  %v7879_v26 = vld [vmem:[#allocation14_spill] sm:$0xff]  ;;  %v7881_v37 = vld [vmem:[#allocation20_spill] sm:$0xff] }
 0x4e8   : > { %v2957_v8 = vmul.f32 %v7878_v53, %v6842_v61  ;;  %v2937_v48 = vmul.f32 %v7879_v26, %v2894_v33  ;;  %v2938_v9 = vmul.f32 %v7881_v37, %v2894_v33  ;;  %v7893_v33 = vld [vmem:[#allocation48_spill] sm:$0xff]  ;;  %v7894_v11 = vsub.s32 7, %v7795_v3  ;;  %v7899_v3 = vld [vmem:[#allocation30_spill] sm:$0xff]  ;;  %v7906_v26 = vld [vmem:[#allocation17_spill] sm:$0xff] }
 0x4e9   : > { %v6859_v16 = vrot.slane %v6814_v47, %v7877_v30  ;;  %v2946_v20 = vmul.f32 %v7893_v33, %v6826_v56  ;;  %v7905_v53 = vld [vmem:[#allocation32_spill] sm:$0xff]  ;;  %v7908_v37 = vld [vmem:[#allocation26_spill] sm:$0xff]  ;;  %v7920_v33 = vld [vmem:[#allocation47_spill] sm:$0xff] }
 0x4ea   : > { %v6897_v41 = vrot.slane %v6814_v47, %v7894_v11  ;;  %v2970_v47 = vmul.f32 %v7899_v3, %v6876_v18  ;;  %v7921_v11 = vld [vmem:[#allocation53_spill] sm:$0xff] }
 0x4eb   : > { %3073 = vperm.xlu1 %4358, %v2943_v45   ;;  %3003 = vperm.xlu0 %4357, %v2929_v38   ;;  %v2959_v0 = vmul.f32 %v7880_v2, %v6859_v16  ;;  %v2961_v62 = vmul.f32 %v7882_v5, %v6859_v16  ;;  %v2963_v32 = vmul.f32 %v7884_v40, %v6859_v16  ;;  %v7895_v45 = vld [vmem:[#allocation44_spill] sm:$0xff]  ;;  %v7909_v5 = vld [vmem:[#allocation11_spill] sm:$0xff] }
 0x4ec   : > { %v2965_v58 = vmul.f32 %v7887_v17, %v6859_v16  ;;  %v2969_v38 = vmul.f32 %v7895_v45, %v6876_v18  ;;  %v7907_v2 = vld [vmem:[#allocation16_spill] sm:$0xff]  ;;  %v2979_v45 = vmul.f32 %v7921_v11, %v6884_v22 }
 0x4ed   : > { %v7914_v17 = vld [vmem:[#allocation28_spill] sm:$0xff] }
 0x4ef   : > { %3083 = vperm.xlu1 %4358, %v2945_v50   ;;  %3008 = vperm.xlu0 %4357, %v2930_v27   ;;  %v7896_v50 = vld [vmem:[#allocation19_spill] sm:$0xff] }
 0x4f0   : > { %v2948_v27 = vmul.f32 %v7896_v50, %v6826_v56 }
 0x4f3   : > { %3093 = vperm.xlu1 %4358, %v2947_v10   ;;  %3013 = vperm.xlu0 %4357, %v2931_v21   ;;  %v7897_v10 = vld [vmem:[#allocation45_spill] sm:$0xff] }
 0x4f4   : > { %v2984_v21 = vmul.f32 %v7897_v10, %v6897_v41 }
 0x4f7   : > { %3103 = vperm.xlu1 %4358, %v2949_v19   ;;  %3018 = vperm.xlu0 %4357, %v2932_v4   ;;  %v2950_v19 = vmul.f32 %v7898_v13, %v6826_v56  ;;  %v7900_v4 = vld [vmem:[#allocation21_spill] sm:$0xff]  ;;  %v7903_v56 = vld [vmem:[#allocation10_spill] sm:$0xff] }
 0x4f8   : > { %v2986_v28 = vmul.f32 %v7903_v56, %v6897_v41  ;;  %v7923_v56 = vld [vmem:[#allocation9_spill] sm:$0xff] }
 0x4fb   : > { %3113 = vperm.xlu1 %4358, %v2951_v57   ;;  %3023 = vperm.xlu0 %4357, %v2933_v39   ;;  %v2952_v57 = vmul.f32 %v7900_v4, %v6842_v61  ;;  %v7901_v39 = vld [vmem:[#allocation39_spill] sm:$0xff]  ;;  %v4490_v4 = vld [vmem:[%s4779_s25 + $0x8] sm:$0xff] }
 0x4ff   : > { %3123 = vperm.xlu1 %4358, %v2953_v43   ;;  %3028 = vperm.xlu0 %4357, %v2934_v51   ;;  %v2978_v43 = vmul.f32 %v7901_v39, %v6884_v22  ;;  %v7902_v51 = vld [vmem:[#allocation13_spill] sm:$0xff] }
 0x503   : > { %3133 = vperm.xlu1 %4358, %v2955_v34   ;;  %3033 = vperm.xlu0 %4357, %v2935_v52   ;;  %v2954_v34 = vmul.f32 %v7902_v51, %v6842_v61  ;;  %v7904_v52 = vld [vmem:[#allocation12_spill] sm:$0xff] }
 0x504   : > { %v2956_v30 = vmul.f32 %v7904_v52, %v6842_v61 }
 0x507   : > { %3143 = vperm.xlu1 %4358, %v2957_v8   ;;  %3043 = vperm.xlu0 %4357, %v2937_v48   ;;  %v2972_v8 = vmul.f32 %v7905_v53, %v6876_v18  ;;  %v2958_v48 = vmul.f32 %v7906_v26, %v6842_v61  ;;  %v7911_v61 = vld [vmem:[#allocation35_spill] sm:$0xff] }
 0x508   : > { %v2974_v40 = vmul.f32 %v7911_v61, %v6876_v18 }
 0x50b   : > { %3153 = vperm.xlu1 %4358, %v2959_v0   ;;  %3048 = vperm.xlu0 %4357, %v2938_v9   ;;  %v2980_v0 = vmul.f32 %v7907_v2, %v6884_v22  ;;  %v2960_v9 = vmul.f32 %v7908_v37, %v6859_v16  ;;  %v7924_v37 = vld [vmem:[#allocation54_spill] sm:$0xff] }
 0x50f   : > { %3163 = vperm.xlu1 %4358, %v2961_v62   ;;  %3053 = vperm.xlu0 %4357, %v2939_v23   ;;  %v2988_v62 = vmul.f32 %v7909_v5, %v6897_v41  ;;  %v2962_v23 = vmul.f32 %v7910_v49, %v6859_v16  ;;  %v4492_v49 = vld [vmem:[%s4779_s25 + $0x18] sm:$0xff] }
 0x513   : > { %3173 = vperm.xlu1 %4358, %v2963_v32   ;;  %3058 = vperm.xlu0 %4357, %v2940_v15   ;;  %v7912_v32 = vld [vmem:[#allocation27_spill] sm:$0xff]  ;;  %v7913_v15 = vld [vmem:[#allocation42_spill] sm:$0xff] }
 0x514   : > { %v2964_v46 = vmul.f32 %v7912_v32, %v6859_v16  ;;  %v2982_v29 = vmul.f32 %v7913_v15, %v6884_v22 }
 0x517   : > { %3183 = vperm.xlu1 %4358, %v2965_v58   ;;  %3068 = vperm.xlu0 %4357, %v2942_v60   ;;  %v2966_v58 = vmul.f32 %v7914_v17, %v6859_v16  ;;  %v2968_v60 = vmul.f32 %v7915_v54, %v6876_v18  ;;  %v7919_v16 = vld [vmem:[#allocation56_spill] sm:$0xff] }
 0x51b   : > { %3193 = vperm.xlu1 %4358, %v2967_v55   ;;  %3078 = vperm.xlu0 %4357, %v2944_v63   ;;  %v7917_v55 = vld [vmem:[#allocation55_spill] sm:$0xff]  ;;  %v7918_v63 = vld [vmem:[#allocation52_spill] sm:$0xff] }
 0x51c   : > { %v2983_v1 = vmul.f32 %v7917_v55, %v6897_v41  ;;  %v2977_v31 = vmul.f32 %v7918_v63, %v6884_v22  ;;  %v7926_v55 = vld [vmem:[#allocation18_spill] sm:$0xff] }
 0x51f   : > { %3233 = vperm.xlu1 %4358, %v2975_v14   ;;  %3088 = vperm.xlu0 %4357, %v2946_v20   ;;  %v2985_v14 = vmul.f32 %v7919_v16, %v6897_v41  ;;  %v2971_v20 = vmul.f32 %v7920_v33, %v6876_v18 }
 0x523   : > { %3203 = vperm.xlu1 %4358, %v2969_v38   ;;  %3098 = vperm.xlu0 %4357, %v2948_v27   ;;  %v4489_v27 = vld [vmem:[%s4779_s25] sm:$0xff] }
 0x527   : > { %3278 = vperm.xlu1 %4358, %v2984_v21   ;;  %3108 = vperm.xlu0 %4357, %v2950_v19   ;;  %v7922_v21 = vld [vmem:[#allocation57_spill] sm:$0xff] }
 0x528   : > { %v2987_v13 = vmul.f32 %v7922_v21, %v6897_v41 }
 0x52b   : > { %3208 = vperm.xlu1 %4358, %v2970_v47   ;;  %3118 = vperm.xlu0 %4357, %v2952_v57  }
 0x52f   : > { %3248 = vperm.xlu1 %4358, %v2978_v43   ;;  %3128 = vperm.xlu0 %4357, %v2954_v34  }
 0x533   : > { %3288 = vperm.xlu1 %4358, %v2986_v28   ;;  %3138 = vperm.xlu0 %4357, %v2956_v30   ;;  %v2973_v28 = vmul.f32 %v7923_v56, %v6876_v18  ;;  %v4497_v56 = vld [vmem:[%s4779_s25 + $0x48] sm:$0xff] }
 0x537   : > { %3218 = vperm.xlu1 %4358, %v2972_v8   ;;  %3148 = vperm.xlu0 %4357, %v2958_v48   ;;  %v4491_v8 = vld [vmem:[%s4779_s25 + $0x10] sm:$0xff] }
 0x53b   : > { %3258 = vperm.xlu1 %4358, %v2980_v0   ;;  %3158 = vperm.xlu0 %4357, %v2960_v9   ;;  %v2981_v9 = vmul.f32 %v7924_v37, %v6884_v22 }
 0x53f   : > { %3298 = vperm.xlu1 %4358, %v2988_v62   ;;  %3168 = vperm.xlu0 %4357, %v2962_v23  }
 0x543   : > { %3228 = vperm.xlu1 %4358, %v2974_v40   ;;  %3178 = vperm.xlu0 %4357, %v2964_v46   ;;  %v7925_v46 = vld [vmem:[#allocation58_spill] sm:$0xff] }
 0x544   : > { %v2989_v15 = vmul.f32 %v7925_v46, %v6897_v41 }
 0x547   : > { %3268 = vperm.xlu1 %4358, %v2982_v29   ;;  %3188 = vperm.xlu0 %4357, %v2966_v58   ;;  %v4493_v58 = vld [vmem:[%s4779_s25 + $0x20] sm:$0xff] }
 0x54b   : > { %3198 = vperm.xlu0 %4357, %v2968_v60  }
 0x54f   : > { %3238 = vperm.xlu0 %4357, %v2976_v42  }
 0x553   : > { %3273 = vperm.xlu0 %4357, %v2983_v1   ;;  %v2990_v1 = vmul.f32 %v7926_v55, %v6897_v41  ;;  %v4495_v41 = vld [vmem:[%s4779_s25 + $0x30] sm:$0xff] }
 0x557   : > { %3243 = vperm.xlu0 %4357, %v2977_v31  }
 0x55b   : > { %3283 = vperm.xlu0 %4357, %v2985_v14   ;;  %v4494_v14 = vld [vmem:[%s4779_s25 + $0x28] sm:$0xff] }
 0x55f   : > { %3213 = vperm.xlu0 %4357, %v2971_v20  }
 0x562   : > { %v6953_v38 = vpop.permute.xlu1 %3038  ;;  %v2994_v50 = vpop.permute.xlu0 %2993 }
 0x563   : > { %3253 = vperm.xlu0 %4357, %v2979_v45   ;;  %v3311_v10 = vmul.f32 %v4489_v27, %v2994_v50  ;;  %v3546_v47 = vrot.slane %v2994_v50, %v7870_v25 }
 0x565   : > { %v3375_v43 = vsel %vm442_vm0, %v3311_v10, 0.0 }
 0x566   : > { %v6958_v19 = vpop.permute.xlu1 %3063  ;;  %v2999_v3 = vpop.permute.xlu0 %2998 }
 0x567   : > { %v3312_v57 = vmul.f32 %v4490_v4, %v2999_v3  ;;  %v3550_v39 = vrot.slane %v2999_v3, %v7871_v44  ;;  %3293 = vperm.xlu0 %4357, %v2987_v13  }
 0x569   : > { %v3376_v51 = vsel %vm442_vm0, %v3312_v57, 0.0  ;;  %v3551_v34 = vsel %vm1734_vm2, %v3550_v39, %v3546_v47 }
 0x56a   : > { %v3377_v52 = vadd.f32 %v3376_v51, %v3375_v43  ;;  %v6968_v30 = vpop.permute.xlu1 %3073  ;;  %v3004_v53 = vpop.permute.xlu0 %3003  ;;  %v4496_v43 = vld [vmem:[%s4779_s25 + $0x38] sm:$0xff] }
 0x56b   : > { %v3313_v26 = vmul.f32 %v4491_v8, %v3004_v53  ;;  %v3555_v48 = vrot.slane %v3004_v53, %v7872_v36  ;;  %3223 = vperm.xlu0 %4357, %v2973_v28   ;;  %v3320_v28 = vmul.f32 %v4497_v56, %v6953_v38 }
 0x56d   : > { %v3378_v2 = vsel %vm442_vm0, %v3313_v26, 0.0  ;;  %v3556_v0 = vsel %vm1741_vm3, %v3555_v48, %v3551_v34 }
 0x56e   : > { %v3379_v5 = vadd.f32 %v3378_v2, %v3377_v52  ;;  %v6976_v62 = vpop.permute.xlu1 %3083  ;;  %v3009_v18 = vpop.permute.xlu0 %3008  ;;  %v3589_v2 = vrot.slane %v6953_v38, %v7871_v44 }
 0x56f   : > { %v3314_v23 = vmul.f32 %v4492_v49, %v3009_v18  ;;  %v3560_v61 = vrot.slane %v3009_v18, %v5796_v35  ;;  %3263 = vperm.xlu0 %4357, %v2981_v9  }
 0x571   : > { %v3380_v40 = vsel %vm442_vm0, %v3314_v23, 0.0  ;;  %v3561_v32 = vsel %vm1748_vm4, %v3560_v61, %v3556_v0  ;;  %v4498_v0 = vld [vmem:[%s4779_s25 + $0x40] sm:$0xff] }
 0x572   : > { %v3381_v29 = vadd.f32 %v3380_v40, %v3379_v5  ;;  %v6984_v17 = vpop.permute.xlu1 %3093  ;;  %v3014_v22 = vpop.permute.xlu0 %3013  ;;  %v3397_v5 = vsel %vm442_vm0, %v3320_v28, 0.0 }
 0x573   : > { %v3315_v54 = vmul.f32 %v4493_v58, %v3014_v22  ;;  %v3565_v60 = vrot.slane %v3014_v22, %v5799_v24  ;;  %3303 = vperm.xlu0 %4357, %v2989_v15  }
 0x575   : > { %v3382_v59 = vsel %vm442_vm0, %v3315_v54, 0.0  ;;  %v3566_v42 = vsel %vm1755_vm5, %v3565_v60, %v3561_v32  ;;  %v4499_v32 = vld [vmem:[%s4779_s25 + $0x50] sm:$0xff]  ;;  %v4500_v60 = vld [vmem:[%s4779_s25 + $0x58] sm:$0xff] }
 0x576   : > { %v3383_v63 = vadd.f32 %v3382_v59, %v3381_v29  ;;  %v6992_v31 = vpop.permute.xlu1 %3103  ;;  %v3019_v16 = vpop.permute.xlu0 %3018 }
 0x577   : > { %v3316_v33 = vmul.f32 %v4494_v14, %v3019_v16  ;;  %v3570_v20 = vrot.slane %v3019_v16, %v5804_v7  ;;  %3308 = vperm.xlu0 %4357, %v2990_v1  }
 0x579   : > { %v3384_v11 = vsel %vm442_vm0, %v3316_v33, 0.0  ;;  %v3571_v45 = vsel %vm1762_vm6, %v3570_v20, %v3566_v42  ;;  %v4501_v33 = vld [vmem:[%s4779_s25 + $0x60] sm:$0xff] }
 0x57a   : > { %v3385_v50 = vadd.f32 %v3384_v11, %v3383_v63  ;;  %v6998_v27 = vpop.permute.xlu1 %3113  ;;  %v3024_v10 = vpop.permute.xlu0 %3023 }
 0x57b   : > { %v3317_v21 = vmul.f32 %v4495_v41, %v3024_v10  ;;  %v3575_v13 = vrot.slane %v3024_v10, %v5807_v6 }
 0x57d   : > { %v3386_v3 = vsel %vm442_vm0, %v3317_v21, 0.0  ;;  %v3576_v47 = vsel %vm1769_vm7, %v3575_v13, %v3571_v45  ;;  %v4502_v13 = vld [vmem:[%s4779_s25 + $0x70] sm:$0xff] }
 0x57e   : > { %v3387_v4 = vadd.f32 %v3386_v3, %v3385_v50  ;;  %v7004_v57 = vpop.permute.xlu1 %3123  ;;  %v3029_v39 = vpop.permute.xlu0 %3028  ;;  %v3325_v3 = vmul.f32 %v4502_v13, %v6958_v19 }
 0x57f   : > { %v3318_v51 = vmul.f32 %v4496_v43, %v3029_v39  ;;  %v3580_v34 = vrot.slane %v3029_v39, %v5810_v12  ;;  %v3614_v43 = vrot.slane %v6958_v19, %v5807_v6 }
 0x581   : > { %v3388_v52 = vsel %vm442_vm0, %v3318_v51, 0.0  ;;  %v7012_v53 = vsel %vm1776_vm8, %v3580_v34, %v3576_v47  ;;  %v4503_v47 = vld [vmem:[%s4779_s25 + $0x68] sm:$0xff] }
 0x582   : > { %v3389_v8 = vadd.f32 %v3388_v52, %v3387_v4  ;;  %v7014_v26 = vpop.permute.xlu1 %3133  ;;  %v3034_v48 = vpop.permute.xlu0 %3033 }
 0x583   : > { %v3319_v37 = vmul.f32 %v4498_v0, %v3034_v48  ;;  %v3585_v9 = vrot.slane %v3034_v48, %v7870_v25  ;;  %v3407_v0 = vsel %vm442_vm0, %v3325_v3, 0.0  ;;  %v3643_v3 = vrot.slane %v6984_v17, %v5799_v24 }
 0x584   : > { %v3390_v10 = vrot.slane %v3389_v8, 4 }
 0x585   : > { %v3396_v18 = vsel %vm442_vm0, %v3319_v37, 0.0  ;;  %v3590_v49 = vsel %vm1734_vm2, %v3589_v2, %v3585_v9  ;;  %v4504_v37 = vld [vmem:[%s4779_s25 + $0x78] sm:$0xff] }
 0x586   : > { %v3398_v23 = vadd.f32 %v3397_v5, %v3396_v18  ;;  %v7023_v61 = vpop.permute.xlu1 %3143  ;;  %v3044_v40 = vpop.permute.xlu0 %3043  ;;  %v3391_v28 = vadd.f32 %v3390_v10, %v3389_v8  ;;  %v4505_v18 = vld [vmem:[%s4779_s25 + $0x80] sm:$0xff] }
 0x587   : > { %v3321_v46 = vmul.f32 %v4499_v32, %v3044_v40  ;;  %v3594_v38 = vrot.slane %v3044_v40, %v7872_v36  ;;  %v4508_v10 = vld [vmem:[%s4779_s25 + $0xa0] sm:$0xff] }
 0x588   : > { %v3392_v40 = vrot.slane %v3391_v28, 2 }
 0x589   : > { %v3399_v15 = vsel %vm442_vm0, %v3321_v46, 0.0  ;;  %v3595_v29 = vsel %vm1741_vm3, %v3594_v38, %v3590_v49  ;;  %v3327_v49 = vmul.f32 %v4505_v18, %v6968_v30  ;;  %v3653_v18 = vrot.slane %v6992_v31, %v5807_v6 }
 0x58a   : > { %v3400_v22 = vadd.f32 %v3399_v15, %v3398_v23  ;;  %v7029_v58 = vpop.permute.xlu1 %3153  ;;  %v3049_v54 = vpop.permute.xlu0 %3048 }
 0x58b   : > { %v3322_v59 = vmul.f32 %v4500_v60, %v3049_v54  ;;  %v3599_v42 = vrot.slane %v3049_v54, %v5796_v35  ;;  %v4507_v60 = vld [vmem:[%s4779_s25 + $0x88] sm:$0xff] }
 0x58d   : > { %v3401_v55 = vsel %vm442_vm0, %v3322_v59, 0.0  ;;  %v3600_v1 = vsel %vm1748_vm4, %v3599_v42, %v3595_v29  ;;  %v3624_v29 = vrot.slane %v6968_v30, %v7870_v25  ;;  %v3393_v30 = vadd.f32 %v3392_v40, %v3391_v28 }
 0x58e   : > { %v3402_v63 = vadd.f32 %v3401_v55, %v3400_v22  ;;  %v7035_v16 = vpop.permute.xlu1 %3163  ;;  %v3054_v14 = vpop.permute.xlu0 %3053  ;;  %v4506_v22 = vld [vmem:[%s4779_s25 + $0x90] sm:$0xff]  ;;  %v3633_v55 = vrot.slane %v6976_v62, %v7872_v36 }
 0x58f   : > { %v3323_v20 = vmul.f32 %v4501_v33, %v3054_v14  ;;  %v3604_v11 = vrot.slane %v3054_v14, %v5799_v24  ;;  %v3329_v54 = vmul.f32 %v4506_v22, %v6976_v62  ;;  %v4509_v62 = vld [vmem:[%s4779_s25 + $0x98] sm:$0xff] }
 0x591   : > { %v3403_v45 = vsel %vm442_vm0, %v3323_v20, 0.0  ;;  %v3605_v50 = vsel %vm1755_vm5, %v3604_v11, %v3600_v1 }
 0x592   : > { %v3404_v41 = vadd.f32 %v3403_v45, %v3402_v63  ;;  %v3059_v21 = vpop.permute.xlu0 %3058  ;;  %v7047_v51 = vpop.permute.xlu1 %3173  ;;  %v3417_v63 = vsel %vm442_vm0, %v3327_v49, 0.0 }
 0x593   : > { %v3324_v4 = vmul.f32 %v4503_v47, %v3059_v21  ;;  %v3609_v39 = vrot.slane %v3059_v21, %v5804_v7 }
 0x595   : > { %v3405_v34 = vsel %vm442_vm0, %v3324_v4, 0.0  ;;  %v3610_v56 = vsel %vm1762_vm6, %v3609_v39, %v3605_v50  ;;  %v3420_v50 = vsel %vm442_vm0, %v3329_v54, 0.0 }
 0x596   : > { %v3406_v52 = vadd.f32 %v3405_v34, %v3404_v41  ;;  %v3615_v48 = vsel %vm1769_vm7, %v3614_v43, %v3610_v56  ;;  %v3069_v2 = vpop.permute.xlu0 %3068  ;;  %v7059_v32 = vpop.permute.xlu1 %3183  ;;  %v3331_v41 = vmul.f32 %v4508_v10, %v6984_v17  ;;  %v3394_v56 = vrot.slane %v3393_v30, 1  ;;  %v4511_v17 = vld [vmem:[%s4779_s25 + $0xa8] sm:$0xff] }
 0x597   : > { %v3326_v9 = vmul.f32 %v4504_v37, %v3069_v2  ;;  %v3619_v5 = vrot.slane %v3069_v2, %v5810_v12  ;;  %v4510_v37 = vld [vmem:[%s4779_s25 + $0xb0] sm:$0xff] }
 0x598   : > { %v3408_v19 = vadd.f32 %v3407_v0, %v3406_v52  ;;  %v3424_v0 = vsel %vm442_vm0, %v3331_v41, 0.0 }
 0x599   : > { %v3409_v23 = vsel %vm442_vm0, %v3326_v9, 0.0  ;;  %v3620_v8 = vsel %vm1776_vm8, %v3619_v5, %v3615_v48  ;;  %v3333_v9 = vmul.f32 %v4510_v37, %v6992_v31  ;;  %v3692_v37 = vrot.slane %v7023_v61, %v5807_v6 }
 0x59a   : > { %v3410_v46 = vadd.f32 %v3409_v23, %v3408_v19  ;;  %v3855_v38 = vsel %vm2051_vm9, %v3620_v8, %v7012_v53  ;;  %v3079_v15 = vpop.permute.xlu0 %3078  ;;  %v7082_v4 = vpop.permute.xlu1 %3193 }
 0x59b   : > { %v3328_v59 = vmul.f32 %v4507_v60, %v3079_v15  ;;  %v3628_v42 = vrot.slane %v3079_v15, %v7871_v44 }
 0x59c   : > { %v3411_v1 = vrot.slane %v3410_v46, 4 }
 0x59d   : > { %v3418_v53 = vsel %vm442_vm0, %v3328_v59, 0.0  ;;  %v3629_v14 = vsel %vm1734_vm2, %v3628_v42, %v3624_v29  ;;  %v3428_v59 = vsel %vm442_vm0, %v3333_v9, 0.0  ;;  %v4512_v42 = vld [vmem:[%s4779_s25 + $0xb8] sm:$0xff] }
 0x59e   : > { %v3412_v33 = vadd.f32 %v3411_v1, %v3410_v46  ;;  %v3419_v20 = vadd.f32 %v3418_v53, %v3417_v63  ;;  %v3634_v11 = vsel %vm1741_vm3, %v3633_v55, %v3629_v14  ;;  %v3089_v45 = vpop.permute.xlu0 %3088  ;;  %v3395_v46 = vadd.f32 %v3394_v56, %v3393_v30  ;;  %v7096_v29 = vpop.permute.xlu1 %3233 }
 0x59f   : > { %v3330_v21 = vmul.f32 %v4509_v62, %v3089_v45  ;;  %v3638_v13 = vrot.slane %v3089_v45, %v5796_v35 }
 0x5a0   : > { %v3413_v47 = vrot.slane %v3412_v33, 2  ;;  %v3421_v39 = vadd.f32 %v3420_v50, %v3419_v20  ;;  %v3672_v50 = vrot.slane %v7004_v57, %v7872_v36 }
 0x5a1   : > { %v3422_v43 = vsel %vm442_vm0, %v3330_v21, 0.0  ;;  %v3639_v34 = vsel %vm1748_vm4, %v3638_v13, %v3634_v11  ;;  %v3663_v11 = vrot.slane %v6998_v27, %v7870_v25 }
 0x5a2   : > { %v3414_v28 = vadd.f32 %v3413_v47, %v3412_v33  ;;  %v3423_v52 = vadd.f32 %v3422_v43, %v3421_v39  ;;  %v3644_v48 = vsel %vm1755_vm5, %v3643_v3, %v3639_v34  ;;  %v3099_v2 = vpop.permute.xlu0 %3098  ;;  %v7111_v10 = vpop.permute.xlu1 %3203  ;;  %v3682_v43 = vrot.slane %v7014_v26, %v5799_v24 }
 0x5a3   : > { %v3332_v5 = vmul.f32 %v4511_v17, %v3099_v2  ;;  %v3648_v19 = vrot.slane %v3099_v2, %v5804_v7  ;;  %v4513_v17 = vld [vmem:[%s4779_s25 + $0xc8] sm:$0xff] }
 0x5a4   : > { %v3415_v49 = vrot.slane %v3414_v28, 1  ;;  %v3425_v23 = vadd.f32 %v3424_v0, %v3423_v52 }
 0x5a5   : > { %v3426_v8 = vsel %vm442_vm0, %v3332_v5, 0.0  ;;  %v3649_v40 = vsel %vm1762_vm6, %v3648_v19, %v3644_v48 }
 0x5a6   : > { %v3416_v15 = vadd.f32 %v3415_v49, %v3414_v28  ;;  %v3427_v22 = vadd.f32 %v3426_v8, %v3425_v23  ;;  %v3654_v54 = vsel %vm1769_vm7, %v3653_v18, %v3649_v40  ;;  %v3109_v60 = vpop.permute.xlu0 %3108  ;;  %v7119_v34 = vpop.permute.xlu1 %3278  ;;  %v4514_v49 = vld [vmem:[%s4779_s25 + $0xc0] sm:$0xff] }
 0x5a7   : > { %v3334_v55 = vmul.f32 %v4512_v42, %v3109_v60  ;;  %v3658_v31 = vrot.slane %v3109_v60, %v5810_v12  ;;  %v3335_v23 = vmul.f32 %v4514_v49, %v6998_v27  ;;  %v4515_v27 = vld [vmem:[%s4779_s25 + $0xd0] sm:$0xff] }
 0x5a8   : > { %v3872_v1 = vsel %vm2051_vm9, %v3416_v15, %v3395_v46  ;;  %v3429_v63 = vadd.f32 %v3428_v59, %v3427_v22  ;;  %v3337_v42 = vmul.f32 %v4515_v27, %v7004_v57 }
 0x5a9   : > { %v3430_v53 = vsel %vm442_vm0, %v3334_v55, 0.0  ;;  %v3659_v14 = vsel %vm1776_vm8, %v3658_v31, %v3654_v54  ;;  %v3438_v59 = vsel %vm442_vm0, %v3335_v23, 0.0  ;;  %v4524_v23 = vld [vmem:[%s4779_s25 + $0x120] sm:$0xff] }
 0x5aa   : > { %v3431_v30 = vadd.f32 %v3430_v53, %v3429_v63  ;;  %v3856_v33 = vsel %vm2053_vm10, %v3659_v14, %v3855_v38  ;;  %v3119_v20 = vpop.permute.xlu0 %3118  ;;  %v7133_v40 = vpop.permute.xlu1 %3208  ;;  %v3441_v14 = vsel %vm442_vm0, %v3337_v42, 0.0  ;;  %v4526_v42 = vld [vmem:[%s4779_s25 + $0x118] sm:$0xff] }
 0x5ab   : > { %v3667_v45 = vrot.slane %v3119_v20, %v7871_v44  ;;  %v3336_v5 = vmul.f32 %v4513_v17, %v3119_v20 }
 0x5ac   : > { %v3432_v41 = vrot.slane %v3431_v30, 4 }
 0x5ad   : > { %v3668_v62 = vsel %vm1734_vm2, %v3667_v45, %v3663_v11  ;;  %v3439_v22 = vsel %vm442_vm0, %v3336_v5, 0.0  ;;  %v4517_v11 = vld [vmem:[%s4779_s25 + $0xe0] sm:$0xff] }
 0x5ae   : > { %v3433_v21 = vadd.f32 %v3432_v41, %v3431_v30  ;;  %v3673_v13 = vsel %vm1741_vm3, %v3672_v50, %v3668_v62  ;;  %v3129_v3 = vpop.permute.xlu0 %3128  ;;  %v3440_v55 = vadd.f32 %v3439_v22, %v3438_v59  ;;  %v7146_v31 = vpop.permute.xlu1 %3248  ;;  %v3339_v57 = vmul.f32 %v4517_v11, %v7014_v26  ;;  %v4518_v41 = vld [vmem:[%s4779_s25 + $0xe8] sm:$0xff] }
 0x5af   : > { %v3677_v38 = vrot.slane %v3129_v3, %v5796_v35 }
 0x5b0   : > { %v3434_v47 = vrot.slane %v3433_v21, 2  ;;  %v3442_v30 = vadd.f32 %v3441_v14, %v3440_v55  ;;  %v4527_v14 = vld [vmem:[%s4779_s25 + $0x140] sm:$0xff] }
 0x5b1   : > { %v3678_v39 = vsel %vm1748_vm4, %v3677_v38, %v3673_v13  ;;  %v3445_v13 = vsel %vm442_vm0, %v3339_v57, 0.0  ;;  %v4519_v38 = vld [vmem:[%s4779_s25 + $0x108] sm:$0xff] }
 0x5b2   : > { %v3435_v56 = vadd.f32 %v3434_v47, %v3433_v21  ;;  %v3139_v28 = vpop.permute.xlu0 %3138  ;;  %v3683_v2 = vsel %vm1755_vm5, %v3682_v43, %v3678_v39  ;;  %v7157_v45 = vpop.permute.xlu1 %3288 }
 0x5b3   : > { %v3687_v52 = vrot.slane %v3139_v28, %v5804_v7  ;;  %v3340_v62 = vmul.f32 %v4518_v41, %v3139_v28  ;;  %v3721_v41 = vrot.slane %v7047_v51, %v5799_v24 }
 0x5b4   : > { %v3436_v48 = vrot.slane %v3435_v56, 1 }
 0x5b5   : > { %v3688_v0 = vsel %vm1762_vm6, %v3687_v52, %v3683_v2  ;;  %v3447_v39 = vsel %vm442_vm0, %v3340_v62, 0.0  ;;  %v4521_v52 = vld [vmem:[%s4779_s25 + $0xf0] sm:$0xff] }
 0x5b6   : > { %v3437_v9 = vadd.f32 %v3436_v48, %v3435_v56  ;;  %v3149_v19 = vpop.permute.xlu0 %3148  ;;  %v3693_v46 = vsel %vm1769_vm7, %v3692_v37, %v3688_v0  ;;  %v7166_v43 = vpop.permute.xlu1 %3218  ;;  %v4520_v56 = vld [vmem:[%s4779_s25 + $0x100] sm:$0xff]  ;;  %v3341_v48 = vmul.f32 %v4521_v52, %v7023_v61  ;;  %v4522_v37 = vld [vmem:[%s4779_s25 + $0xf8] sm:$0xff]  ;;  %v4525_v61 = vld [vmem:[%s4779_s25 + $0x130] sm:$0xff] }
 0x5b7   : > { %v3697_v18 = vrot.slane %v3149_v19, %v5810_v12  ;;  %v3343_v28 = vmul.f32 %v4520_v56, %v7029_v58  ;;  %v3349_v22 = vmul.f32 %v4525_v61, %v7059_v32  ;;  %v3741_v56 = vrot.slane %v7082_v4, %v7870_v25 }
 0x5b8   : > { %v7131_v8 = vsel %vm2053_vm10, %v3437_v9, %v3872_v1  ;;  %v4516_v1 = vld [vmem:[%s4779_s25 + $0xd8] sm:$0xff]  ;;  %v3342_v9 = vmul.f32 %v4522_v37, %v3149_v19  ;;  %v3780_v37 = vrot.slane %v7096_v29, %v7870_v25  ;;  %v3750_v61 = vrot.slane %v7111_v10, %v7872_v36 }
 0x5b9   : > { %v3698_v15 = vsel %vm1776_vm8, %v3697_v18, %v3693_v46  ;;  %v3338_v63 = vmul.f32 %v4516_v1, %v3129_v3  ;;  %v3459_v5 = vsel %vm442_vm0, %v3343_v28, 0.0  ;;  %v4523_v18 = vld [vmem:[%s4779_s25 + $0x110] sm:$0xff]  ;;  %v3347_v46 = vmul.f32 %v4524_v23, %v7047_v51  ;;  %v4530_v28 = vld [vmem:[%s4779_s25 + $0x1c8] sm:$0xff] }
 0x5ba   : > { %v7139_v54 = vsel %vm2055_vm11, %v3698_v15, %v3856_v33  ;;  %v7141_v60 = vpop.permute.xlu0 %3158  ;;  %v3345_v49 = vmul.f32 %v4523_v18, %v7035_v16  ;;  %v3449_v15 = vsel %vm442_vm0, %v3341_v48, 0.0  ;;  %v7186_v59 = vpop.permute.xlu1 %3258  ;;  %v3702_v1 = vrot.slane %v7029_v58, %v7870_v25  ;;  %v4528_v58 = vld [vmem:[%s4779_s25 + $0x180] sm:$0xff]  ;;  %v4532_v18 = vld [vmem:[%s4779_s25 + $0x198] sm:$0xff] }
 0x5bb   : > { %v3443_v33 = vsel %vm442_vm0, %v3338_v63, 0.0  ;;  %v3344_v47 = vmul.f32 %v4519_v38, %v7141_v60  ;;  %v3711_v63 = vrot.slane %v7035_v16, %v7872_v36  ;;  %v3359_v62 = vmul.f32 %v4528_v58, %v7096_v29  ;;  %v4529_v38 = vld [vmem:[%s4779_s25 + $0x150] sm:$0xff]  ;;  %v4535_v58 = vld [vmem:[%s4779_s25 + $0x168] sm:$0xff] }
 0x5bc   : > { %v3444_v50 = vadd.f32 %v3443_v33, %v3442_v30  ;;  %v3351_v30 = vmul.f32 %v4527_v14, %v7082_v4  ;;  %v3451_v33 = vsel %vm442_vm0, %v3342_v9, 0.0  ;;  %v3462_v57 = vsel %vm442_vm0, %v3345_v49, 0.0  ;;  %v4531_v9 = vld [vmem:[%s4779_s25 + $0x158] sm:$0xff] }
 0x5bd   : > { %v3460_v0 = vsel %vm442_vm0, %v3344_v47, 0.0  ;;  %v3353_v47 = vmul.f32 %v4529_v38, %v7111_v10  ;;  %v3368_v52 = vmul.f32 %v4530_v28, %v7119_v34  ;;  %v3362_v49 = vmul.f32 %v4532_v18, %v7146_v31  ;;  %v4534_v14 = vld [vmem:[%s4779_s25 + $0x1d8] sm:$0xff]  ;;  %v4536_v38 = vld [vmem:[%s4779_s25 + $0x128] sm:$0xff] }
 0x5be   : > { %v7149_v53 = vpop.permute.xlu0 %3168  ;;  %v3446_v3 = vadd.f32 %v3445_v13, %v3444_v50  ;;  %v3461_v19 = vadd.f32 %v3460_v0, %v3459_v5  ;;  %v3466_v50 = vsel %vm442_vm0, %v3347_v46, 0.0  ;;  %v7206_v13 = vsel %vm442_vm0, %v3349_v22, 0.0  ;;  %v7224_v23 = vpop.permute.xlu1 %3298  ;;  %v4547_v4 = vld [vmem:[%s4779_s25 + $0x1b8] sm:$0xff] }
 0x5bf   : > { %v3346_v55 = vmul.f32 %v4526_v42, %v7149_v53  ;;  %v3480_v0 = vsel %vm442_vm0, %v3351_v30, 0.0  ;;  %v3354_v5 = vmul.f32 %v4531_v9, %v7133_v40  ;;  %v3706_v22 = vrot.slane %v7141_v60, %v7871_v44 }
 0x5c0   : > { %v3448_v2 = vadd.f32 %v3447_v39, %v3446_v3  ;;  %v3731_v3 = vrot.slane %v7059_v32, %v5807_v6  ;;  %v3463_v39 = vadd.f32 %v3462_v57, %v3461_v19  ;;  %v4533_v19 = vld [vmem:[%s4779_s25 + $0x148] sm:$0xff]  ;;  %v3483_v42 = vsel %vm442_vm0, %v3353_v47, 0.0 }
 0x5c1   : > { %v3370_v30 = vmul.f32 %v4534_v14, %v7157_v45  ;;  %v7243_v57 = vsel %vm442_vm0, %v3368_v52, 0.0  ;;  %v7250_v47 = vsel %vm442_vm0, %v3354_v5, 0.0  ;;  %v7255_v18 = vsel %vm442_vm0, %v3362_v49, 0.0 }
 0x5c2   : > { %v7153_v20 = vpop.permute.xlu0 %3178  ;;  %v3450_v27 = vadd.f32 %v3449_v15, %v3448_v2  ;;  %v3464_v2 = vsel %vm442_vm0, %v3346_v55, 0.0  ;;  %v7229_v15 = vsel %vm442_vm0, %v3359_v62, 0.0  ;;  %v3356_v62 = vmul.f32 %v4535_v58, %v7166_v43  ;;  %v7274_v9 = vpop.permute.xlu1 %3228  ;;  %v4539_v55 = vld [vmem:[%s4779_s25 + $0x1e8] sm:$0xff]  ;;  %v4541_v58 = vld [vmem:[%s4779_s25 + $0x190] sm:$0xff] }
 0x5c3   : > { %v3348_v28 = vmul.f32 %v4536_v38, %v7153_v20  ;;  %v3716_v5 = vrot.slane %v7149_v53, %v5796_v35  ;;  %v7268_v49 = vsel %vm442_vm0, %v3370_v30, 0.0  ;;  %v4537_v38 = vld [vmem:[%s4779_s25 + $0x1a8] sm:$0xff] }
 0x5c4   : > { %v3452_v48 = vadd.f32 %v3451_v33, %v3450_v27  ;;  %v3465_v33 = vadd.f32 %v3464_v2, %v3463_v39  ;;  %v3364_v39 = vmul.f32 %v4537_v38, %v7186_v59  ;;  %v3372_v38 = vmul.f32 %v4539_v55, %v7224_v23 }
 0x5c6   : > { %v7160_v21 = vpop.permute.xlu0 %3188  ;;  %v3453_v60 = vrot.slane %v3452_v48, 4  ;;  %v3467_v2 = vadd.f32 %v3466_v50, %v3465_v33  ;;  %v7302_v16 = vsel %vm442_vm0, %v3364_v39, 0.0  ;;  %v7315_v39 = vsel %vm442_vm0, %v3372_v38, 0.0  ;;  %v7330_v51 = vpop.permute.xlu1 %3268 }
 0x5c8   : > { %v7279_v53 = vadd.f32 %v3453_v60, %v3452_v48  ;;  %v4540_v60 = vld [vmem:[%s4779_s25 + $0x178] sm:$0xff] }
 0x5ca   : > { %v7168_v26 = vpop.permute.xlu0 %3198 }
 0x5cb   : > { %v3352_v27 = vmul.f32 %v4533_v19, %v7168_v26  ;;  %v3707_v19 = vsel %vm1734_vm2, %v3706_v22, %v3702_v1  ;;  %v7277_v1 = vsel %vm442_vm0, %v3356_v62, 0.0  ;;  %v3468_v22 = vsel %vm442_vm0, %v3348_v28, 0.0 }
 0x5cc   : > { %v3712_v50 = vsel %vm1741_vm3, %v3711_v63, %v3707_v19  ;;  %v3358_v28 = vmul.f32 %v4540_v60, %v7274_v9  ;;  %v4542_v19 = vld [vmem:[%s4779_s25 + $0x138] sm:$0xff]  ;;  %v4543_v60 = vld [vmem:[%s4779_s25 + $0x160] sm:$0xff] }
 0x5cd   : > { %v3481_v14 = vsel %vm442_vm0, %v3352_v27, 0.0  ;;  %v4538_v27 = vld [vmem:[%s4779_s25 + $0x188] sm:$0xff]  ;;  %v3717_v62 = vsel %vm1748_vm4, %v3716_v5, %v3712_v50  ;;  %v3350_v5 = vmul.f32 %v4542_v19, %v7160_v21  ;;  %v3745_v50 = vrot.slane %v7168_v26, %v7871_v44  ;;  %v4544_v19 = vld [vmem:[%s4779_s25 + $0x1c0] sm:$0xff] }
 0x5ce   : > { %v7176_v17 = vpop.permute.xlu0 %3238  ;;  %v3482_v33 = vadd.f32 %v3481_v14, %v3480_v0  ;;  %v3469_v0 = vadd.f32 %v3468_v22, %v3467_v2  ;;  %v3722_v2 = vsel %vm1755_vm5, %v3721_v41, %v3717_v62 }
 0x5cf   : > { %v3360_v30 = vmul.f32 %v4538_v27, %v7176_v17  ;;  %v3726_v27 = vrot.slane %v7153_v20, %v5804_v7  ;;  %v3784_v62 = vrot.slane %v7176_v17, %v7871_v44 }
 0x5d0   : > { %v3484_v22 = vadd.f32 %v3483_v42, %v3482_v33  ;;  %v3471_v41 = vadd.f32 %v7206_v13, %v3469_v0  ;;  %v3472_v42 = vsel %vm442_vm0, %v3350_v5, 0.0 }
 0x5d1   : > { %v3502_v20 = vsel %vm442_vm0, %v3360_v30, 0.0  ;;  %v7324_v30 = vsel %vm442_vm0, %v3358_v28, 0.0  ;;  %v3727_v38 = vsel %vm1762_vm6, %v3726_v27, %v3722_v2  ;;  %v3746_v28 = vsel %vm1734_vm2, %v3745_v50, %v3741_v56  ;;  %v4545_v27 = vld [vmem:[%s4779_s25 + $0x1d0] sm:$0xff] }
 0x5d2   : > { %v7197_v11 = vpop.permute.xlu0 %3273  ;;  %v3503_v33 = vadd.f32 %v3502_v20, %v7229_v15  ;;  %v3486_v17 = vadd.f32 %v7250_v47, %v3484_v22  ;;  %v3366_v56 = vmul.f32 %v4547_v4, %v7330_v51  ;;  %v3814_v50 = vrot.slane %v7330_v51, %v5810_v12 }
 0x5d3   : > { %v3367_v63 = vmul.f32 %v4544_v19, %v7197_v11  ;;  %v4546_v19 = vld [vmem:[%s4779_s25 + $0x1a0] sm:$0xff]  ;;  %v3732_v20 = vsel %vm1769_vm7, %v3731_v3, %v3727_v38  ;;  %v3751_v47 = vsel %vm1741_vm3, %v3750_v61, %v3746_v28  ;;  %v3819_v3 = vrot.slane %v7197_v11, %v7870_v25 }
 0x5d4   : > { %v4548_v25 = vld [vmem:[%s4779_s25 + $0x1e0] sm:$0xff] }
 0x5d5   : > { %v3522_v13 = vsel %vm442_vm0, %v3367_v63, 0.0  ;;  %v3736_v63 = vrot.slane %v7160_v21, %v5810_v12 }
 0x5d6   : > { %v7226_v46 = vpop.permute.xlu0 %3243  ;;  %v3524_v32 = vadd.f32 %v7243_v57, %v3522_v13 }
 0x5d7   : > { %v3361_v55 = vmul.f32 %v4541_v58, %v7226_v46  ;;  %v3789_v15 = vrot.slane %v7226_v46, %v7872_v36  ;;  %v3473_v46 = vadd.f32 %v3472_v42, %v3471_v41  ;;  %v3514_v41 = vsel %vm442_vm0, %v3366_v56, 0.0  ;;  %v4549_v42 = vld [vmem:[%s4779_s25 + $0x170] sm:$0xff] }
 0x5d9   : > { %v3504_v14 = vsel %vm442_vm0, %v3361_v55, 0.0 }
 0x5da   : > { %v7259_v52 = vpop.permute.xlu0 %3283  ;;  %v3505_v0 = vadd.f32 %v3504_v14, %v3503_v33  ;;  %v3785_v14 = vsel %vm1734_vm2, %v3784_v62, %v3780_v37  ;;  %v3474_v33 = vrot.slane %v3473_v46, 4 }
 0x5db   : > { %v3369_v55 = vmul.f32 %v4545_v27, %v7259_v52  ;;  %v3790_v10 = vsel %vm1741_vm3, %v3789_v15, %v3785_v14  ;;  %v3828_v57 = vrot.slane %v7259_v52, %v7872_v36  ;;  %v7928_v36 = vrot.slane %v7133_v40, %v5796_v35  ;;  %v4550_v15 = vld [vmem:[%s4779_s25 + $0x1b0] sm:$0xff] }
 0x5dc   : > { %v3507_v29 = vadd.f32 %v7255_v18, %v3505_v0  ;;  %v7929_v27 = vrot.slane %v7146_v31, %v5796_v35 }
 0x5dd   : > { %v3525_v21 = vsel %vm442_vm0, %v3369_v55, 0.0  ;;  %v3756_v52 = vsel %vm1748_vm4, %v7928_v36, %v3751_v47 }
 0x5de   : > { %v7292_v48 = vpop.permute.xlu0 %3213  ;;  %v3526_v62 = vadd.f32 %v3525_v21, %v3524_v32  ;;  %v3795_v55 = vsel %vm1748_vm4, %v7929_v27, %v3790_v10  ;;  %v7930_v32 = vrot.slane %v7166_v43, %v5804_v7  ;;  %v7931_v21 = vrot.slane %v7186_v59, %v5804_v7 }
 0x5df   : > { %v3355_v58 = vmul.f32 %v4543_v60, %v7292_v48  ;;  %v3760_v61 = vrot.slane %v7292_v48, %v5799_v24  ;;  %v7927_v48 = vrot.slane %v7119_v34, %v7871_v44  ;;  %v7932_v43 = vrot.slane %v7157_v45, %v5796_v35 }
 0x5e0   : > { %v3528_v4 = vadd.f32 %v7268_v49, %v3526_v62  ;;  %v7934_v45 = vrot.slane %v7274_v9, %v5810_v12 }
 0x5e1   : > { %v3487_v2 = vsel %vm442_vm0, %v3355_v58, 0.0 }
 0x5e2   : > { %v3254_v26 = vpop.permute.xlu0 %3253  ;;  %v3488_v58 = vadd.f32 %v3487_v2, %v3486_v17 }
 0x5e3   : > { %v3363_v60 = vmul.f32 %v4546_v19, %v3254_v26  ;;  %v3799_v38 = vrot.slane %v3254_v26, %v5799_v24  ;;  %v3824_v26 = vsel %vm1734_vm2, %v7927_v48, %v3819_v3  ;;  %v3761_v19 = vsel %vm1755_vm5, %v3760_v61, %v3756_v52  ;;  %v4552_v48 = vld [vmem:[%s4779_s25 + $0x1f8] sm:$0xff] }
 0x5e4   : > { %v3490_v18 = vadd.f32 %v7277_v1, %v3488_v58  ;;  %v3829_v0 = vsel %vm1741_vm3, %v3828_v57, %v3824_v26  ;;  %v3475_v58 = vadd.f32 %v3474_v33, %v3473_v46  ;;  %v3766_v3 = vsel %vm1762_vm6, %v7930_v32, %v3761_v19 }
 0x5e5   : > { %v3508_v22 = vsel %vm442_vm0, %v3363_v60, 0.0  ;;  %v3800_v1 = vsel %vm1755_vm5, %v3799_v38, %v3795_v55  ;;  %v3834_v46 = vsel %vm1748_vm4, %v7932_v43, %v3829_v0 }
 0x5e6   : > { %v7349_v5 = vpop.permute.xlu0 %3293  ;;  %v3509_v28 = vadd.f32 %v3508_v22, %v3507_v29  ;;  %v3805_v22 = vsel %vm1762_vm6, %v7931_v21, %v3800_v1  ;;  %v4551_v29 = vld [vmem:[%s4779_s25 + $0x1f0] sm:$0xff]  ;;  %v3476_v35 = vrot.slane %v3475_v58, 2 }
 0x5e7   : > { %v3371_v11 = vmul.f32 %v4548_v25, %v7349_v5  ;;  %v3838_v56 = vrot.slane %v7349_v5, %v5799_v24 }
 0x5e8   : > { %v3511_v14 = vadd.f32 %v7302_v16, %v3509_v28  ;;  %v3737_v16 = vsel %vm1776_vm8, %v3736_v63, %v3732_v20  ;;  %v7933_v20 = vrot.slane %v7279_v53, 2  ;;  %v3477_v27 = vadd.f32 %v3476_v35, %v3475_v58 }
 0x5e9   : > { %v3529_v40 = vsel %vm442_vm0, %v3371_v11, 0.0  ;;  %v3858_v9 = vsel %vm2057_vm12, %v3737_v16, %v7139_v54 }
 0x5ea   : > { %v3224_v37 = vpop.permute.xlu0 %3223  ;;  %v3530_v10 = vadd.f32 %v3529_v40, %v3528_v4  ;;  %v7437_v63 = vadd.f32 %v7933_v20, %v7279_v53  ;;  %v7935_v53 = vrot.slane %v7224_v23, %v5804_v7 }
 0x5eb   : > { %v3357_v60 = vmul.f32 %v4549_v42, %v3224_v37  ;;  %v3770_v44 = vrot.slane %v3224_v37, %v5807_v6  ;;  %v3839_v37 = vsel %vm1755_vm5, %v3838_v56, %v3834_v46 }
 0x5ec   : > { %v3457_v1 = vrot.slane %v7437_v63, 1 }
 0x5ed   : > { %v3491_v2 = vsel %vm442_vm0, %v3357_v60, 0.0  ;;  %v3771_v5 = vsel %vm1769_vm7, %v3770_v44, %v3766_v3 }
 0x5ee   : > { %v3492_v13 = vadd.f32 %v3491_v2, %v3490_v18  ;;  %v3264_v34 = vpop.permute.xlu0 %3263  ;;  %v3776_v42 = vsel %vm1776_vm8, %v7934_v45, %v3771_v5  ;;  %v3844_v18 = vsel %vm1762_vm6, %v7935_v53, %v3839_v37 }
 0x5ef   : > { %v3365_v17 = vmul.f32 %v4550_v15, %v3264_v34  ;;  %v3809_v31 = vrot.slane %v3264_v34, %v5807_v6  ;;  %v3859_v52 = vsel %vm2059_vm13, %v3776_v42, %v3858_v9 }
 0x5f0   : > { %v3494_v47 = vadd.f32 %v7324_v30, %v3492_v13 }
 0x5f1   : > { %v3512_v49 = vsel %vm442_vm0, %v3365_v17, 0.0  ;;  %v3810_v59 = vsel %vm1769_vm7, %v3809_v31, %v3805_v22 }
 0x5f2   : > { %v3495_v24 = vrot.slane %v3494_v47, 4  ;;  %v3513_v30 = vadd.f32 %v3512_v49, %v3511_v14  ;;  %v3304_v61 = vpop.permute.xlu0 %3303 }
 0x5f3   : > { %v3373_v38 = vmul.f32 %v4551_v29, %v3304_v61  ;;  %v3848_v11 = vrot.slane %v3304_v61, %v5807_v6  ;;  %v3815_v6 = vsel %vm1776_vm8, %v3814_v50, %v3810_v59 }
 0x5f4   : > { %v3496_v57 = vadd.f32 %v3495_v24, %v3494_v47  ;;  %v3515_v25 = vadd.f32 %v3514_v41, %v3513_v30  ;;  %v3532_v41 = vadd.f32 %v7315_v39, %v3530_v10  ;;  %v3860_v7 = vsel %vm2061_vm14, %v3815_v6, %v3859_v52 }
 0x5f5   : > { %v3533_v60 = vsel %vm442_vm0, %v3373_v38, 0.0  ;;  %v3849_v36 = vsel %vm1769_vm7, %v3848_v11, %v3844_v18 }
 0x5f6   : > { %v3497_v33 = vrot.slane %v3496_v57, 2  ;;  %v3516_v62 = vrot.slane %v3515_v25, 4  ;;  %v3309_v28 = vpop.permute.xlu0 %3308  ;;  %v3534_v39 = vadd.f32 %v3533_v60, %v3532_v41 }
 0x5f7   : > { %v3374_v51 = vmul.f32 %v4552_v48, %v3309_v28  ;;  %v3853_v50 = vrot.slane %v3309_v28, %v5810_v12 }
 0x5f8   : > { %v3517_v26 = vadd.f32 %v3516_v62, %v3515_v25  ;;  %v3498_v12 = vadd.f32 %v3497_v33, %v3496_v57 }
 0x5f9   : > { %v3535_v55 = vsel %vm442_vm0, %v3374_v51, 0.0  ;;  %v3854_v54 = vsel %vm1776_vm8, %v3853_v50, %v3849_v36 }
 0x5fa   : > { %v3518_v23 = vrot.slane %v3517_v26, 2  ;;  %v3536_v2 = vadd.f32 %v3535_v55, %v3534_v39  ;;  %v3861_v19 = vsel %vm2063_vm15, %v3854_v54, %v3860_v7 }
 0x5fb   : > { %3863 = vst.msk [vmem:[%s347_s15] sm:$0xff] %vm2066_vm1, %v3861_v19 }
 0x5fc   : > { %v3519_v13 = vadd.f32 %v3518_v23, %v3517_v26  ;;  %v3537_v44 = vrot.slane %v3536_v2, 4 }
 0x5fd   : > { %4566 = shalt.err (!%p4563_p4)
}
 0x5fe   : > { %s4567_s15 = scalar_lea.hbm %s7470_s22, 128  ;;  %s4571_s26 = scalar_lea.hbm %s7565_s8, 256 }
 0x5ff   : > { %p4568_p7 = scmp.ne.s32.totalorder %s7470_s22, %s4567_s15  ;;  %p4572_p10 = scmp.lt.u32.totalorder %s7470_s22, %s7565_s8 }
 0x600   : > { %p4573_p11 = scmp.lt.u32.totalorder %s4571_s26, %s4567_s15  ;;  %p4575_p13 = scmp.lt.u32.totalorder %s4567_s15, %s7470_s22 }
 0x601   : > { %p4569_p8 = pnand %p4568_p7, %p4747_p5 }
 0x602   : > { %p4574_p12 = por %p4573_p11, %p4572_p10 }
 0x603   : > { %p4570_p9 = pneg %p4569_p8 }
 0x604   : > { %p4576_p0 = por %p4575_p13, %p4574_p12 }
 0x606   : > { %p4577_p1 = pnand %p4576_p0, %p4570_p9 }
 0x608   : > { %4580 = shalt.err (!%p4577_p1)
}
 0x609   : > { %4308 = dma.vmem_to_hbm [thread:$0]  (%p4747_p5), %s7472_s17, 128, %s7470_s22, %s3882_s23   ;;  %v3478_v34 = vrot.slane %v3477_v27, 1  ;;  %v3499_v0 = vrot.slane %v3498_v12, 1  ;;  %v3538_v40 = vadd.f32 %v3537_v44, %v3536_v2  ;;  %v3520_v15 = vrot.slane %v3519_v13, 1 }
 0x60a   : > { %v3458_v17 = vadd.f32 %v3457_v1, %v7437_v63  ;;  %s354_s10 = scalar_lea.vmem [#allocation5], %s4020_s30  ;;  %s7936_s22 = sshll.u32 %s4730_s7, 7 }
 0x60b   : > { %v3539_v31 = vrot.slane %v3538_v40, 2  ;;  %v3479_v4 = vadd.f32 %v3478_v34, %v3477_v27  ;;  %v3500_v56 = vadd.f32 %v3499_v0, %v3498_v12  ;;  %v3521_v14 = vadd.f32 %v3520_v15, %v3519_v13  ;;  %s3913_s17 = sshll.u32 %s354_s10, 4  ;;  %s7512_s28 = scalar_lea.hbm %s7566_s9, %s7936_s22  ;;  %s7514_s17 = int_to_ptr.vmem [resolvable:$true] %s3913_s17 }
 0x60c   : > { %v3874_v32 = vsel %vm2055_vm11, %v3458_v17, %v7131_v8  ;;  %s3887_s30 = scalar_lea.sflag [#allocation6], %s7407_s29  ;;  %s4581_s15 = scalar_lea.vmem %s7514_s17, 128 }
 0x60d   : > { %v3540_v47 = vadd.f32 %v3539_v31, %v3538_v40  ;;  %v3875_v3 = vsel %vm2057_vm12, %v3479_v4, %v3874_v32  ;;  %p4582_p2 = scmp.ne.s32.totalorder %s7514_s17, %s4581_s15  ;;  %s4655_s7 = smov [#allocation5]  }
 0x60e   : > { %v3876_v22 = vsel %vm2059_vm13, %v3500_v56, %v3875_v3  ;;  %s4585_s25 = sshll.u32 %s4655_s7, 4  ;;  %s4586_s25 = int_to_ptr.vmem [resolvable:$false] %s4585_s25 }
 0x60f   : > { %v3541_v58 = vrot.slane %v3540_v47, 1  ;;  %v3877_v49 = vsel %vm2061_vm14, %v3521_v14, %v3876_v22  ;;  %p4583_p3 = pnand %p4582_p2, %p4747_p5  ;;  %s4587_s18 = scalar_lea.vmem %s4586_s25, 256 }
 0x610   : > { %p4588_p7 = scmp.lt.s32.totalorder %s7514_s17, %s4586_s25  ;;  %p4589_p8 = scmp.lt.s32.totalorder %s4587_s18, %s4581_s15 }
 0x611   : > { %v3542_v21 = vadd.f32 %v3541_v58, %v3540_v47  ;;  %p4584_p4 = pneg %p4583_p3 }
 0x612   : > { %p4590_p9 = por %p4589_p8, %p4588_p7 }
 0x613   : > { %v3878_v8 = vsel %vm2063_vm15, %v3542_v21, %v3877_v49 }
 0x614   : > { %3880 = vst.msk [vmem:[%s354_s10] sm:$0xff] %vm442_vm0, %v3878_v8  ;;  %p4591_p10 = pnand %p4590_p9, %p4584_p4 }
 0x616   : > { %4594 = shalt.err (!%p4591_p10)
}
 0x617   : > { %s4595_s29 = scalar_lea.hbm %s7512_s28, 128  ;;  %s4599_s10 = scalar_lea.hbm %s7566_s9, 256 }
 0x618   : > { %p4596_p11 = scmp.ne.s32.totalorder %s7512_s28, %s4595_s29  ;;  %p4600_p0 = scmp.lt.u32.totalorder %s7512_s28, %s7566_s9 }
 0x619   : > { %p4601_p1 = scmp.lt.u32.totalorder %s4599_s10, %s4595_s29  ;;  %p4603_p3 = scmp.lt.u32.totalorder %s4595_s29, %s7512_s28 }
 0x61a   : > { %p4597_p12 = pnand %p4596_p11, %p4747_p5 }
 0x61b   : > { %p4602_p2 = por %p4601_p1, %p4600_p0 }
 0x61c   : > { %p4598_p13 = pneg %p4597_p12 }
 0x61d   : > { %p4604_p4 = por %p4603_p3, %p4602_p2 }
 0x61f   : > { %p4605_p7 = pnand %p4604_p4, %p4598_p13 }
 0x621   : > { %4608 = shalt.err (!%p4605_p7)
}
 0x622   : > { %4309 = dma.vmem_to_hbm [thread:$0]  (%p4747_p5), %s7514_s17, 128, %s7512_s28, %s3887_s30  }
 0x623 PF: > { %p4319_p8 = scmp.ge.s32.totalorder %s4647_s14, 2  ;;  %s3925_s24 = sand.u32 1, %s4635_s11  }
 0x624   : > { %s3926_s15 = scalar_lea.sflag [#allocation4], %s3925_s24 }
 0x625   : > { %p4313_p9 = pnand %p4319_p8, %p4751_p6 }
 0x627   : > { %4626 = dma.done.wait (!%p4313_p9), %s3926_s15, 128  }
 0x628   : > { %4628 = vsyncadd (!%p4313_p9), %s3926_s15, 4294967168  ;;  %s3935_s7 = scalar_lea.sflag [#allocation6], %s3925_s24 }
 0x629   : > { %4630 = dma.done.wait (!%p4313_p9), %s3935_s7, 128  }
 0x62a   : > { %4632 = vsyncadd (!%p4313_p9), %s3935_s7, 4294967168  ;;  %p25_p5 = scmp.ge.s32.totalorder %s4734_s16, 4   ;;  %s7937_s11 = smov %s4639_s12 }
 0x62b   : > { %s7938_s12 = smov %s4643_s13  ;;  %s7939_s13 = smov %s4745_s19 }
 0x62c   : > { %s7940_s14 = smov %s4734_s16  ;;  %27 = sbr.rel (!%p25_p5) target bundleno = 8 (0x8), region = 107 }
 0x633   :  { %3940 = vsyncpa [#allocation4], 1 }
 0x634   :  { %3942 = vsyncpa [#allocation4 + $0x1], 1 }
 0x635   :  { %3943 = vsyncpa [#allocation6], 1 }
 0x636   :  { %3945 = vsyncpa [#allocation6 + $0x1], 1 }

</bundles_post_ra>
